<compile_context>
chip_gen: v7x
topology: tpu7x:2x2x1
jax: 0.10.0
libtpu: 0.0.40
codegen_flags: <defaults>
</compile_context>

<pallas_src>
from functools import partial

import jax
import jax.numpy as jnp
from jax.experimental import pallas as pl
from jax.experimental.pallas import tpu as pltpu


def _window_attn_kernel(x_ref, wqkv_ref, bqkv_ref, wproj_ref, bproj_ref,
                        o_ref, qkv_ref, acc_ref, *,
                        num_heads, head_dim, c_real, c_pad, n_w, tw):
    """One tile of `tw` windows (vertically adjacent, same window column).

    x_ref    : (tw, wh, ww, Cp)  bf16 window tokens (Cp = lane-padded channels)
    wqkv_ref : (Cp, 3Cp) bf16    pre-transposed, softmax scale folded into Q cols
    bqkv_ref : (1, 3Cp)  f32     scale folded into Q part
    wproj_ref: (Cp, Cp)  bf16    pre-transposed
    bproj_ref: (1, Cp)   f32
    o_ref    : (tw, wh, ww, Cp)  output block (same layout as x)
    qkv_ref  : (tw, n_w, 3Cp) bf16 VMEM scratch (staged QKV; heads are ref slices)
    acc_ref  : (tw, n_w, Cp)  f32  VMEM scratch (concatenated per-head outputs)
    """
    wh, ww = x_ref.shape[1], x_ref.shape[2]
    m = tw * n_w
    bf = qkv_ref.dtype

    x2d = x_ref[...].reshape(m, c_pad)                       # (m, Cp) bf16

    # Fused QKV projection for all windows in the tile (bf16 MXU, f32 accumulate),
    # then one contiguous cast staged in VMEM.
    qkv = jnp.dot(x2d, wqkv_ref[...], preferred_element_type=jnp.float32)
    qkv = qkv + bqkv_ref[0]                                  # (m, 3Cp) f32
    qkv_ref[...] = qkv.reshape(tw, n_w, 3 * c_pad).astype(bf)

    if c_real != c_pad:
        # Pad channels of the head-output slab must be finite (Wproj pad rows are
        # zero, so their value is otherwise irrelevant).
        acc_ref[:, :, c_real:] = jnp.zeros((tw, n_w, c_pad - c_real), jnp.float32)

    # TODO(synk): on v6e a single batched-head einsum pair ('bhqd,bhkd->bhqk')
    # after head-major staging would give a longer MXU push stream; kept the
    # statically unrolled per-head loop (single batch dim) for robust lowering.
    for h in range(num_heads):                               # static unroll
        off = h * head_dim
        q = qkv_ref[:, :, off:off + head_dim]                # (tw, n_w, hd) bf16
        k = qkv_ref[:, :, c_pad + off:c_pad + off + head_dim]
        v = qkv_ref[:, :, 2 * c_pad + off:2 * c_pad + off + head_dim]

        # Scores: contract over head dim, batched over the windows in the tile.
        # Scale already folded into the Q weights/bias.
        s = jnp.einsum('bqd,bkd->bqk', q, k,
                       preferred_element_type=jnp.float32)   # (tw, n_w, n_w) f32

        # Numerically stable softmax in f32; normalization deferred past PV.
        s = s - jnp.max(s, axis=-1, keepdims=True)
        p = jnp.exp(s)
        denom = jnp.sum(p, axis=-1, keepdims=True)           # (tw, n_w, 1)

        o_h = jnp.einsum('bqk,bkd->bqd', p.astype(bf), v,
                         preferred_element_type=jnp.float32)  # (tw, n_w, hd) f32
        # Normalize after PV: n_w/hd fewer multiplies than normalizing p itself.
        o_h = o_h * pl.reciprocal(denom, approx=True)
        acc_ref[:, :, off:off + head_dim] = o_h

    # Output projection over the whole tile (one big matmul; do NOT split per head).
    y = jnp.dot(acc_ref[...].reshape(m, c_pad).astype(bf), wproj_ref[...],
                preferred_element_type=jnp.float32)
    y = y + bproj_ref[0]
    o_ref[...] = y.reshape(tw, wh, ww, c_pad).astype(o_ref.dtype)


def window_attention(x, H, W, params, *, window_size, num_heads, target_rows=1024):
    """Forward pass matching WindowAttention.forward(x, H, W).

    x: (B_, N, C) with N == H * W.
    params: dict with 'wqkv' (3C, C), 'bqkv' (3C,), 'wproj' (C, C), 'bproj' (C,)
            in PyTorch nn.Linear convention (y = x @ W.T + b).
    """
    B_, N, C = x.shape
    wh, ww = window_size
    head_dim = C // num_heads
    scale = head_dim ** (-0.5)
    compute_dtype = jnp.bfloat16
    f32 = jnp.float32

    pad_b = (wh - H % wh) % wh
    pad_r = (ww - W % ww) % ww
    Hp, Wp = H + pad_b, W + pad_r
    n_wh, n_ww = Hp // wh, Wp // ww
    n_w = wh * ww
    c_pad = max(128, ((C + 127) // 128) * 128)   # lane-dense channel width

    # ---- input prep: one fused pad+cast, then FREE reshapes.  The window
    # partition itself is done by the BlockSpec index_map (no HBM transposes).
    xi = x.reshape(B_, H, W, C)
    xi = jnp.pad(xi, ((0, 0), (0, pad_b), (0, pad_r), (0, c_pad - C)))
    x6 = xi.astype(compute_dtype).reshape(B_, n_wh, wh, n_ww, ww, c_pad)

    # ---- weight prep: pre-transpose so the kernel does x @ W + b; fold the
    # softmax scale into the Q third (in f32, before the bf16 cast); zero-pad
    # each of Q/K/V to Cp columns and the input dim to Cp rows.  Biases stay f32.
    wqkv = params["wqkv"].astype(f32)                        # (3C, C)
    bqkv = params["bqkv"].astype(f32)                        # (3C,)
    parts_w, parts_b = [], []
    for idx, s in enumerate((scale, 1.0, 1.0)):              # Q, K, V
        w = wqkv[idx * C:(idx + 1) * C] * s                  # (C, C)
        b = bqkv[idx * C:(idx + 1) * C] * s                  # (C,)
        parts_w.append(jnp.pad(w.T, ((0, c_pad - C), (0, c_pad - C))))
        parts_b.append(jnp.pad(b, (0, c_pad - C)))
    wqkv_p = jnp.concatenate(parts_w, axis=1).astype(compute_dtype)   # (Cp, 3Cp)
    bqkv_p = jnp.concatenate(parts_b).reshape(1, 3 * c_pad)           # (1, 3Cp)
    wproj_p = jnp.pad(params["wproj"].astype(f32).T,
                      ((0, c_pad - C), (0, c_pad - C))).astype(compute_dtype)
    bproj_p = jnp.pad(params["bproj"].astype(f32), (0, c_pad - C)).reshape(1, c_pad)

    # Windows per grid step: largest divisor of n_wh whose row count does not
    # exceed target_rows (big m amortizes the ~0.35us per-step overhead).
    tw = max(1, min(n_wh, max(1, target_rows // n_w)))
    while n_wh % tw:
        tw -= 1
    # TODO(synk): for small images (n_wh * n_w << target_rows) the batch dim is
    # adjacent to n_wh in x6 and could be folded into the tile as well.

    grid = (B_, n_wh // tw, n_ww)
    kernel = partial(_window_attn_kernel, num_heads=num_heads, head_dim=head_dim,
                     c_real=C, c_pad=c_pad, n_w=n_w, tw=tw)

    block6 = (None, tw, wh, None, ww, c_pad)                 # squeeze B / nWw dims
    idx6 = lambda b, i, j: (b, i, 0, j, 0, 0)

    out6 = pl.pallas_call(
        kernel,
        out_shape=jax.ShapeDtypeStruct((B_, n_wh, wh, n_ww, ww, c_pad), x.dtype),
        grid_spec=pltpu.PrefetchScalarGridSpec(
            num_scalar_prefetch=0,
            grid=grid,
            in_specs=[
                pl.BlockSpec(block6, idx6),                             # x windows
                # TODO(synk): on v6e/v7x with large C, mark the four constant
                # weight/bias specs pipeline_mode=pl.Buffered(1) (their index_map
                # is constant, so 2-deep buffering only doubles their VMEM).
                pl.BlockSpec((c_pad, 3 * c_pad), lambda b, i, j: (0, 0)),  # Wqkv
                pl.BlockSpec((1, 3 * c_pad), lambda b, i, j: (0, 0)),      # bqkv
                pl.BlockSpec((c_pad, c_pad), lambda b, i, j: (0, 0)),      # Wproj
                pl.BlockSpec((1, c_pad), lambda b, i, j: (0, 0)),          # bproj
            ],
            out_specs=pl.BlockSpec(block6, idx6),
            scratch_shapes=[
                pltpu.VMEM((tw, n_w, 3 * c_pad), compute_dtype),  # staged bf16 QKV
                pltpu.VMEM((tw, n_w, c_pad), jnp.float32),        # head outputs
            ],
        ),
        compiler_params=pltpu.CompilerParams(
            dimension_semantics=("parallel", "parallel", "parallel"),
            vmem_limit_bytes=64 * 1024 * 1024),
    )(x6, wqkv_p, bqkv_p, wproj_p, bproj_p)

    # ---- free reshape back to the image; drop spatial + channel padding ----
    out = out6.reshape(B_, Hp, Wp, c_pad)[:, :H, :W, :C]
    # TODO(synk): emit bf16 output when the surrounding network runs bf16
    # activations (cuts writeback bytes); kept x.dtype to match the PyTorch module.
    return out.reshape(B_, H * W, C)


def _reference(x, H, W, params, *, window_size, num_heads):
    """Plain-JAX f32 reference mirroring the PyTorch forward, for a sanity check."""
    B_, N, C = x.shape
    wh, ww = window_size
    hd = C // num_heads
    scale = hd ** (-0.5)

    xi = x.reshape(B_, H, W, C)
    pad_b = (wh - H % wh) % wh
    pad_r = (ww - W % ww) % ww
    xi = jnp.pad(xi, ((0, 0), (0, pad_b), (0, pad_r), (0, 0)))
    Hp, Wp = H + pad_b, W + pad_r
    xw = xi.reshape(B_, Hp // wh, wh, Wp // ww, ww, C)
    xw = xw.transpose(0, 1, 3, 2, 4, 5).reshape(-1, wh * ww, C)
    B_w, N_w, _ = xw.shape

    qkv = xw @ params["wqkv"].T + params["bqkv"]
    qkv = qkv.reshape(B_w, N_w, 3, num_heads, hd).transpose(2, 0, 3, 1, 4)
    q, k, v = qkv[0], qkv[1], qkv[2]
    attn = (q * scale) @ jnp.swapaxes(k, -2, -1)
    attn = jax.nn.softmax(attn, axis=-1)
    o = (attn @ v).transpose(0, 2, 1, 3).reshape(B_w, N_w, C)
    o = o @ params["wproj"].T + params["bproj"]

    o = o.reshape(B_, Hp // wh, Wp // ww, wh, ww, C)
    o = o.transpose(0, 1, 3, 2, 4, 5).reshape(B_, Hp, Wp, C)
    o = o[:, :H, :W, :]
    return o.reshape(B_, H * W, C)


if __name__ == "__main__":
    # Small, deterministic configuration consistent with the module's forward.
    dim = 32
    num_heads = 4
    window_size = (8, 8)
    B_, H, W = 2, 16, 16
    N = H * W

    key = jax.random.PRNGKey(0)
    kx, kw1, kb1, kw2, kb2 = jax.random.split(key, 5)

    x = jax.random.normal(kx, (B_, N, dim), dtype=jnp.float32)
    params = {
        "wqkv": 0.02 * jax.random.normal(kw1, (3 * dim, dim), dtype=jnp.float32),
        "bqkv": 0.02 * jax.random.normal(kb1, (3 * dim,), dtype=jnp.float32),
        "wproj": 0.02 * jax.random.normal(kw2, (dim, dim), dtype=jnp.float32),
        "bproj": 0.02 * jax.random.normal(kb2, (dim,), dtype=jnp.float32),
    }
    # TODO(synk): COMPAT rel_pos_h / rel_pos_w params are initialized to zeros in
    # the PyTorch module but never used in forward (rel_pos_spatial=False), so
    # they are omitted here.

    out = window_attention(x, H, W, params,
                           window_size=window_size, num_heads=num_heads)
    out = jax.block_until_ready(out)

    ref = _reference(x, H, W, params,
                     window_size=window_size, num_heads=num_heads)
    assert out.shape == (B_, N, dim)
    # bf16 MXU operands + approx reciprocal => looser tolerance than pure-f32.
    assert jnp.allclose(out, ref, atol=2e-2, rtol=2e-2), "mismatch vs reference"

    print("KERNEL_OK")
</pallas_src>

<mosaic_0001>
module attributes {stable_mosaic.version = 11 : i64} {
  func.func @_window_attn_kernel(%arg0: i32, %arg1: i32, %arg2: i32, %arg3: memref<1x2x8x1x8x128xbf16, #tpu.memory_space<vmem>>, %arg4: memref<128x384xbf16, #tpu.memory_space<vmem>>, %arg5: memref<1x384xf32, #tpu.memory_space<vmem>>, %arg6: memref<128x128xbf16, #tpu.memory_space<vmem>>, %arg7: memref<1x128xf32, #tpu.memory_space<vmem>>, %arg8: memref<1x2x8x1x8x128xf32, #tpu.memory_space<vmem>>, %arg9: memref<2x64x384xbf16, #tpu.memory_space<vmem>>, %arg10: memref<2x64x128xf32, #tpu.memory_space<vmem>>) attributes {dimension_semantics = [#tpu.dimension_semantics<parallel>, #tpu.dimension_semantics<parallel>, #tpu.dimension_semantics<parallel>], iteration_bounds = array<i64: 2, 1, 2>, scalar_prefetch = 0 : i64, scratch_operands = 2 : i64, tpu.core_type = #tpu.core_type<tc>, window_params = [{transform_indices = @transform_0, window_bounds = array<i64: 1, 2, 8, 1, 8, 128>}, {pipeline_mode = #tpu.pipeline_mode<synchronous>, transform_indices = @transform_1, window_bounds = array<i64: 128, 384>}, {pipeline_mode = #tpu.pipeline_mode<synchronous>, transform_indices = @transform_2, window_bounds = array<i64: 1, 384>}, {pipeline_mode = #tpu.pipeline_mode<synchronous>, transform_indices = @transform_3, window_bounds = array<i64: 128, 128>}, {pipeline_mode = #tpu.pipeline_mode<synchronous>, transform_indices = @transform_4, window_bounds = array<i64: 1, 128>}, {transform_indices = @transform_5, window_bounds = array<i64: 1, 2, 8, 1, 8, 128>}]} {
    %c0 = arith.constant 0 : index
    %c0_0 = arith.constant 0 : index
    %c0_1 = arith.constant 0 : index
    %c0_2 = arith.constant 0 : index
    %c0_3 = arith.constant 0 : index
    %c0_4 = arith.constant 0 : index
    %0 = vector.load %arg3[%c0, %c0_0, %c0_1, %c0_2, %c0_3, %c0_4] : memref<1x2x8x1x8x128xbf16, #tpu.memory_space<vmem>>, vector<1x2x8x1x8x128xbf16>
    %1 = vector.shape_cast %0 : vector<1x2x8x1x8x128xbf16> to vector<2x8x8x128xbf16>
    %2 = vector.shape_cast %1 : vector<2x8x8x128xbf16> to vector<128x128xbf16>
    %c0_5 = arith.constant 0 : index
    %c0_6 = arith.constant 0 : index
    %3 = vector.load %arg4[%c0_5, %c0_6] : memref<128x384xbf16, #tpu.memory_space<vmem>>, vector<128x384xbf16>
    %cst = arith.constant dense<0.000000e+00> : vector<128x384xf32>
    %4 = tpu.matmul %2, %3, %cst {dimension_numbers = #tpu.dot_dimension_numbers<[1], [0], [0], [1], [0, 0, 1, 1], [], []>} : vector<128x128xbf16>, vector<128x384xbf16>, vector<128x384xf32> -> vector<128x384xf32>
    %c0_7 = arith.constant 0 : index
    %c0_8 = arith.constant 0 : index
    %5 = vector.load %arg5[%c0_7, %c0_8] : memref<1x384xf32, #tpu.memory_space<vmem>>, vector<1x384xf32>
    %6 = vector.shape_cast %5 : vector<1x384xf32> to vector<384xf32>
    %7 = vector.shape_cast %6 : vector<384xf32> to vector<1x384xf32>
    %8 = vector.broadcast %7 : vector<1x384xf32> to vector<128x384xf32>
    %9 = arith.addf %4, %8 : vector<128x384xf32>
    %10 = vector.shape_cast %9 : vector<128x384xf32> to vector<2x64x384xf32>
    %11 = arith.truncf %10 : vector<2x64x384xf32> to vector<2x64x384xbf16>
    %c0_9 = arith.constant 0 : index
    %c0_10 = arith.constant 0 : index
    %c0_11 = arith.constant 0 : index
    %12 = vector.load %arg9[%c0_9, %c0_10, %c0_11] : memref<2x64x384xbf16, #tpu.memory_space<vmem>>, vector<2x64x384xbf16>
    tpu.vector_store %arg9[%c0_9, %c0_10, %c0_11], %11 {strides = array<i32>} : memref<2x64x384xbf16, #tpu.memory_space<vmem>>, vector<2x64x384xbf16>,
    %cst_12 = arith.constant 0.000000e+00 : f32
    %13 = vector.broadcast %cst_12 : f32 to vector<2x64x96xf32>
    %c0_13 = arith.constant 0 : index
    %c0_14 = arith.constant 0 : index
    %c32 = arith.constant 32 : index
    %14 = vector.load %arg10[%c0_13, %c0_14, %c32] : memref<2x64x128xf32, #tpu.memory_space<vmem>>, vector<2x64x96xf32>
    tpu.vector_store %arg10[%c0_13, %c0_14, %c32], %13 {strides = array<i32>} : memref<2x64x128xf32, #tpu.memory_space<vmem>>, vector<2x64x96xf32>,
    %c0_15 = arith.constant 0 : index
    %c0_16 = arith.constant 0 : index
    %c0_17 = arith.constant 0 : index
    %15 = vector.load %arg9[%c0_15, %c0_16, %c0_17] : memref<2x64x384xbf16, #tpu.memory_space<vmem>>, vector<2x64x8xbf16>
    %c0_18 = arith.constant 0 : index
    %c0_19 = arith.constant 0 : index
    %c128 = arith.constant 128 : index
    %16 = vector.load %arg9[%c0_18, %c0_19, %c128] : memref<2x64x384xbf16, #tpu.memory_space<vmem>>, vector<2x64x8xbf16>
    %c0_20 = arith.constant 0 : index
    %c0_21 = arith.constant 0 : index
    %c256 = arith.constant 256 : index
    %17 = vector.load %arg9[%c0_20, %c0_21, %c256] : memref<2x64x384xbf16, #tpu.memory_space<vmem>>, vector<2x64x8xbf16>
    "tpu.trace_start"() <{level = 10 : i32, message = "bqd,bkd->bqk"}> : () -> ()
    %cst_22 = arith.constant dense<0.000000e+00> : vector<2x64x64xf32>
    %18 = tpu.matmul %15, %16, %cst_22 {dimension_numbers = #tpu.dot_dimension_numbers<[2], [2], [1], [1], [0, 0, 0, 1, 1, 1], [0], [0]>} : vector<2x64x8xbf16>, vector<2x64x8xbf16>, vector<2x64x64xf32> -> vector<2x64x64xf32>
    "tpu.trace_stop"() : () -> ()
    %cst_23 = arith.constant dense<0xFF800000> : vector<2x64xf32>
    %19 = vector.multi_reduction <maximumf>, %18, %cst_23 [2] : vector<2x64x64xf32> to vector<2x64xf32>
    %20 = vector.shape_cast %19 : vector<2x64xf32> to vector<2x64x1xf32>
    %21 = vector.broadcast %20 : vector<2x64x1xf32> to vector<2x64x64xf32>
    %22 = arith.subf %18, %21 : vector<2x64x64xf32>
    %23 = math.exp %22 : vector<2x64x64xf32>
    %cst_24 = arith.constant dense<0.000000e+00> : vector<2x64xf32>
    %24 = vector.multi_reduction <add>, %23, %cst_24 [2] : vector<2x64x64xf32> to vector<2x64xf32>
    %25 = vector.shape_cast %24 : vector<2x64xf32> to vector<2x64x1xf32>
    %26 = arith.truncf %23 : vector<2x64x64xf32> to vector<2x64x64xbf16>
    "tpu.trace_start"() <{level = 10 : i32, message = "bqk,bkd->bqd"}> : () -> ()
    %cst_25 = arith.constant dense<0.000000e+00> : vector<2x64x8xf32>
    %27 = tpu.matmul %26, %17, %cst_25 {dimension_numbers = #tpu.dot_dimension_numbers<[2], [1], [1], [2], [0, 0, 0, 1, 1, 2], [0], [0]>} : vector<2x64x64xbf16>, vector<2x64x8xbf16>, vector<2x64x8xf32> -> vector<2x64x8xf32>
    "tpu.trace_stop"() : () -> ()
    %28 = tpu.reciprocal %25 {approx = true} : vector<2x64x1xf32> -> vector<2x64x1xf32>
    %29 = vector.broadcast %28 : vector<2x64x1xf32> to vector<2x64x8xf32>
    %30 = arith.mulf %27, %29 : vector<2x64x8xf32>
    %c0_26 = arith.constant 0 : index
    %c0_27 = arith.constant 0 : index
    %c0_28 = arith.constant 0 : index
    %31 = vector.load %arg10[%c0_26, %c0_27, %c0_28] : memref<2x64x128xf32, #tpu.memory_space<vmem>>, vector<2x64x8xf32>
    tpu.vector_store %arg10[%c0_26, %c0_27, %c0_28], %30 {strides = array<i32>} : memref<2x64x128xf32, #tpu.memory_space<vmem>>, vector<2x64x8xf32>,
    %c0_29 = arith.constant 0 : index
    %c0_30 = arith.constant 0 : index
    %c8 = arith.constant 8 : index
    %32 = vector.load %arg9[%c0_29, %c0_30, %c8] : memref<2x64x384xbf16, #tpu.memory_space<vmem>>, vector<2x64x8xbf16>
    %c0_31 = arith.constant 0 : index
    %c0_32 = arith.constant 0 : index
    %c136 = arith.constant 136 : index
    %33 = vector.load %arg9[%c0_31, %c0_32, %c136] : memref<2x64x384xbf16, #tpu.memory_space<vmem>>, vector<2x64x8xbf16>
    %c0_33 = arith.constant 0 : index
    %c0_34 = arith.constant 0 : index
    %c264 = arith.constant 264 : index
    %34 = vector.load %arg9[%c0_33, %c0_34, %c264] : memref<2x64x384xbf16, #tpu.memory_space<vmem>>, vector<2x64x8xbf16>
    "tpu.trace_start"() <{level = 10 : i32, message = "bqd,bkd->bqk"}> : () -> ()
    %cst_35 = arith.constant dense<0.000000e+00> : vector<2x64x64xf32>
    %35 = tpu.matmul %32, %33, %cst_35 {dimension_numbers = #tpu.dot_dimension_numbers<[2], [2], [1], [1], [0, 0, 0, 1, 1, 1], [0], [0]>} : vector<2x64x8xbf16>, vector<2x64x8xbf16>, vector<2x64x64xf32> -> vector<2x64x64xf32>
    "tpu.trace_stop"() : () -> ()
    %cst_36 = arith.constant dense<0xFF800000> : vector<2x64xf32>
    %36 = vector.multi_reduction <maximumf>, %35, %cst_36 [2] : vector<2x64x64xf32> to vector<2x64xf32>
    %37 = vector.shape_cast %36 : vector<2x64xf32> to vector<2x64x1xf32>
    %38 = vector.broadcast %37 : vector<2x64x1xf32> to vector<2x64x64xf32>
    %39 = arith.subf %35, %38 : vector<2x64x64xf32>
    %40 = math.exp %39 : vector<2x64x64xf32>
    %cst_37 = arith.constant dense<0.000000e+00> : vector<2x64xf32>
    %41 = vector.multi_reduction <add>, %40, %cst_37 [2] : vector<2x64x64xf32> to vector<2x64xf32>
    %42 = vector.shape_cast %41 : vector<2x64xf32> to vector<2x64x1xf32>
    %43 = arith.truncf %40 : vector<2x64x64xf32> to vector<2x64x64xbf16>
    "tpu.trace_start"() <{level = 10 : i32, message = "bqk,bkd->bqd"}> : () -> ()
    %cst_38 = arith.constant dense<0.000000e+00> : vector<2x64x8xf32>
    %44 = tpu.matmul %43, %34, %cst_38 {dimension_numbers = #tpu.dot_dimension_numbers<[2], [1], [1], [2], [0, 0, 0, 1, 1, 2], [0], [0]>} : vector<2x64x64xbf16>, vector<2x64x8xbf16>, vector<2x64x8xf32> -> vector<2x64x8xf32>
    "tpu.trace_stop"() : () -> ()
    %45 = tpu.reciprocal %42 {approx = true} : vector<2x64x1xf32> -> vector<2x64x1xf32>
    %46 = vector.broadcast %45 : vector<2x64x1xf32> to vector<2x64x8xf32>
    %47 = arith.mulf %44, %46 : vector<2x64x8xf32>
    %c0_39 = arith.constant 0 : index
    %c0_40 = arith.constant 0 : index
    %c8_41 = arith.constant 8 : index
    %48 = vector.load %arg10[%c0_39, %c0_40, %c8_41] : memref<2x64x128xf32, #tpu.memory_space<vmem>>, vector<2x64x8xf32>
    tpu.vector_store %arg10[%c0_39, %c0_40, %c8_41], %47 {strides = array<i32>} : memref<2x64x128xf32, #tpu.memory_space<vmem>>, vector<2x64x8xf32>,
    %c0_42 = arith.constant 0 : index
    %c0_43 = arith.constant 0 : index
    %c16 = arith.constant 16 : index
    %49 = vector.load %arg9[%c0_42, %c0_43, %c16] : memref<2x64x384xbf16, #tpu.memory_space<vmem>>, vector<2x64x8xbf16>
    %c0_44 = arith.constant 0 : index
    %c0_45 = arith.constant 0 : index
    %c144 = arith.constant 144 : index
    %50 = vector.load %arg9[%c0_44, %c0_45, %c144] : memref<2x64x384xbf16, #tpu.memory_space<vmem>>, vector<2x64x8xbf16>
    %c0_46 = arith.constant 0 : index
    %c0_47 = arith.constant 0 : index
    %c272 = arith.constant 272 : index
    %51 = vector.load %arg9[%c0_46, %c0_47, %c272] : memref<2x64x384xbf16, #tpu.memory_space<vmem>>, vector<2x64x8xbf16>
    "tpu.trace_start"() <{level = 10 : i32, message = "bqd,bkd->bqk"}> : () -> ()
    %cst_48 = arith.constant dense<0.000000e+00> : vector<2x64x64xf32>
    %52 = tpu.matmul %49, %50, %cst_48 {dimension_numbers = #tpu.dot_dimension_numbers<[2], [2], [1], [1], [0, 0, 0, 1, 1, 1], [0], [0]>} : vector<2x64x8xbf16>, vector<2x64x8xbf16>, vector<2x64x64xf32> -> vector<2x64x64xf32>
    "tpu.trace_stop"() : () -> ()
    %cst_49 = arith.constant dense<0xFF800000> : vector<2x64xf32>
    %53 = vector.multi_reduction <maximumf>, %52, %cst_49 [2] : vector<2x64x64xf32> to vector<2x64xf32>
    %54 = vector.shape_cast %53 : vector<2x64xf32> to vector<2x64x1xf32>
    %55 = vector.broadcast %54 : vector<2x64x1xf32> to vector<2x64x64xf32>
    %56 = arith.subf %52, %55 : vector<2x64x64xf32>
    %57 = math.exp %56 : vector<2x64x64xf32>
    %cst_50 = arith.constant dense<0.000000e+00> : vector<2x64xf32>
    %58 = vector.multi_reduction <add>, %57, %cst_50 [2] : vector<2x64x64xf32> to vector<2x64xf32>
    %59 = vector.shape_cast %58 : vector<2x64xf32> to vector<2x64x1xf32>
    %60 = arith.truncf %57 : vector<2x64x64xf32> to vector<2x64x64xbf16>
    "tpu.trace_start"() <{level = 10 : i32, message = "bqk,bkd->bqd"}> : () -> ()
    %cst_51 = arith.constant dense<0.000000e+00> : vector<2x64x8xf32>
    %61 = tpu.matmul %60, %51, %cst_51 {dimension_numbers = #tpu.dot_dimension_numbers<[2], [1], [1], [2], [0, 0, 0, 1, 1, 2], [0], [0]>} : vector<2x64x64xbf16>, vector<2x64x8xbf16>, vector<2x64x8xf32> -> vector<2x64x8xf32>
    "tpu.trace_stop"() : () -> ()
    %62 = tpu.reciprocal %59 {approx = true} : vector<2x64x1xf32> -> vector<2x64x1xf32>
    %63 = vector.broadcast %62 : vector<2x64x1xf32> to vector<2x64x8xf32>
    %64 = arith.mulf %61, %63 : vector<2x64x8xf32>
    %c0_52 = arith.constant 0 : index
    %c0_53 = arith.constant 0 : index
    %c16_54 = arith.constant 16 : index
    %65 = vector.load %arg10[%c0_52, %c0_53, %c16_54] : memref<2x64x128xf32, #tpu.memory_space<vmem>>, vector<2x64x8xf32>
    tpu.vector_store %arg10[%c0_52, %c0_53, %c16_54], %64 {strides = array<i32>} : memref<2x64x128xf32, #tpu.memory_space<vmem>>, vector<2x64x8xf32>,
    %c0_55 = arith.constant 0 : index
    %c0_56 = arith.constant 0 : index
    %c24 = arith.constant 24 : index
    %66 = vector.load %arg9[%c0_55, %c0_56, %c24] : memref<2x64x384xbf16, #tpu.memory_space<vmem>>, vector<2x64x8xbf16>
    %c0_57 = arith.constant 0 : index
    %c0_58 = arith.constant 0 : index
    %c152 = arith.constant 152 : index
    %67 = vector.load %arg9[%c0_57, %c0_58, %c152] : memref<2x64x384xbf16, #tpu.memory_space<vmem>>, vector<2x64x8xbf16>
    %c0_59 = arith.constant 0 : index
    %c0_60 = arith.constant 0 : index
    %c280 = arith.constant 280 : index
    %68 = vector.load %arg9[%c0_59, %c0_60, %c280] : memref<2x64x384xbf16, #tpu.memory_space<vmem>>, vector<2x64x8xbf16>
    "tpu.trace_start"() <{level = 10 : i32, message = "bqd,bkd->bqk"}> : () -> ()
    %cst_61 = arith.constant dense<0.000000e+00> : vector<2x64x64xf32>
    %69 = tpu.matmul %66, %67, %cst_61 {dimension_numbers = #tpu.dot_dimension_numbers<[2], [2], [1], [1], [0, 0, 0, 1, 1, 1], [0], [0]>} : vector<2x64x8xbf16>, vector<2x64x8xbf16>, vector<2x64x64xf32> -> vector<2x64x64xf32>
    "tpu.trace_stop"() : () -> ()
    %cst_62 = arith.constant dense<0xFF800000> : vector<2x64xf32>
    %70 = vector.multi_reduction <maximumf>, %69, %cst_62 [2] : vector<2x64x64xf32> to vector<2x64xf32>
    %71 = vector.shape_cast %70 : vector<2x64xf32> to vector<2x64x1xf32>
    %72 = vector.broadcast %71 : vector<2x64x1xf32> to vector<2x64x64xf32>
    %73 = arith.subf %69, %72 : vector<2x64x64xf32>
    %74 = math.exp %73 : vector<2x64x64xf32>
    %cst_63 = arith.constant dense<0.000000e+00> : vector<2x64xf32>
    %75 = vector.multi_reduction <add>, %74, %cst_63 [2] : vector<2x64x64xf32> to vector<2x64xf32>
    %76 = vector.shape_cast %75 : vector<2x64xf32> to vector<2x64x1xf32>
    %77 = arith.truncf %74 : vector<2x64x64xf32> to vector<2x64x64xbf16>
    "tpu.trace_start"() <{level = 10 : i32, message = "bqk,bkd->bqd"}> : () -> ()
    %cst_64 = arith.constant dense<0.000000e+00> : vector<2x64x8xf32>
    %78 = tpu.matmul %77, %68, %cst_64 {dimension_numbers = #tpu.dot_dimension_numbers<[2], [1], [1], [2], [0, 0, 0, 1, 1, 2], [0], [0]>} : vector<2x64x64xbf16>, vector<2x64x8xbf16>, vector<2x64x8xf32> -> vector<2x64x8xf32>
    "tpu.trace_stop"() : () -> ()
    %79 = tpu.reciprocal %76 {approx = true} : vector<2x64x1xf32> -> vector<2x64x1xf32>
    %80 = vector.broadcast %79 : vector<2x64x1xf32> to vector<2x64x8xf32>
    %81 = arith.mulf %78, %80 : vector<2x64x8xf32>
    %c0_65 = arith.constant 0 : index
    %c0_66 = arith.constant 0 : index
    %c24_67 = arith.constant 24 : index
    %82 = vector.load %arg10[%c0_65, %c0_66, %c24_67] : memref<2x64x128xf32, #tpu.memory_space<vmem>>, vector<2x64x8xf32>
    tpu.vector_store %arg10[%c0_65, %c0_66, %c24_67], %81 {strides = array<i32>} : memref<2x64x128xf32, #tpu.memory_space<vmem>>, vector<2x64x8xf32>,
    %c0_68 = arith.constant 0 : index
    %c0_69 = arith.constant 0 : index
    %c0_70 = arith.constant 0 : index
    %83 = vector.load %arg10[%c0_68, %c0_69, %c0_70] : memref<2x64x128xf32, #tpu.memory_space<vmem>>, vector<2x64x128xf32>
    %84 = vector.shape_cast %83 : vector<2x64x128xf32> to vector<128x128xf32>
    %85 = arith.truncf %84 : vector<128x128xf32> to vector<128x128xbf16>
    %c0_71 = arith.constant 0 : index
    %c0_72 = arith.constant 0 : index
    %86 = vector.load %arg6[%c0_71, %c0_72] : memref<128x128xbf16, #tpu.memory_space<vmem>>, vector<128x128xbf16>
    %cst_73 = arith.constant dense<0.000000e+00> : vector<128x128xf32>
    %87 = tpu.matmul %85, %86, %cst_73 {dimension_numbers = #tpu.dot_dimension_numbers<[1], [0], [0], [1], [0, 0, 1, 1], [], []>} : vector<128x128xbf16>, vector<128x128xbf16>, vector<128x128xf32> -> vector<128x128xf32>
    %c0_74 = arith.constant 0 : index
    %c0_75 = arith.constant 0 : index
    %88 = vector.load %arg7[%c0_74, %c0_75] : memref<1x128xf32, #tpu.memory_space<vmem>>, vector<1x128xf32>
    %89 = vector.shape_cast %88 : vector<1x128xf32> to vector<128xf32>
    %90 = vector.shape_cast %89 : vector<128xf32> to vector<1x128xf32>
    %91 = vector.broadcast %90 : vector<1x128xf32> to vector<128x128xf32>
    %92 = arith.addf %87, %91 : vector<128x128xf32>
    %93 = vector.shape_cast %92 : vector<128x128xf32> to vector<2x8x8x128xf32>
    %c0_76 = arith.constant 0 : index
    %c0_77 = arith.constant 0 : index
    %c0_78 = arith.constant 0 : index
    %c0_79 = arith.constant 0 : index
    %c0_80 = arith.constant 0 : index
    %c0_81 = arith.constant 0 : index
    %94 = vector.load %arg8[%c0_76, %c0_77, %c0_78, %c0_79, %c0_80, %c0_81] : memref<1x2x8x1x8x128xf32, #tpu.memory_space<vmem>>, vector<1x2x8x1x8x128xf32>
    %95 = vector.shape_cast %94 : vector<1x2x8x1x8x128xf32> to vector<2x8x8x128xf32>
    %96 = vector.shape_cast %93 : vector<2x8x8x128xf32> to vector<1x2x8x1x8x128xf32>
    tpu.vector_store %arg8[%c0_76, %c0_77, %c0_78, %c0_79, %c0_80, %c0_81], %96 {strides = array<i32>} : memref<1x2x8x1x8x128xf32, #tpu.memory_space<vmem>>, vector<1x2x8x1x8x128xf32>,
    return
  }
  func.func @transform_0(%arg0: i32, %arg1: i32, %arg2: i32) -> (i32, i32, i32, i32, i32, i32) {
    %c0_i32 = arith.constant 0 : i32
    %c0_i32_0 = arith.constant 0 : i32
    %c0_i32_1 = arith.constant 0 : i32
    %c0_i32_2 = arith.constant 0 : i32
    return %arg0, %arg1, %c0_i32, %arg2, %c0_i32_0, %c0_i32_1 : i32, i32, i32, i32, i32, i32
  }
  func.func @transform_1(%arg0: i32, %arg1: i32, %arg2: i32) -> (i32, i32) {
    %c0_i32 = arith.constant 0 : i32
    %c0_i32_0 = arith.constant 0 : i32
    %c0_i32_1 = arith.constant 0 : i32
    return %c0_i32, %c0_i32_0 : i32, i32
  }
  func.func @transform_2(%arg0: i32, %arg1: i32, %arg2: i32) -> (i32, i32) {
    %c0_i32 = arith.constant 0 : i32
    %c0_i32_0 = arith.constant 0 : i32
    %c0_i32_1 = arith.constant 0 : i32
    return %c0_i32, %c0_i32_0 : i32, i32
  }
  func.func @transform_3(%arg0: i32, %arg1: i32, %arg2: i32) -> (i32, i32) {
    %c0_i32 = arith.constant 0 : i32
    %c0_i32_0 = arith.constant 0 : i32
    %c0_i32_1 = arith.constant 0 : i32
    return %c0_i32, %c0_i32_0 : i32, i32
  }
  func.func @transform_4(%arg0: i32, %arg1: i32, %arg2: i32) -> (i32, i32) {
    %c0_i32 = arith.constant 0 : i32
    %c0_i32_0 = arith.constant 0 : i32
    %c0_i32_1 = arith.constant 0 : i32
    return %c0_i32, %c0_i32_0 : i32, i32
  }
  func.func @transform_5(%arg0: i32, %arg1: i32, %arg2: i32) -> (i32, i32, i32, i32, i32, i32) {
    %c0_i32 = arith.constant 0 : i32
    %c0_i32_0 = arith.constant 0 : i32
    %c0_i32_1 = arith.constant 0 : i32
    %c0_i32_2 = arith.constant 0 : i32
    return %arg0, %arg1, %c0_i32, %arg2, %c0_i32_0, %c0_i32_1 : i32, i32, i32, i32, i32, i32
  }
}

</mosaic_0001>

<bundles_post_ra>
// kernel: tpu_custom_call.1
= control target key start
LH: loop header
LB: loop body
LE: loop exit
PB: predicated region body
PF: predicated region fallthrough
CT: control target
= control target key end

     0   :  { %s7074_s0 = inlined_call_operand.hbm [shape: bf16[2,2,8,2,8,128], index: 0, kind: input, shape index: {}]   ;;  %s7075_s1 = inlined_call_operand.hbm [shape: bf16[128,384], index: 1, kind: input, shape index: {}]   ;;  %s7076_s2 = inlined_call_operand.hbm [shape: f32[1,384], index: 2, kind: input, shape index: {}]   ;;  %s7077_s3 = inlined_call_operand.hbm [shape: bf16[128,128], index: 3, kind: input, shape index: {}]   ;;  %s7078_s4 = inlined_call_operand.hbm [shape: f32[1,128], index: 4, kind: input, shape index: {}]   ;;  %s7079_s5 = inlined_call_operand.hbm [shape: f32[2,2,8,2,8,128], index: 5, kind: output, shape index: {}]  }
   0x1   :  { %7108 = sst [smem:[#allocation76_spill]] %s7075_s1 }
   0x2   :  { %7109 = sst [smem:[#allocation77_spill]] %s7076_s2 }
   0x3   :  { %7110 = sst [smem:[#allocation78_spill]] %s7077_s3 }
   0x4   :  { %7111 = sst [smem:[#allocation79_spill]] %s7079_s5 }
   0x5   :  { %10 = vsyncpa [#allocation5], 0 }
   0x6   :  { %12 = vsyncpa [#allocation5 + $0x1], 0 }
   0x7   :  { %13 = vsyncpa [#allocation8], 0 }
   0x8   :  { %14 = vsyncpa [#allocation11], 0 }
   0x9   :  { %15 = vsyncpa [#allocation6], 0 }
   0xa   :  { %17 = vsyncpa [#allocation6 + $0x1], 0  ;;  %s5262_s18 = smov 0   ;;  %s5264_s19 = smov 0  }
   0xb   :  { %s5266_s20 = smov 0   ;;  %s5268_s21 = smov 0  }
   0xc   :  { %s5270_s22 = smov 0   ;;  %s5272_s23 = smov 0  }
   0xd   :  { %s5274_s24 = smov 0   ;;  %s5276_s25 = smov 0  }
   0xe LB: > { %7112 = sst [smem:[#allocation18_spill]] %s5181_s18  ;;  %s3867_s26 = sadd.s32 4294967295, %s5209_s25   ;;  %s5209_s25 = sphi %s5276_s25, %s23_s25   ;;  %s5205_s24 = sphi %s5274_s24, %s7256_s24   ;;  %s5201_s23 = sphi %s5272_s23, %s7255_s23   ;;  %s5197_s22 = sphi %s5270_s22, %s7254_s22   ;;  %s5193_s21 = sphi %s5268_s21, %s7253_s21   ;;  %s5189_s20 = sphi %s5266_s20, %s7252_s20   ;;  %s5185_s19 = sphi %s5264_s19, %s7251_s19   ;;  %s5181_s18 = sphi %s5262_s18, %s7250_s18  }
   0xf   : > { %s3868_s27 = sadd.s32 4294967294, %s5209_s25   ;;  %p66_p0 = scmp.ne.s32.totalorder %s5185_s19, %s5181_s18 }
  0x10   : > { %p5306_p1 = scmp.eq.s32.totalorder %s3867_s26, 0  ;;  %p5310_p2 = scmp.eq.s32.totalorder %s3867_s26, 3 }
  0x11   : > { %p184_p3 = scmp.eq.s32.totalorder %s3868_s27, 3  ;;  %p3869_p5 = scmp.ge.s32.totalorder %s5209_s25, 1 }
  0x12   : > { %s7113_s28 = scalar_select %p5306_p1, 1, 0 }
  0x13   : > { %s7114_s29 = scalar_select %p5310_p2, 1, 0 }
  0x14   : > { %p5316_p4 = por %p5306_p1, %p66_p0  ;;  %p5321_p6 = por %p184_p3, %p66_p0 }
  0x15   : > { %p191_p7 = scmp.lt.s32.totalorder %s5209_s25, 5  ;;  %s5211_s8 = smov [#allocation7]  }
  0x16   : > { %s7115_s30 = scalar_select %p5316_p4, 1, 0 }
  0x17   : > { %s7116_s6 = scalar_select %p5321_p6, 1, 0 }
  0x18   : > { %p5326_p8 = pnand %p3869_p5, %p191_p7  ;;  %s203_s9 = sshll.u32 %s5211_s8, 4  ;;  %s204_s9 = int_to_ptr.vmem [resolvable:$true] %s203_s9 }
  0x19   : > { %7117 = sst [smem:[#allocation19_spill]] %s7116_s6  ;;  %s5212_s11 = smov [#allocation10]  }
  0x1a   : > { %s7118_s7 = scalar_select %p5326_p8, 1, 0 }
  0x1b   : > { %p4543_p9 = pneg %p5326_p8  ;;  %s227_s12 = sshll.u32 %s5212_s11, 4  ;;  %s5338_s12 = int_to_ptr.vmem [resolvable:$true] %s227_s12 }
  0x1c   : > { %s7120_s1 = sld [smem:[#allocation76_spill]] }
  0x1d   : > { %p5334_p10 = pnand %p4543_p9, %p5306_p1 }
  0x1f   : > { %p5348_p12 = pneg %p5334_p10 }
  0x22   : > { %s4961_s15 = scalar_lea.hbm %s7120_s1, 3072 }
  0x23   : > { %p4962_p11 = scmp.ne.s32.totalorder %s7120_s1, %s4961_s15  ;;  %p4968_p3 = scmp.lt.u32.totalorder %s4961_s15, %s7120_s1 }
  0x25   : > { %p4964_p13 = pnand %p5348_p12, %p4962_p11 }
  0x27   : > { %p4965_p0 = pneg %p4964_p13 }
  0x29   : > { %p4970_p5 = pnand %p4968_p3, %p4965_p0 }
  0x2b   : > { %4973 = shalt.err (!%p4970_p5)
}
  0x2c   : > { %s4974_s11 = scalar_lea.vmem %s204_s9, 3072  ;;  %p4982_p1 = scmp.lt.s32.totalorder %s204_s9, %s204_s9 }
  0x2d   : > { %p4975_p7 = scmp.ne.s32.totalorder %s204_s9, %s4974_s11  ;;  %p4983_p4 = scmp.lt.s32.totalorder %s4974_s11, %s4974_s11 }
  0x2f   : > { %p4977_p9 = pnand %p4975_p7, %p5348_p12  ;;  %p4984_p8 = por %p4983_p4, %p4982_p1 }
  0x31   : > { %p4978_p6 = pneg %p4977_p9 }
  0x33   : > { %p4985_p2 = pnand %p4984_p8, %p4978_p6 }
  0x35   : > { %4988 = shalt.err (!%p4985_p2)
}
  0x36   : > { %s5213_s13 = smov 192   ;;  %s5214_s14 = smov 12  }
  0x37   : > { %4546 = dma.hbm_to_vmem [thread:$0]  (!%p5334_p10), %s7120_s1, 3072, %s204_s9, [#allocation8], %s5213_s13, %s5213_s13, %s5214_s14  }
  0x38   : > { %s7122_s3 = sld [smem:[#allocation78_spill]] }
  0x3e   : > { %s4989_s8 = scalar_lea.hbm %s7122_s3, 1024 }
  0x3f   : > { %p4990_p11 = scmp.ne.s32.totalorder %s7122_s3, %s4989_s8  ;;  %p4996_p4 = scmp.lt.u32.totalorder %s4989_s8, %s7122_s3 }
  0x41   : > { %p4992_p1 = pnand %p4990_p11, %p5348_p12 }
  0x43   : > { %p4993_p2 = pneg %p4992_p1 }
  0x45   : > { %p4998_p6 = pnand %p4996_p4, %p4993_p2 }
  0x47   : > { %5001 = shalt.err (!%p4998_p6)
}
  0x48   : > { %s5002_s9 = scalar_lea.vmem %s5338_s12, 1024  ;;  %p5010_p3 = scmp.lt.s32.totalorder %s5338_s12, %s5338_s12 }
  0x49   : > { %p5003_p8 = scmp.ne.s32.totalorder %s5338_s12, %s5002_s9  ;;  %p5011_p5 = scmp.lt.s32.totalorder %s5002_s9, %s5002_s9 }
  0x4b   : > { %p5005_p13 = pnand %p5003_p8, %p5348_p12  ;;  %p5012_p7 = por %p5011_p5, %p5010_p3 }
  0x4d   : > { %p5006_p0 = pneg %p5005_p13 }
  0x4f   : > { %p5013_p9 = pnand %p5012_p7, %p5006_p0 }
  0x51   : > { %5016 = shalt.err (!%p5013_p9)
}
  0x52   : > { %s7087_s18 = smov 64   ;;  %s7088_s5 = smov 4  }
  0x53   : > { %4552 = dma.hbm_to_vmem [thread:$0]  (!%p5334_p10), %s7122_s3, 1024, %s5338_s12, [#allocation11], %s7087_s18, %s7087_s18, %s7088_s5  }
  0x54   : > { %s5217_s14 = smov [#allocation9]   ;;  %s5218_s15 = smov [#allocation12]  }
  0x55   : > { %s217_s16 = sshll.u32 %s5217_s14, 4  ;;  %s241_s17 = sshll.u32 %s5218_s15, 4  ;;  %s218_s16 = int_to_ptr.vmem [resolvable:$true] %s217_s16  ;;  %s5390_s17 = int_to_ptr.vmem [resolvable:$true] %s241_s17 }
  0x56   : > { %s7123_s2 = sld [smem:[#allocation77_spill]] }
  0x5c   : > { %s5017_s11 = scalar_lea.hbm %s7123_s2, 48 }
  0x5d   : > { %p5018_p11 = scmp.ne.s32.totalorder %s7123_s2, %s5017_s11  ;;  %p5024_p4 = scmp.lt.u32.totalorder %s5017_s11, %s7123_s2 }
  0x5f   : > { %p5020_p1 = pnand %p5018_p11, %p5348_p12 }
  0x61   : > { %p5021_p2 = pneg %p5020_p1 }
  0x63   : > { %p5026_p6 = pnand %p5024_p4, %p5021_p2 }
  0x65   : > { %5029 = shalt.err (!%p5026_p6)
}
  0x66   : > { %s5030_s13 = scalar_lea.vmem %s218_s16, 48  ;;  %s5037_s14 = scalar_lea.vmem %s218_s16, 64 }
  0x67   : > { %p5031_p8 = scmp.ne.s32.totalorder %s218_s16, %s5030_s13  ;;  %p5038_p3 = scmp.lt.s32.totalorder %s218_s16, %s218_s16 }
  0x68   : > { %p5039_p5 = scmp.lt.s32.totalorder %s5037_s14, %s5030_s13 }
  0x69   : > { %p5033_p13 = pnand %p5031_p8, %p5348_p12 }
  0x6a   : > { %p5040_p7 = por %p5039_p5, %p5038_p3 }
  0x6b   : > { %p5034_p0 = pneg %p5033_p13 }
  0x6d   : > { %p5041_p9 = pnand %p5040_p7, %p5034_p0 }
  0x6f   : > { %5044 = shalt.err (!%p5041_p9)
}
  0x70   : > { %4549 = dma.hbm_to_vmem [thread:$0]  (!%p5334_p10), %s7123_s2, 48, %s218_s16, [#allocation8]  }
  0x71   : > { %s5045_s11 = scalar_lea.hbm %s7078_s4, 16 }
  0x72   : > { %p5046_p11 = scmp.ne.s32.totalorder %s7078_s4, %s5045_s11  ;;  %p5052_p4 = scmp.lt.u32.totalorder %s5045_s11, %s7078_s4 }
  0x74   : > { %p5048_p1 = pnand %p5046_p11, %p5348_p12 }
  0x76   : > { %p5049_p2 = pneg %p5048_p1 }
  0x78   : > { %p5054_p6 = pnand %p5052_p4, %p5049_p2 }
  0x7a   : > { %5057 = shalt.err (!%p5054_p6)
}
  0x7b   : > { %s5058_s16 = scalar_lea.vmem %s5390_s17, 16  ;;  %s5065_s14 = scalar_lea.vmem %s5390_s17, 32 }
  0x7c   : > { %p5059_p8 = scmp.ne.s32.totalorder %s5390_s17, %s5058_s16  ;;  %p5066_p3 = scmp.lt.s32.totalorder %s5390_s17, %s5390_s17 }
  0x7d   : > { %p5067_p5 = scmp.lt.s32.totalorder %s5065_s14, %s5058_s16 }
  0x7e   : > { %p5061_p13 = pnand %p5059_p8, %p5348_p12 }
  0x7f   : > { %p5068_p7 = por %p5067_p5, %p5066_p3 }
  0x80   : > { %p5062_p0 = pneg %p5061_p13 }
  0x82   : > { %p5069_p9 = pnand %p5068_p7, %p5062_p0 }
  0x84   : > { %5072 = shalt.err (!%p5069_p9)
}
  0x85   : > { %4555 = dma.hbm_to_vmem [thread:$0]  (!%p5334_p10), %s7078_s4, 16, %s5390_s17, [#allocation11]  }
  0x86   : > { %s35_s26 = sadd.s32 1, %s5201_s23  ;;  %s42_s27 = sadd.s32 1, %s5205_s24 }
  0x87   : > { %p36_p12 = scmp.ge.s32.totalorder %s35_s26, 2  ;;  %s53_s10 = sadd.s32 1, %s5189_s20 }
  0x88   : > { %p60_p11 = scmp.ne.s32.totalorder %s5189_s20, %s5185_s19  ;;  %p61_p1 = scmp.eq.s32.totalorder %s5209_s25, 0 }
  0x89   : > { %s7258_s26 = smov (%p36_p12, %s35_s26), 0  ;;  %s7260_s27 = smov (!%p36_p12, %s42_s27), %s5205_s24 }
  0x8a   : > { %s49_s8 = ssub.s32 %s5201_s23, %s7258_s26  ;;  %p5445_p2 = por %p61_p1, %p60_p11 }
  0x8b   : > { %p44_p10 = scmp.ge.s32.totalorder %s7260_s27, 2  ;;  %p7125_p4 = scmp.ne.s32.totalorder %s7114_s29, 0 }
  0x8c   : > { %p4568_p8 = scmp.lt.s32.totalorder %s5209_s25, 4  ;;  %s252_s9 = sand.u32 1, %s5189_s20  }
  0x8d   : > { %p5451_p6 = por %p7125_p4, %p60_p11  ;;  %s7262_s27 = smov (%p44_p10, %s7260_s27), 0 }
  0x8e   : > { %s3875_s6 = sshll.u32 %s252_s9, 6  ;;  %s46_s12 = ssub.s32 %s5205_s24, %s7262_s27 }
  0x8f   : > { %s50_s13 = sor.u32 %s49_s8, %s46_s12  ;;  %s3876_s16 = sshll.u32 %s5205_s24, 5 }
  0x90   : > { %p51_p13 = scmp.eq.s32.totalorder %s50_s13, 0  ;;  %s264_s14 = sadd.s32 %s5201_s23, %s3876_s16 }
  0x91   : > { %s3877_s1 = sshll.u32 %s264_s14, 6  ;;  %s256_s15 = scalar_lea.vmem [#allocation4], %s3875_s6 }
  0x92   : > { %s267_s29 = sshll.u32 %s256_s15, 4  ;;  %s5469_s3 = scalar_lea.hbm %s7074_s0, %s3877_s1  ;;  %s5471_s29 = int_to_ptr.vmem [resolvable:$true] %s267_s29 }
  0x93   : > { %s5464_s18 = scalar_select %p51_p13, %s5189_s20, %s53_s10  }
  0x94   : > { %p5477_p0 = pnand %p4568_p8, %p5445_p2  ;;  %s5481_s10 = scalar_lea.sflag [#allocation5], %s252_s9 }
  0x95   : > { %s5073_s6 = scalar_lea.hbm %s5469_s3, 1024  ;;  %s5078_s11 = scalar_lea.hbm %s7074_s0, 4096 }
  0x96   : > { %p5074_p3 = scmp.ne.s32.totalorder %s5469_s3, %s5073_s6  ;;  %p5075_p5 = pneg %p5477_p0 }
  0x97   : > { %p5079_p12 = scmp.lt.u32.totalorder %s5469_s3, %s7074_s0  ;;  %p5080_p11 = scmp.lt.u32.totalorder %s5078_s11, %s5073_s6 }
  0x98   : > { %p5076_p7 = pnand %p5075_p5, %p5074_p3  ;;  %p5082_p2 = scmp.lt.u32.totalorder %s5073_s6, %s5469_s3 }
  0x99   : > { %p5081_p1 = por %p5080_p11, %p5079_p12 }
  0x9a   : > { %p5077_p9 = pneg %p5076_p7 }
  0x9b   : > { %p5083_p10 = por %p5082_p2, %p5081_p1 }
  0x9d   : > { %p5084_p4 = pnand %p5083_p10, %p5077_p9 }
  0x9f   : > { %5087 = shalt.err (!%p5084_p4)
}
  0xa0   : > { %s5088_s9 = scalar_lea.vmem %s5471_s29, 1024  ;;  %s5219_s16 = smov [#allocation4]  }
  0xa1   : > { %p5089_p8 = scmp.ne.s32.totalorder %s5471_s29, %s5088_s9  ;;  %s5093_s14 = sshll.u32 %s5219_s16, 4  ;;  %s5094_s14 = int_to_ptr.vmem [resolvable:$false] %s5093_s14 }
  0xa2   : > { %s5095_s1 = scalar_lea.vmem %s5094_s14, 2048  ;;  %p5096_p7 = scmp.lt.s32.totalorder %s5471_s29, %s5094_s14 }
  0xa3   : > { %p5091_p13 = pnand %p5089_p8, %p5075_p5  ;;  %p5097_p12 = scmp.lt.s32.totalorder %s5095_s1, %s5088_s9 }
  0xa5   : > { %p5092_p3 = pneg %p5091_p13  ;;  %p5098_p11 = por %p5097_p12, %p5096_p7 }
  0xa7   : > { %p5099_p1 = pnand %p5098_p11, %p5092_p3 }
  0xa9   : > { %5102 = shalt.err (!%p5099_p1)
}
  0xaa   : > { %s5220_s15 = smov 128   ;;  %s7128_s6 = smov 4  }
  0xab   : > { %s7129_s2 = smov 64   ;;  %p7130_p5 = scmp.ne.s32.totalorder %s7118_s7, 0 }
  0xac   : > { %4559 = dma.hbm_to_vmem [thread:$0]  (!%p5477_p0), %s5469_s3, 1024, %s5471_s29, %s5481_s10, %s5220_s15, %s7129_s2, %s7128_s6  }
  0xad   : > { %279 = sbr.rel (%p7130_p5) target bundleno = 3025 (0xbd1), region = 40 }
  0xb4   : > { %s5514_s5 = sand.u32 1, %s5185_s19   ;;  %p7131_p9 = scmp.ne.s32.totalorder %s7115_s30, 0 }
  0xb5   : > { %s3879_s11 = sshll.u32 %s5514_s5, 6  ;;  %s282_s12 = scalar_lea.sflag [#allocation5], %s5514_s5 }
  0xb6   : > { %s5518_s13 = scalar_lea.vmem [#allocation4], %s3879_s11 }
  0xb7   : > { %5164 = dma.done.wait (%p7131_p9), %s282_s12, 1024  }
  0xb8   : > { %5166 = vsyncadd (%p7131_p9), %s282_s12, 4294966272  ;;  %p7132_p0 = scmp.ne.s32.totalorder %s7113_s28, 0 }
  0xba   : > { %5168 = dma.done.wait (%p7132_p0), [#allocation8], 3120  }
  0xbb   : > { %5170 = vsyncadd (%p7132_p0), [#allocation8], 4294964176 }
  0xbc   : > { %5172 = dma.done.wait (%p7132_p0), [#allocation11], 1040  }
  0xbd   : > { %5174 = vsyncadd (%p7132_p0), [#allocation11], 4294966256  ;;  %v5221_v0 = vmov 0   ;;  %v4657_v1 = vld [vmem:[#allocation7 + $0x4] ss:$12 sps:$4 sm:$0xff]   ;;  %v4683_v22 = vld [vmem:[%s5518_s13 + $0x8] sm:$0xff]   ;;  %v381_v33 = vlaneseq }
  0xbe   : > { %604 = vmatprep.mubr.bf16.mxu0 %v5221_v0  ;;  %644 = vmatprep.mubr.bf16.mxu1 %v5221_v0  ;;  %v4659_v2 = vld [vmem:[#allocation7] ss:$12 sps:$4 sm:$0xff]   ;;  %v4660_v3 = vld [vmem:[#allocation7 + $0x1c] ss:$12 sps:$4 sm:$0xff]   ;;  %v4662_v4 = vld [vmem:[#allocation7 + $0x18] ss:$12 sps:$4 sm:$0xff]  }
  0xbf   : > { %572 = vmatprep.subr.bf16.mxu0 %v4657_v1  ;;  %4475 = vmatprep.subr.bf16.mxu1 %v4657_v1  ;;  %v4663_v5 = vld [vmem:[#allocation7 + $0x34] ss:$12 sps:$4 sm:$0xff]   ;;  %v4665_v6 = vld [vmem:[#allocation7 + $0x30] ss:$12 sps:$4 sm:$0xff]   ;;  %v4666_v7 = vld [vmem:[#allocation7 + $0x4c] ss:$12 sps:$4 sm:$0xff]  }
  0xc0   : > { %573 = vmatpush1.bf16.msra.mxu0 %v4659_v2  ;;  %4483 = vmatpush1.bf16.msra.mxu1 %v4659_v2  ;;  %v4668_v8 = vld [vmem:[#allocation7 + $0x48] ss:$12 sps:$4 sm:$0xff]   ;;  %v4669_v9 = vld [vmem:[#allocation7 + $0x64] ss:$12 sps:$4 sm:$0xff]   ;;  %v4671_v10 = vld [vmem:[#allocation7 + $0x60] ss:$12 sps:$4 sm:$0xff]  }
  0xc1   : > { %574 = vmatprep.subr.bf16.mxu0 %v4660_v3  ;;  %4476 = vmatprep.subr.bf16.mxu1 %v4660_v3  ;;  %v4672_v11 = vld [vmem:[#allocation7 + $0x7c] ss:$12 sps:$4 sm:$0xff]   ;;  %v4674_v12 = vld [vmem:[#allocation7 + $0x78] ss:$12 sps:$4 sm:$0xff]   ;;  %v4675_v13 = vld [vmem:[#allocation7 + $0x94] ss:$12 sps:$4 sm:$0xff]  }
  0xc2   : > { %v4677_v14 = vld [vmem:[#allocation7 + $0x90] ss:$12 sps:$4 sm:$0xff]   ;;  %v4678_v15 = vld [vmem:[#allocation7 + $0xac] ss:$12 sps:$4 sm:$0xff]   ;;  %v4680_v16 = vld [vmem:[#allocation7 + $0xa8] ss:$12 sps:$4 sm:$0xff]  }
  0xc3   : > { %v4689_v17 = vld [vmem:[#allocation7 + $0x8] ss:$12 sps:$4 sm:$0xff]   ;;  %v4681_v18 = vld [vmem:[%s5518_s13] sm:$0xff]   ;;  %v4692_v24 = vld [vmem:[#allocation7 + $0x50] ss:$12 sps:$4 sm:$0xff]   ;;  %v5548_v34 = vshrl.u32 %v381_v33, 7 }
  0xc4   : > { %575 = vmatpush1.bf16.msra.mxu0 %v4662_v4  ;;  %4484 = vmatpush1.bf16.msra.mxu1 %v4662_v4  ;;  %v4682_v19 = vld [vmem:[%s5518_s13 + $0x20] sm:$0xff]   ;;  %v4684_v23 = vld [vmem:[%s5518_s13 + $0x28] sm:$0xff]   ;;  %v4685_v26 = vld [vmem:[%s5518_s13 + $0x10] sm:$0xff]   ;;  %vm871_vm0 = vcmask 64512   ;;  %vm1050_vm1 = vcmask 523264   ;;  %s5222_s3 = smov 120  }
  0xc5   : > { %576 = vmatprep.subr.bf16.mxu0 %v4663_v5  ;;  %4477 = vmatprep.subr.bf16.mxu1 %v4663_v5  ;;  %v4690_v20 = vld [vmem:[#allocation7 + $0x20] ss:$12 sps:$4 sm:$0xff]   ;;  %v4691_v21 = vld [vmem:[#allocation7 + $0x38] ss:$12 sps:$4 sm:$0xff]   ;;  %v4693_v25 = vld [vmem:[#allocation7 + $0x68] ss:$12 sps:$4 sm:$0xff]  }
  0xc6   : > { %v4686_v27 = vld [vmem:[%s5518_s13 + $0x30] sm:$0xff]   ;;  %v4694_v28 = vld [vmem:[#allocation7 + $0x80] ss:$12 sps:$4 sm:$0xff]   ;;  %v4695_v29 = vld [vmem:[#allocation7 + $0x98] ss:$12 sps:$4 sm:$0xff]   ;;  %v383_v35 = vsub.s32 0, %v5548_v34 }
  0xc7   : > { %v4687_v30 = vld [vmem:[%s5518_s13 + $0x18] sm:$0xff]   ;;  %v5551_v36 = vld [vmem:[#allocation9] sm:$0x7]  ;;  %v387_v37 = vsub.s32 1, %v5548_v34  ;;  %s5223_s28 = smov 112   ;;  %s5224_s30 = smov 104  }
  0xc8   : > { %577 = vmatpush1.bf16.msra.mxu0 %v4665_v6  ;;  %4485 = vmatpush1.bf16.msra.mxu1 %v4665_v6  ;;  %v4688_v31 = vld [vmem:[%s5518_s13 + $0x38] sm:$0xff]   ;;  %v5555_v38 = vrot.slane %v5551_v36, %v383_v35  ;;  %vm830_vm2 = vcmask 1047808   ;;  %s5226_s7 = smov 8   ;;  %s5227_s29 = smov 16   ;;  %vm2089_vm3 = vcmask 130112   ;;  %vm2790_vm4 = vcmask 195712  }
  0xc9   : > { %578 = vmatprep.subr.bf16.mxu0 %v4666_v7  ;;  %4478 = vmatprep.subr.bf16.mxu1 %v4666_v7  ;;  %v4696_v32 = vld [vmem:[#allocation7 + $0xb0] ss:$12 sps:$4 sm:$0xff]   ;;  %v5558_v41 = vrot.slane %v5551_v36, %v387_v37  ;;  %s5228_s8 = smov 24   ;;  %vm3491_vm5 = vcmask 261312   ;;  %s3884_s10 = sshll.u32 %s5514_s5, 7 }
  0xca   : > { %s6977_s9 = scalar_lea.vmem [#allocation13], %s3884_s10  ;;  %s3991_s16 = sshll.u32 %s5197_s22, 5 }
  0xcb   : > { %s3731_s14 = sadd.s32 %s5193_s21, %s3991_s16  ;;  %s3734_s15 = sshll.u32 %s6977_s9, 4  ;;  %s7015_s15 = int_to_ptr.vmem [resolvable:$true] %s3734_s15 }
  0xcc   : > { %579 = vmatpush1.bf16.msra.mxu0 %v4668_v8  ;;  %4486 = vmatpush1.bf16.msra.mxu1 %v4668_v8  ;;  %s3992_s1 = sshll.u32 %s3731_s14, 7  ;;  %s7245_s2 = sld [smem:[#allocation79_spill]] }
  0xcd   : > { %580 = vmatprep.subr.bf16.mxu0 %v4669_v9  ;;  %4479 = vmatprep.subr.bf16.mxu1 %v4669_v9  ;;  %s3717_s11 = scalar_lea.sflag [#allocation6], %s5514_s5  ;;  %s5103_s12 = scalar_lea.vmem %s7015_s15, 2048 }
  0xce   : > { %p5104_p2 = scmp.ne.s32.totalorder %s7015_s15, %s5103_s12  ;;  %s5229_s13 = smov [#allocation13]  }
  0xd0   : > { %581 = vmatpush1.bf16.msra.mxu0 %v4671_v10  ;;  %4487 = vmatpush1.bf16.msra.mxu1 %v4671_v10  ;;  %p5105_p10 = pnand %p5104_p2, %p5451_p6 }
  0xd1   : > { %582 = vmatprep.subr.bf16.mxu0 %v4672_v11  ;;  %4480 = vmatprep.subr.bf16.mxu1 %v4672_v11 }
  0xd2   : > { %s7013_s21 = scalar_lea.hbm %s7245_s2, %s3992_s1  ;;  %p5106_p4 = pneg %p5105_p10 }
  0xd4   : > { %583 = vmatpush1.bf16.msra.mxu0 %v4674_v12  ;;  %4488 = vmatpush1.bf16.msra.mxu1 %v4674_v12 }
  0xd5   : > { %584 = vmatprep.subr.bf16.mxu0 %v4675_v13  ;;  %4481 = vmatprep.subr.bf16.mxu1 %v4675_v13 }
  0xd8   : > { %585 = vmatpush1.bf16.msra.mxu0 %v4677_v14  ;;  %4489 = vmatpush1.bf16.msra.mxu1 %v4677_v14 }
  0xd9   : > { %586 = vmatprep.subr.bf16.mxu0 %v4678_v15  ;;  %4482 = vmatprep.subr.bf16.mxu1 %v4678_v15 }
  0xdc   : > { %587 = vmatpush1.bf16.msra.mxu0 %v4680_v16  ;;  %4490 = vmatpush1.bf16.msra.mxu1 %v4680_v16 }
  0xdd   : > { %4155 = vmatprep.subr.bf16.mxu1 %v4689_v17 }
  0xdf   : > { %605 = vmatmul.mubr.bf16.vlgmr.msra.gmra.mrb[0].mxu0 %v4681_v18  ;;  %645 = vmatmul.mubr.bf16.vlgmr.msra.gmra.mrb[0].mxu1 %v4682_v19 }
  0xe0   : > { %614 = vmatprep.mubr.bf16.mxu0 %v5221_v0  ;;  %654 = vmatprep.mubr.bf16.mxu1 %v5221_v0 }
  0xe1   : > { %4156 = vmatpush3.bf16.msra.mxu1 %v4689_v17 }
  0xe2   : > { %4157 = vmatprep.subr.bf16.mxu1 %v4690_v20 }
  0xe5   : > { %4158 = vmatpush3.bf16.msra.mxu1 %v4690_v20 }
  0xe6   : > { %4159 = vmatprep.subr.bf16.mxu1 %v4691_v21 }
  0xe7   : > { %615 = vmatmul.mubr.bf16.gmra.mrb[4].mxu0 %v4683_v22  ;;  %655 = vmatmul.mubr.bf16.gmra.mrb[4].mxu1 %v4684_v23 }
  0xe8   : > { %624 = vmatprep.mubr.bf16.mxu0 %v5221_v0  ;;  %664 = vmatprep.mubr.bf16.mxu1 %v5221_v0 }
  0xe9   : > { %4160 = vmatpush3.bf16.msra.mxu1 %v4691_v21 }
  0xea   : > { %4161 = vmatprep.subr.bf16.mxu1 %v4692_v24 }
  0xed   : > { %4162 = vmatpush3.bf16.msra.mxu1 %v4692_v24 }
  0xee   : > { %4163 = vmatprep.subr.bf16.mxu1 %v4693_v25 }
  0xef   : > { %625 = vmatmul.mubr.bf16.gmra.mrb[8].mxu0 %v4685_v26  ;;  %665 = vmatmul.mubr.bf16.gmra.mrb[8].mxu1 %v4686_v27 }
  0xf0   : > { %634 = vmatprep.mubr.bf16.mxu0 %v5221_v0  ;;  %674 = vmatprep.mubr.bf16.mxu1 %v5221_v0 }
  0xf1   : > { %4164 = vmatpush3.bf16.msra.mxu1 %v4693_v25 }
  0xf2   : > { %4165 = vmatprep.subr.bf16.mxu1 %v4694_v28 }
  0xf5   : > { %4166 = vmatpush3.bf16.msra.mxu1 %v4694_v28 }
  0xf6   : > { %4167 = vmatprep.subr.bf16.mxu1 %v4695_v29 }
  0xf7   : > { %635 = vmatmul.mubr.bf16.gmra.mrb[12].mxu0 %v4687_v30  ;;  %675 = vmatmul.mubr.bf16.gmra.mrb[12].mxu1 %v4688_v31 }
  0xf8   : > { %4171 = vmatprep.mubr.bf16.mxu1 %v4681_v18 }
  0xf9   : > { %4168 = vmatpush3.bf16.msra.mxu1 %v4695_v29 }
  0xfa   : > { %4169 = vmatprep.subr.bf16.mxu1 %v4696_v32 }
  0xfd   : > { %4170 = vmatpush3.bf16.msra.mxu1 %v4696_v32 }
 0x100   : > { %4172 = vmatmul.mubr.bf16.vlgmr.msra.gmra.mrb[16].mxu1 %v4683_v22 }
 0x101   : > { %4175 = vmatprep.mubr.bf16.mxu1 %v4685_v26 }
 0x108   : > { %4176 = vmatmul.mubr.bf16.gmra.mrb[20].mxu1 %v4687_v30 }
 0x109   : > { %4179 = vmatprep.mubr.bf16.mxu1 %v4682_v19 }
 0x110   : > { %4180 = vmatmul.mubr.bf16.gmra.mrb[24].mxu1 %v4684_v23 }
 0x111   : > { %4183 = vmatprep.mubr.bf16.mxu1 %v4686_v27 }
 0x118   : > { %4184 = vmatmul.mubr.bf16.gmra.mrb[28].mxu1 %v4688_v31 }
 0x1b2   : > { %v606_v39 = vpop.f32.mrb[0].mxu0  ;;  %v646_v40 = vpop.f32.mrb[0].mxu1 }
 0x1b3   : > { %v647_v42 = vadd.f32 %v646_v40, %v5555_v38  ;;  %v608_v43 = vpop.f32.mrb[1].mxu0  ;;  %v648_v44 = vpop.f32.mrb[1].mxu1  ;;  %v607_v48 = vadd.f32 %v606_v39, %v5555_v38 }
 0x1b4   : > { %v649_v45 = vadd.f32 %v648_v44, %v5558_v41  ;;  %v610_v46 = vpop.f32.mrb[2].mxu0  ;;  %v650_v47 = vpop.f32.mrb[2].mxu1  ;;  %v609_v53 = vadd.f32 %v608_v43, %v5558_v41 }
 0x1b5   : > { %v611_v49 = vadd.f32 %v610_v46, %v5555_v38  ;;  %v651_v50 = vadd.f32 %v650_v47, %v5555_v38  ;;  %v612_v51 = vpop.f32.mrb[3].mxu0  ;;  %v652_v52 = vpop.f32.mrb[3].mxu1 }
 0x1b6   : > { %v613_v54 = vadd.f32 %v612_v51, %v5558_v41  ;;  %v653_v55 = vadd.f32 %v652_v52, %v5558_v41 }
 0x1b7   : > { %v5568_v56 = vpack.c.bf16 %v611_v49, %v607_v48  ;;  %v5570_v57 = vpack.c.bf16 %v651_v50, %v647_v42 }
 0x1b8   : > { %v5572_v58 = vpack.c.bf16 %v613_v54, %v609_v53  ;;  %v5574_v59 = vpack.c.bf16 %v653_v55, %v649_v45 }
 0x1b9   : > { %4195 = vmatprep.mubr.msk.bf16.mxu1 %vm871_vm0, %v5568_v56  ;;  %4211 = vmatprep.mubr.msk.bf16.mxu0 %vm871_vm0, %v5570_v57 }
 0x1ba   : > { %v616_v60 = vpop.f32.mrb[4].mxu0  ;;  %v656_v61 = vpop.f32.mrb[4].mxu1  ;;  %4491 = vmatprep.subr.msk.bf16.mxu1 %vm871_vm0, %v5572_v58  ;;  %4495 = vmatprep.subr.msk.bf16.mxu0 %vm871_vm0, %v5574_v59  ;;  %v885_v62 = vsel %vm871_vm0, %v5572_v58, 0  ;;  %v974_v63 = vsel %vm871_vm0, %v5574_v59, 0 }
 0x1bb   : > { %v657_v0 = vadd.f32 %v656_v61, %v5555_v38  ;;  %v618_v1 = vpop.f32.mrb[5].mxu0  ;;  %v658_v2 = vpop.f32.mrb[5].mxu1  ;;  %4188 = vmatpush3.bf16.xpose.msra.mxu1 %v885_v62  ;;  %4204 = vmatpush3.bf16.xpose.msra.mxu0 %v974_v63  ;;  %v617_v6 = vadd.f32 %v616_v60, %v5555_v38  ;;  %v391_v63 = vsub.s32 2, %v5548_v34 }
 0x1bc   : > { %v659_v3 = vadd.f32 %v658_v2, %v5558_v41  ;;  %v620_v4 = vpop.f32.mrb[6].mxu0  ;;  %v660_v5 = vpop.f32.mrb[6].mxu1  ;;  %v619_v11 = vadd.f32 %v618_v1, %v5558_v41 }
 0x1bd   : > { %v621_v7 = vadd.f32 %v620_v4, %v5555_v38  ;;  %v661_v8 = vadd.f32 %v660_v5, %v5555_v38  ;;  %v622_v9 = vpop.f32.mrb[7].mxu0  ;;  %v662_v10 = vpop.f32.mrb[7].mxu1 }
 0x1be   : > { %v623_v12 = vadd.f32 %v622_v9, %v5558_v41  ;;  %v663_v13 = vadd.f32 %v662_v10, %v5558_v41 }
 0x1bf   : > { %v5596_v14 = vpack.c.bf16 %v621_v7, %v617_v6  ;;  %v5598_v15 = vpack.c.bf16 %v661_v8, %v657_v0 }
 0x1c0   : > { %v5600_v16 = vpack.c.bf16 %v623_v12, %v619_v11  ;;  %v5602_v17 = vpack.c.bf16 %v663_v13, %v659_v3 }
 0x1c2   : > { %v626_v18 = vpop.f32.mrb[8].mxu0  ;;  %v666_v19 = vpop.f32.mrb[8].mxu1  ;;  %4492 = vmatprep.subr.msk.bf16.mxu1 %vm871_vm0, %v5600_v16  ;;  %4496 = vmatprep.subr.msk.bf16.mxu0 %vm871_vm0, %v5602_v17  ;;  %v888_v20 = vsel %vm871_vm0, %v5600_v16, 0  ;;  %v977_v21 = vsel %vm871_vm0, %v5602_v17, 0 }
 0x1c3   : > { %v667_v22 = vadd.f32 %v666_v19, %v5555_v38  ;;  %v628_v23 = vpop.f32.mrb[9].mxu0  ;;  %v668_v24 = vpop.f32.mrb[9].mxu1  ;;  %4190 = vmatpush3.bf16.xpose.msra.mxu1 %v888_v20  ;;  %4206 = vmatpush3.bf16.xpose.msra.mxu0 %v977_v21  ;;  %v627_v28 = vadd.f32 %v626_v18, %v5555_v38 }
 0x1c4   : > { %v669_v25 = vadd.f32 %v668_v24, %v5558_v41  ;;  %v630_v26 = vpop.f32.mrb[10].mxu0  ;;  %v670_v27 = vpop.f32.mrb[10].mxu1  ;;  %v629_v33 = vadd.f32 %v628_v23, %v5558_v41 }
 0x1c5   : > { %v631_v29 = vadd.f32 %v630_v26, %v5555_v38  ;;  %v671_v30 = vadd.f32 %v670_v27, %v5555_v38  ;;  %v632_v31 = vpop.f32.mrb[11].mxu0  ;;  %v672_v32 = vpop.f32.mrb[11].mxu1 }
 0x1c6   : > { %v633_v35 = vadd.f32 %v632_v31, %v5558_v41  ;;  %v673_v37 = vadd.f32 %v672_v32, %v5558_v41 }
 0x1c7   : > { %v5620_v39 = vpack.c.bf16 %v631_v29, %v627_v28  ;;  %v5622_v40 = vpack.c.bf16 %v671_v30, %v667_v22 }
 0x1c8   : > { %v5624_v42 = vpack.c.bf16 %v633_v35, %v629_v33  ;;  %v5626_v43 = vpack.c.bf16 %v673_v37, %v669_v25 }
 0x1ca   : > { %v636_v44 = vpop.f32.mrb[12].mxu0  ;;  %v676_v45 = vpop.f32.mrb[12].mxu1  ;;  %4493 = vmatprep.subr.msk.bf16.mxu1 %vm871_vm0, %v5624_v42  ;;  %4497 = vmatprep.subr.msk.bf16.mxu0 %vm871_vm0, %v5626_v43  ;;  %v891_v46 = vsel %vm871_vm0, %v5624_v42, 0  ;;  %v980_v47 = vsel %vm871_vm0, %v5626_v43, 0 }
 0x1cb   : > { %v677_v48 = vadd.f32 %v676_v45, %v5555_v38  ;;  %v638_v49 = vpop.f32.mrb[13].mxu0  ;;  %v678_v50 = vpop.f32.mrb[13].mxu1  ;;  %4192 = vmatpush3.bf16.xpose.msra.mxu1 %v891_v46  ;;  %4208 = vmatpush3.bf16.xpose.msra.mxu0 %v980_v47  ;;  %v637_v54 = vadd.f32 %v636_v44, %v5555_v38 }
 0x1cc   : > { %v679_v51 = vadd.f32 %v678_v50, %v5558_v41  ;;  %v640_v52 = vpop.f32.mrb[14].mxu0  ;;  %v680_v53 = vpop.f32.mrb[14].mxu1  ;;  %v639_v0 = vadd.f32 %v638_v49, %v5558_v41 }
 0x1cd   : > { %v641_v55 = vadd.f32 %v640_v52, %v5555_v38  ;;  %v681_v60 = vadd.f32 %v680_v53, %v5555_v38  ;;  %v642_v61 = vpop.f32.mrb[15].mxu0  ;;  %v682_v62 = vpop.f32.mrb[15].mxu1  ;;  %v392_v38 = vrot.slane %v5551_v36, %v391_v63 }
 0x1ce   : > { %v643_v1 = vadd.f32 %v642_v61, %v5558_v41  ;;  %v683_v2 = vadd.f32 %v682_v62, %v5558_v41 }
 0x1cf   : > { %v5645_v3 = vpack.c.bf16 %v641_v55, %v637_v54  ;;  %v5647_v4 = vpack.c.bf16 %v681_v60, %v677_v48 }
 0x1d0   : > { %v5649_v5 = vpack.c.bf16 %v643_v1, %v639_v0  ;;  %v5651_v6 = vpack.c.bf16 %v683_v2, %v679_v51 }
 0x1d2   : > { %4494 = vmatprep.subr.msk.bf16.mxu1 %vm871_vm0, %v5649_v5  ;;  %4498 = vmatprep.subr.msk.bf16.mxu0 %vm871_vm0, %v5651_v6  ;;  %v894_v34 = vsel %vm871_vm0, %v5649_v5, 0  ;;  %v983_v41 = vsel %vm871_vm0, %v5651_v6, 0 }
 0x1d3   : > { %4194 = vmatpush3.bf16.xpose.msra.mxu1 %v894_v34  ;;  %4210 = vmatpush3.bf16.xpose.msra.mxu0 %v983_v41  ;;  %v4173_v7 = vpop.f32.mrb[16].mxu1 }
 0x1d4   : > { %v728_v8 = vadd.f32 %v4173_v7, %v392_v38  ;;  %v719_v9 = vpop.f32.mrb[17].mxu1 }
 0x1d5   : > { %v720_v10 = vadd.f32 %v719_v9, %v392_v38  ;;  %v4174_v11 = vpop.f32.mrb[18].mxu1 }
 0x1d6   : > { %v731_v36 = vadd.f32 %v4174_v11, %v392_v38  ;;  %v722_v12 = vpop.f32.mrb[19].mxu1 }
 0x1d7   : > { %v723_v13 = vadd.f32 %v722_v12, %v392_v38 }
 0x1d8   : > { %v5662_v18 = vpack.c.bf16 %v731_v36, %v728_v8 }
 0x1d9   : > { %v5664_v19 = vpack.c.bf16 %v723_v13, %v720_v10 }
 0x1da   : > { %4196 = vmatmul.mubr.msk.bf16.vlgmr.msra.gmra.mrb[32].mxu1 %vm871_vm0, %v5596_v14  ;;  %4212 = vmatmul.mubr.msk.bf16.vlgmr.msra.gmra.mrb[16].mxu0 %vm871_vm0, %v5598_v15 }
 0x1db   : > { %4199 = vmatprep.mubr.msk.bf16.mxu1 %vm871_vm0, %v5620_v39  ;;  %4215 = vmatprep.mubr.msk.bf16.mxu0 %vm871_vm0, %v5622_v40  ;;  %v4177_v20 = vpop.f32.mrb[20].mxu1 }
 0x1dc   : > { %v744_v21 = vadd.f32 %v4177_v20, %v392_v38  ;;  %4219 = vmatprep.subr.bf16.mxu1 %v5664_v19  ;;  %v735_v22 = vpop.f32.mrb[21].mxu1 }
 0x1dd   : > { %v736_v23 = vadd.f32 %v735_v22, %v392_v38  ;;  %4220 = vmatpush3.bf16.msra.mxu1 %v5664_v19  ;;  %v4178_v24 = vpop.f32.mrb[22].mxu1 }
 0x1de   : > { %v747_v25 = vadd.f32 %v4178_v24, %v392_v38  ;;  %v738_v26 = vpop.f32.mrb[23].mxu1  ;;  %4221 = vmatprep.subr.bf16.mxu1 %v5662_v18 }
 0x1df   : > { %v739_v27 = vadd.f32 %v738_v26, %v392_v38 }
 0x1e0   : > { %v5677_v28 = vpack.c.bf16 %v747_v25, %v744_v21 }
 0x1e1   : > { %v5679_v29 = vpack.c.bf16 %v739_v27, %v736_v23  ;;  %4222 = vmatpush3.bf16.msra.mxu1 %v5662_v18 }
 0x1e2   : > { %4200 = vmatmul.mubr.msk.bf16.gmra.mrb[36].mxu1 %vm871_vm0, %v5645_v3  ;;  %4216 = vmatmul.mubr.msk.bf16.gmra.mrb[20].mxu0 %vm871_vm0, %v5647_v4 }
 0x1e3   : > { %4223 = vmatprep.subr.bf16.mxu1 %v5679_v29  ;;  %v4181_v30 = vpop.f32.mrb[24].mxu1 }
 0x1e4   : > { %v760_v31 = vadd.f32 %v4181_v30, %v392_v38  ;;  %v751_v32 = vpop.f32.mrb[25].mxu1 }
 0x1e5   : > { %4224 = vmatpush3.bf16.msra.mxu1 %v5679_v29  ;;  %v752_v33 = vadd.f32 %v751_v32, %v392_v38  ;;  %v4182_v35 = vpop.f32.mrb[26].mxu1 }
 0x1e6   : > { %4225 = vmatprep.subr.bf16.mxu1 %v5677_v28  ;;  %v763_v37 = vadd.f32 %v4182_v35, %v392_v38  ;;  %v754_v44 = vpop.f32.mrb[27].mxu1 }
 0x1e7   : > { %v755_v45 = vadd.f32 %v754_v44, %v392_v38 }
 0x1e8   : > { %v5689_v46 = vpack.c.bf16 %v763_v37, %v760_v31 }
 0x1e9   : > { %4226 = vmatpush3.bf16.msra.mxu1 %v5677_v28  ;;  %v5692_v47 = vpack.c.bf16 %v755_v45, %v752_v33 }
 0x1eb   : > { %v4185_v48 = vpop.f32.mrb[28].mxu1  ;;  %4235 = vmatprep.subr.bf16.mxu1 %v5692_v47 }
 0x1ec   : > { %v776_v49 = vadd.f32 %v4185_v48, %v392_v38  ;;  %v767_v50 = vpop.f32.mrb[29].mxu1 }
 0x1ed   : > { %v768_v51 = vadd.f32 %v767_v50, %v392_v38  ;;  %v4186_v52 = vpop.f32.mrb[30].mxu1 }
 0x1ee   : > { %v779_v53 = vadd.f32 %v4186_v52, %v392_v38  ;;  %v770_v54 = vpop.f32.mrb[31].mxu1 }
 0x1ef   : > { %v771_v55 = vadd.f32 %v770_v54, %v392_v38 }
 0x1f0   : > { %v5695_v60 = vpack.c.bf16 %v779_v53, %v776_v49 }
 0x1f1   : > { %v5697_v61 = vpack.c.bf16 %v771_v55, %v768_v51 }
 0x2ad   : > { %v5699_v62 = vpop.f32.mrb[32].mxu1  ;;  %v5701_v63 = vpop.f32.mrb[16].mxu0 }
 0x2ae   : > { %v5703_v0 = vpop.f32.mrb[33].mxu1  ;;  %v5705_v1 = vpop.f32.mrb[17].mxu0  ;;  %v1081_v2 = vsel %vm1050_vm1, %v5701_v63, -inf  ;;  %v1057_v34 = vsel %vm1050_vm1, %v5699_v62, -inf }
 0x2af   : > { %1082 = vmax.xlane.f32.xlu0 %v1081_v2  ;;  %v5711_v38 = vpop.f32.mrb[18].mxu0  ;;  %1058 = vmax.xlane.f32.xlu1 %v1057_v34  ;;  %v5713_v41 = vpop.f32.mrb[34].mxu1  ;;  %v1051_v9 = vsel %vm1050_vm1, %v5703_v0, -inf  ;;  %v1075_v20 = vsel %vm1050_vm1, %v5705_v1, -inf }
 0x2b0   : > { %v5715_v7 = vpop.f32.mrb[35].mxu1  ;;  %v5717_v8 = vpop.f32.mrb[19].mxu0  ;;  %v1060_v10 = vsel %vm1050_vm1, %v5713_v41, -inf  ;;  %v1084_v21 = vsel %vm1050_vm1, %v5711_v38, -inf }
 0x2b1   : > { %v1078_v26 = vsel %vm1050_vm1, %v5717_v8, -inf  ;;  %v1054_v27 = vsel %vm1050_vm1, %v5715_v7, -inf }
 0x2b3   : > { %1052 = vmax.xlane.f32.xlu0 %v1051_v9  ;;  %1061 = vmax.xlane.f32.xlu1 %v1060_v10 }
 0x2b5   : > { %v5723_v11 = vpop.f32.mrb[36].mxu1  ;;  %v5725_v36 = vpop.f32.mrb[20].mxu0 }
 0x2b6   : > { %v5727_v12 = vpop.f32.mrb[37].mxu1  ;;  %v5729_v13 = vpop.f32.mrb[21].mxu0  ;;  %v1069_v30 = vsel %vm1050_vm1, %v5723_v11, -inf  ;;  %v1093_v33 = vsel %vm1050_vm1, %v5725_v36, -inf }
 0x2b7   : > { %v5735_v22 = vpop.f32.mrb[22].mxu0  ;;  %1076 = vmax.xlane.f32.xlu0 %v1075_v20  ;;  %1085 = vmax.xlane.f32.xlu1 %v1084_v21  ;;  %v5737_v23 = vpop.f32.mrb[38].mxu1  ;;  %v1063_v31 = vsel %vm1050_vm1, %v5727_v12, -inf  ;;  %v1087_v32 = vsel %vm1050_vm1, %v5729_v13, -inf }
 0x2b8   : > { %v5739_v24 = vpop.f32.mrb[39].mxu1  ;;  %v5741_v25 = vpop.f32.mrb[23].mxu0  ;;  %v1072_v35 = vsel %vm1050_vm1, %v5737_v23, -inf  ;;  %v1096_v37 = vsel %vm1050_vm1, %v5735_v22, -inf }
 0x2b9   : > { %v1066_v44 = vsel %vm1050_vm1, %v5739_v24, -inf  ;;  %v1090_v45 = vsel %vm1050_vm1, %v5741_v25, -inf }
 0x2bb   : > { %1079 = vmax.xlane.f32.xlu1 %v1078_v26  ;;  %1055 = vmax.xlane.f32.xlu0 %v1054_v27 }
 0x2bf   : > { %1070 = vmax.xlane.f32.xlu0 %v1069_v30 }
 0x2c3   : > { %1064 = vmax.xlane.f32.xlu0 %v1063_v31 }
 0x2cc   : > { %1447 = vrot.lane.b32.xlu1 %v5600_v16, %s5222_s3 }
 0x2d0   : > { %1558 = vrot.lane.b32.xlu1 %v5574_v59, %s5222_s3 }
 0x2d4   : > { %1560 = vrot.lane.b32.xlu1 %v5602_v17, %s5222_s3 }
 0x2d9   : > { %1445 = vrot.lane.b32.xlu0 %v5572_v58, %s5222_s3 }
 0x2f8   : > { %1088 = vmax.xlane.f32.xlu1 %v1087_v32  ;;  %1094 = vmax.xlane.f32.xlu0 %v1093_v33 }
 0x2fc   : > { %1073 = vmax.xlane.f32.xlu1 %v1072_v35 }
 0x300   : > { %1097 = vmax.xlane.f32.xlu1 %v1096_v37 }
 0x304   : > { %1067 = vmax.xlane.f32.xlu1 %v1066_v44 }
 0x30e   : > { %1449 = vrot.lane.b32.xlu0 %v5624_v42, %s5222_s3 }
 0x312   : > { %1451 = vrot.lane.b32.xlu0 %v5649_v5, %s5222_s3 }
 0x315   : > { %1435 = vrot.lane.b32.xlu1 %v5596_v14, %s5222_s3 }
 0x316   : > { %1433 = vrot.lane.b32.xlu0 %v5568_v56, %s5222_s3 }
 0x31a   : > { %1562 = vrot.lane.b32.xlu0 %v5626_v43, %s5222_s3 }
 0x31e   : > { %1546 = vrot.lane.b32.xlu0 %v5570_v57, %s5222_s3 }
 0x322   : > { %1437 = vrot.lane.b32.xlu0 %v5620_v39, %s5222_s3 }
 0x326   : > { %1550 = vrot.lane.b32.xlu0 %v5622_v40, %s5222_s3 }
 0x32a   : > { %1811 = vrot.lane.b32.xlu0 %v5664_v19, %s5222_s3 }
 0x32e   : > { %1815 = vrot.lane.b32.xlu0 %v5679_v29, %s5222_s3 }
 0x332   : > { %1904 = vrot.lane.b32.xlu0 %v5692_v47, %s5222_s3 }
 0x336   : > { %1910 = vrot.lane.b32.xlu0 %v5695_v60, %s5222_s3 }
 0x339   : > { %1091 = vmax.xlane.f32.xlu1 %v1090_v45 }
 0x33a   : > { %2148 = vrot.lane.b32.xlu0 %v5600_v16, %s5223_s28 }
 0x33c   : > { %v1083_v48 = vpop.xlane.xlu0 %1082  ;;  %v1059_v49 = vpop.xlane.xlu1 %1058 }
 0x33d   : > { %v1101_v50 = vsub.f32 %v5699_v62, %v1059_v49  ;;  %v1109_v53 = vsub.f32 %v5701_v63, %v1083_v48 }
 0x33e   : > { %2259 = vrot.lane.b32.xlu0 %v5574_v59, %s5223_s28 }
 0x33f   : > { %v1119_v54 = vmul.f32 1.442695, %v1101_v50  ;;  %v1135_v20 = vmul.f32 1.442695, %v1109_v53 }
 0x340   : > { %v1053_v51 = vpop.xlane.xlu0 %1052  ;;  %v1062_v52 = vpop.xlane.xlu1 %1061 }
 0x341   : > { %v1102_v55 = vsub.f32 %v5713_v41, %v1062_v52  ;;  %v1099_v2 = vsub.f32 %v5703_v0, %v1053_v51  ;;  %4705 = vpow2.f32 %v1119_v54 }
 0x342   : > { %2152 = vrot.lane.b32.xlu0 %v5649_v5, %s5223_s28 }
 0x343   : > { %v1121_v34 = vmul.f32 1.442695, %v1102_v55  ;;  %v1115_v26 = vmul.f32 1.442695, %v1099_v2 }
 0x344   : > { %v1077_v9 = vpop.xlane.xlu0 %1076  ;;  %v1086_v10 = vpop.xlane.xlu1 %1085 }
 0x345   : > { %v1107_v62 = vsub.f32 %v5705_v1, %v1077_v9  ;;  %v1110_v21 = vsub.f32 %v5711_v38, %v1086_v10  ;;  %4707 = vpow2.f32 %v1121_v34 }
 0x346   : > { %4709 = vpow2.f32 %v1135_v20 }
 0x347   : > { %v1137_v63 = vmul.f32 1.442695, %v1110_v21  ;;  %v1131_v27 = vmul.f32 1.442695, %v1107_v62 }
 0x348   : > { %v1080_v30 = vpop.xlane.xlu1 %1079  ;;  %v1056_v41 = vpop.xlane.xlu0 %1055 }
 0x349   : > { %v1108_v31 = vsub.f32 %v5717_v8, %v1080_v30  ;;  %v1100_v0 = vsub.f32 %v5715_v7, %v1056_v41  ;;  %4711 = vpow2.f32 %v1137_v63 }
 0x34a   : > { %1564 = vrot.lane.b32.xlu1 %v5651_v6, %s5222_s3  ;;  %4713 = vpow2.f32 %v1115_v26 }
 0x34b   : > { %v1133_v32 = vmul.f32 1.442695, %v1108_v31  ;;  %v1117_v1 = vmul.f32 1.442695, %v1100_v0  ;;  %4715 = vpow2.f32 %v1131_v27  ;;  %v5813_v33 = vpop.eup %4705 }
 0x34c   : > { %v1071_v38 = vpop.xlane.xlu0 %1070  ;;  %7133 = vst [vmem:[#allocation20_spill] sm:$0xff] %v5813_v33  ;;  %v1448_v52 = vpop.permute.xlu1 %1447 }
 0x34d   : > { %4717 = vpow2.f32 %v1133_v32  ;;  %v1469_v34 = vsel %vm871_vm0, %v1448_v52, 0  ;;  %v1105_v20 = vsub.f32 %v5723_v11, %v1071_v38 }
 0x34e   : > { %4719 = vpow2.f32 %v1117_v1  ;;  %1548 = vrot.lane.b32.xlu1 %v5598_v15, %s5222_s3 }
 0x34f   : > { %v5815_v35 = vpop.eup %4707  ;;  %v1127_v26 = vmul.f32 1.442695, %v1105_v20 }
 0x350   : > { %7134 = vst [vmem:[#allocation21_spill] sm:$0xff] %v5815_v35  ;;  %v1065_v8 = vpop.xlane.xlu0 %1064  ;;  %v1196_v7 = vpack.c.bf16 %v5815_v35, %v5813_v33  ;;  %v5821_v37 = vpop.eup %4709 }
 0x351   : > { %7135 = vst [vmem:[#allocation22_spill] sm:$0xff] %v5821_v37  ;;  %v5861_v9 = vpop.permute.xlu1 %1558  ;;  %4721 = vpow2.f32 %v1127_v26  ;;  %v1103_v32 = vsub.f32 %v5727_v12, %v1065_v8 }
 0x352   : > { %1439 = vrot.lane.b32.xlu1 %v5645_v3, %s5222_s3 }
 0x353   : > { %v5823_v44 = vpop.eup %4711 }
 0x354   : > { %7136 = vst [vmem:[#allocation23_spill] sm:$0xff] %v5823_v44  ;;  %v1446_v45 = vpop.permute.xlu0 %1445  ;;  %v5825_v48 = vpop.eup %4713  ;;  %v1200_v49 = vpack.c.bf16 %v5823_v44, %v5821_v37 }
 0x355   : > { %7137 = vst [vmem:[#allocation24_spill] sm:$0xff] %v5825_v48  ;;  %4499 = vmatprep.subr.msk.bf16.mxu0 %vm871_vm0, %v1446_v45  ;;  %v1466_v50 = vsel %vm871_vm0, %v1446_v45, 0  ;;  %v5831_v51 = vpop.eup %4715  ;;  %v1561_v10 = vpop.permute.xlu1 %1560  ;;  %v1123_v45 = vmul.f32 1.442695, %v1103_v32 }
 0x356   : > { %7138 = vst [vmem:[#allocation25_spill] sm:$0xff] %v5831_v51  ;;  %4252 = vmatpush3.bf16.xpose.msra.mxu0 %v1466_v50  ;;  %1552 = vrot.lane.b32.xlu1 %v5647_v4, %s5222_s3 }
 0x357   : > { %v5835_v53 = vpop.eup %4717  ;;  %4500 = vmatprep.subr.msk.bf16.mxu0 %vm871_vm0, %v1448_v52 }
 0x358   : > { %7139 = vst [vmem:[#allocation26_spill] sm:$0xff] %v5835_v53  ;;  %v5838_v54 = vpop.eup %4719  ;;  %v1199_v55 = vpack.c.bf16 %v5835_v53, %v5831_v51 }
 0x359   : > { %7140 = vst [vmem:[#allocation27_spill] sm:$0xff] %v5838_v54  ;;  %v1195_v2 = vpack.c.bf16 %v5838_v54, %v5825_v48 }
 0x35a   : > { %1813 = vrot.lane.b32.xlu1 %v5662_v18, %s5222_s3 }
 0x35b   : > { %4227 = vmatprep.mubr.msk.bf16.mxu1 %vm1050_vm1, %v1195_v2 }
 0x35c   : > { %4228 = vmatmul.mubr.msk.bf16.vlgmr.msra.gmra.mrb[40].mxu1 %vm1050_vm1, %v1196_v7 }
 0x35d   : > { %4236 = vmatpush3.bf16.msra.mxu1 %v5692_v47 }
 0x35e   : > { %4237 = vmatprep.subr.bf16.mxu1 %v5689_v46  ;;  %4254 = vmatpush3.bf16.xpose.msra.mxu0 %v1469_v34 }
 0x35f   : > { %1817 = vrot.lane.b32.xlu1 %v5677_v28, %s5222_s3 }
 0x361   : > { %4238 = vmatpush3.bf16.msra.mxu1 %v5689_v46 }
 0x362   : > { %4239 = vmatprep.subr.bf16.mxu1 %v5697_v61 }
 0x363   : > { %1906 = vrot.lane.b32.xlu1 %v5689_v46, %s5222_s3 }
 0x365   : > { %4240 = vmatpush3.bf16.msra.mxu1 %v5697_v61 }
 0x366   : > { %4241 = vmatprep.subr.bf16.mxu1 %v5695_v60 }
 0x367   : > { %2146 = vrot.lane.b32.xlu1 %v5572_v58, %s5223_s28 }
 0x369   : > { %4242 = vmatpush3.bf16.msra.mxu1 %v5695_v60 }
 0x36a   : > { %4503 = vmatprep.subr.msk.bf16.mxu1 %vm871_vm0, %v5861_v9 }
 0x36b   : > { %1908 = vrot.lane.b32.xlu1 %v5697_v61, %s5222_s3  ;;  %s5107_s3 = sshll.u32 %s5229_s13, 4  ;;  %s5108_s3 = int_to_ptr.vmem [resolvable:$false] %s5107_s3 }
 0x36c   : > { %p5110_p8 = scmp.lt.s32.totalorder %s7015_s15, %s5108_s3 }
 0x36f   : > { %2150 = vrot.lane.b32.xlu1 %v5624_v42, %s5223_s28 }
 0x373   : > { %2261 = vrot.lane.b32.xlu1 %v5602_v17, %s5223_s28 }
 0x385   : > { %v5873_v62 = vpop.xlane.xlu1 %1088  ;;  %v1095_v21 = vpop.xlane.xlu0 %1094 }
 0x386   : > { %v1113_v63 = vsub.f32 %v5725_v36, %v1095_v21 }
 0x388   : > { %v1143_v11 = vmul.f32 1.442695, %v1113_v63 }
 0x389   : > { %v1450_v27 = vpop.permute.xlu0 %1449  ;;  %v1074_v30 = vpop.xlane.xlu1 %1073 }
 0x38a   : > { %v1106_v41 = vsub.f32 %v5737_v23, %v1074_v30  ;;  %4501 = vmatprep.subr.msk.bf16.mxu0 %vm871_vm0, %v1450_v27  ;;  %v1472_v31 = vsel %vm871_vm0, %v1450_v27, 0 }
 0x38b   : > { %4256 = vmatpush3.bf16.xpose.msra.mxu0 %v1472_v31 }
 0x38c   : > { %v1129_v0 = vmul.f32 1.442695, %v1106_v41 }
 0x38d   : > { %v1452_v1 = vpop.permute.xlu0 %1451  ;;  %v1098_v38 = vpop.xlane.xlu1 %1097 }
 0x38e   : > { %4723 = vpow2.f32 %v1129_v0  ;;  %v1114_v7 = vsub.f32 %v5735_v22, %v1098_v38  ;;  %4502 = vmatprep.subr.msk.bf16.mxu0 %vm871_vm0, %v1452_v1  ;;  %v1475_v12 = vsel %vm871_vm0, %v1452_v1, 0  ;;  %v5885_v22 = vpop.eup %4721  ;;  %v1579_v1 = vsel %vm871_vm0, %v5861_v9, 0 }
 0x38f   : > { %4725 = vpow2.f32 %v1143_v11  ;;  %7141 = vst [vmem:[#allocation28_spill] sm:$0xff] %v5885_v22  ;;  %v1582_v38 = vsel %vm871_vm0, %v1561_v10, 0 }
 0x390   : > { %v1145_v36 = vmul.f32 1.442695, %v1114_v7  ;;  %v1111_v7 = vsub.f32 %v5729_v13, %v5873_v62 }
 0x391   : > { %v1434_v23 = vpop.permute.xlu0 %1433  ;;  %v1068_v50 = vpop.xlane.xlu1 %1067 }
 0x392   : > { %4727 = vpow2.f32 %v1145_v36  ;;  %v1104_v52 = vsub.f32 %v5739_v24, %v1068_v50  ;;  %4259 = vmatprep.mubr.msk.bf16.mxu0 %vm871_vm0, %v1434_v23  ;;  %v1139_v36 = vmul.f32 1.442695, %v1111_v7 }
 0x393   : > { %4258 = vmatpush3.bf16.xpose.msra.mxu0 %v1475_v12  ;;  %4729 = vpow2.f32 %v1123_v45 }
 0x394   : > { %v1125_v8 = vmul.f32 1.442695, %v1104_v52 }
 0x395   : > { %v1563_v2 = vpop.permute.xlu0 %1562  ;;  %v1436_v20 = vpop.permute.xlu1 %1435 }
 0x396   : > { %4731 = vpow2.f32 %v1125_v8 }
 0x397   : > { %4733 = vpow2.f32 %v1139_v36 }
 0x398   : > { %v5887_v34 = vpop.eup %4723 }
 0x399   : > { %7142 = vst [vmem:[#allocation29_spill] sm:$0xff] %v5887_v34  ;;  %v1547_v21 = vpop.permute.xlu0 %1546  ;;  %v1198_v26 = vpack.c.bf16 %v5887_v34, %v5885_v22  ;;  %v5892_v24 = vpop.eup %4725 }
 0x39a   : > { %4260 = vmatmul.mubr.msk.bf16.vlgmr.msra.gmra.mrb[24].mxu0 %vm871_vm0, %v1436_v20  ;;  %7143 = vst [vmem:[#allocation30_spill] sm:$0xff] %v5892_v24 }
 0x39c   : > { %v5894_v63 = vpop.eup %4727 }
 0x39d   : > { %7144 = vst [vmem:[#allocation31_spill] sm:$0xff] %v5894_v63  ;;  %v1438_v27 = vpop.permute.xlu0 %1437  ;;  %v1202_v30 = vpack.c.bf16 %v5894_v63, %v5892_v24  ;;  %v5899_v41 = vpop.eup %4729 }
 0x39e   : > { %4263 = vmatprep.mubr.msk.bf16.mxu0 %vm871_vm0, %v1438_v27  ;;  %7145 = vst [vmem:[#allocation32_spill] sm:$0xff] %v5899_v41 }
 0x3a0   : > { %v5901_v31 = vpop.eup %4731 }
 0x3a1   : > { %7146 = vst [vmem:[#allocation33_spill] sm:$0xff] %v5901_v31  ;;  %v1551_v0 = vpop.permute.xlu0 %1550  ;;  %v1197_v32 = vpack.c.bf16 %v5901_v31, %v5899_v41  ;;  %v5927_v13 = vpop.eup %4733 }
 0x3a2   : > { %7147 = vst [vmem:[#allocation34_spill] sm:$0xff] %v5927_v13 }
 0x3a3   : > { %4231 = vmatprep.mubr.msk.bf16.mxu1 %vm1050_vm1, %v1197_v32 }
 0x3a4   : > { %4232 = vmatmul.mubr.msk.bf16.gmra.mrb[44].mxu1 %vm1050_vm1, %v1198_v26 }
 0x3a5   : > { %v1812_v11 = vpop.permute.xlu0 %1811  ;;  %4243 = vmatprep.mubr.msk.bf16.mxu1 %vm1050_vm1, %v1199_v55  ;;  %v1585_v55 = vsel %vm871_vm0, %v1563_v2, 0 }
 0x3a6   : > { %4283 = vmatprep.subr.bf16.mxu0 %v1812_v11 }
 0x3a7   : > { %4284 = vmatpush3.bf16.msra.mxu0 %v1812_v11 }
 0x3a9   : > { %v1816_v45 = vpop.permute.xlu0 %1815 }
 0x3ac   : > { %4244 = vmatmul.mubr.msk.bf16.vlgmr.msra.gmra.mrb[48].mxu1 %vm1050_vm1, %v1200_v49 }
 0x3ad   : > { %4268 = vmatpush3.bf16.xpose.msra.mxu1 %v1579_v1  ;;  %v1905_v52 = vpop.permute.xlu0 %1904 }
 0x3ae   : > { %4504 = vmatprep.subr.msk.bf16.mxu1 %vm871_vm0, %v1561_v10 }
 0x3b1   : > { %v1911_v32 = vpop.permute.xlu0 %1910 }
 0x3b5   : > { %4270 = vmatpush3.bf16.xpose.msra.mxu1 %v1582_v38 }
 0x3b6   : > { %4505 = vmatprep.subr.msk.bf16.mxu1 %vm871_vm0, %v1563_v2 }
 0x3bd   : > { %4272 = vmatpush3.bf16.xpose.msra.mxu1 %v1585_v55 }
 0x3c6   : > { %v1092_v49 = vpop.xlane.xlu1 %1091 }
 0x3c7   : > { %v1112_v23 = vsub.f32 %v5741_v25, %v1092_v49 }
 0x3c9   : > { %v1141_v9 = vmul.f32 1.442695, %v1112_v23 }
 0x3ca   : > { %v1565_v50 = vpop.permute.xlu1 %1564 }
 0x3cb   : > { %4735 = vpow2.f32 %v1141_v9  ;;  %4506 = vmatprep.subr.msk.bf16.mxu1 %vm871_vm0, %v1565_v50  ;;  %v1588_v10 = vsel %vm871_vm0, %v1565_v50, 0 }
 0x3cc   : > { %4274 = vmatpush3.bf16.xpose.msra.mxu1 %v1588_v10 }
 0x3cd   : > { %4299 = vmatprep.subr.bf16.mxu1 %v1905_v52 }
 0x3ce   : > { %v1549_v12 = vpop.permute.xlu1 %1548 }
 0x3d2   : > { %v1440_v8 = vpop.permute.xlu1 %1439 }
 0x3d3   : > { %4264 = vmatmul.mubr.msk.bf16.gmra.mrb[28].mxu0 %vm871_vm0, %v1440_v8 }
 0x3d5   : > { %v5929_v62 = vpop.eup %4735 }
 0x3d6   : > { %7148 = vst [vmem:[#allocation35_spill] sm:$0xff] %v5929_v62  ;;  %v1553_v25 = vpop.permute.xlu1 %1552  ;;  %v1201_v2 = vpack.c.bf16 %v5929_v62, %v5927_v13 }
 0x3d8   : > { %4247 = vmatprep.mubr.msk.bf16.mxu1 %vm1050_vm1, %v1201_v2 }
 0x3d9   : > { %4248 = vmatmul.mubr.msk.bf16.gmra.mrb[52].mxu1 %vm1050_vm1, %v1202_v30 }
 0x3da   : > { %4275 = vmatprep.mubr.msk.bf16.mxu1 %vm871_vm0, %v1547_v21  ;;  %v1814_v20 = vpop.permute.xlu1 %1813  ;;  %v5943_v21 = vpop.permute.xlu0 %2148 }
 0x3db   : > { %4285 = vmatprep.subr.bf16.mxu0 %v1814_v20 }
 0x3dc   : > { %4286 = vmatpush3.bf16.msra.mxu0 %v1814_v20 }
 0x3dd   : > { %4287 = vmatprep.subr.bf16.mxu0 %v1816_v45 }
 0x3de   : > { %v1818_v26 = vpop.permute.xlu1 %1817  ;;  %v5945_v1 = vpop.permute.xlu0 %2259 }
 0x3e0   : > { %4288 = vmatpush3.bf16.msra.mxu0 %v1816_v45 }
 0x3e1   : > { %4276 = vmatmul.mubr.msk.bf16.vlgmr.msra.gmra.mrb[56].mxu1 %vm871_vm0, %v1549_v12  ;;  %4289 = vmatprep.subr.bf16.mxu0 %v1818_v26 }
 0x3e2   : > { %4300 = vmatpush3.bf16.msra.mxu1 %v1905_v52  ;;  %4279 = vmatprep.mubr.msk.bf16.mxu1 %vm871_vm0, %v1551_v0  ;;  %v1907_v27 = vpop.permute.xlu1 %1906  ;;  %v2153_v63 = vpop.permute.xlu0 %2152 }
 0x3e3   : > { %4301 = vmatprep.subr.bf16.mxu1 %v1907_v27 }
 0x3e4   : > { %4290 = vmatpush3.bf16.msra.mxu0 %v1818_v26 }
 0x3e6   : > { %4302 = vmatpush3.bf16.msra.mxu1 %v1907_v27  ;;  %v5938_v30 = vpop.permute.xlu1 %2146 }
 0x3e7   : > { %4507 = vmatprep.subr.msk.bf16.mxu0 %vm871_vm0, %v5938_v30 }
 0x3e9   : > { %4280 = vmatmul.mubr.msk.bf16.gmra.mrb[60].mxu1 %vm871_vm0, %v1553_v25 }
 0x3ea   : > { %v1909_v11 = vpop.permute.xlu1 %1908 }
 0x3eb   : > { %4303 = vmatprep.subr.bf16.mxu1 %v1909_v11 }
 0x3ec   : > { %4304 = vmatpush3.bf16.msra.mxu1 %v1909_v11 }
 0x3ed   : > { %4305 = vmatprep.subr.bf16.mxu1 %v1911_v32 }
 0x3f0   : > { %4306 = vmatpush3.bf16.msra.mxu1 %v1911_v32 }
 0x3f1   : > { %4511 = vmatprep.subr.msk.bf16.mxu1 %vm871_vm0, %v5945_v1 }
 0x42f   : > { %v5949_v0 = vpop.f32.mrb[40].mxu1 }
 0x430   : > { %7149 = vst [vmem:[#allocation36_spill] sm:$0xff] %v5949_v0  ;;  %v5951_v38 = vpop.f32.mrb[41].mxu1 }
 0x431   : > { %7150 = vst [vmem:[#allocation37_spill] sm:$0xff] %v5951_v38  ;;  %v5953_v55 = vpop.f32.mrb[42].mxu1 }
 0x432   : > { %7151 = vst [vmem:[#allocation38_spill] sm:$0xff] %v5953_v55  ;;  %v5955_v7 = vpop.f32.mrb[43].mxu1 }
 0x433   : > { %7152 = vst [vmem:[#allocation39_spill] sm:$0xff] %v5955_v7  ;;  %v2151_v7 = vpop.permute.xlu1 %2150 }
 0x437   : > { %v6049_v24 = vpop.permute.xlu1 %2261 }
 0x46d   : > { %v5957_v36 = vpop.f32.mrb[24].mxu0 }
 0x46e   : > { %v5959_v45 = vpop.f32.mrb[25].mxu0  ;;  %v1661_v49 = vsel %vm1050_vm1, %v5957_v36, -inf }
 0x46f   : > { %1662 = vmax.xlane.f32.xlu0 %v1661_v49  ;;  %v5963_v23 = vpop.f32.mrb[26].mxu0  ;;  %v1655_v10 = vsel %vm1050_vm1, %v5959_v45, -inf }
 0x470   : > { %v5965_v9 = vpop.f32.mrb[27].mxu0  ;;  %v1664_v52 = vsel %vm1050_vm1, %v5963_v23, -inf }
 0x471   : > { %v1658_v50 = vsel %vm1050_vm1, %v5965_v9, -inf }
 0x472   : > { %1659 = vmax.xlane.f32.xlu1 %v1658_v50 }
 0x473   : > { %1656 = vmax.xlane.f32.xlu0 %v1655_v10 }
 0x477   : > { %v5973_v12 = vpop.f32.mrb[44].mxu1  ;;  %1665 = vmax.xlane.f32.xlu0 %v1664_v52 }
 0x478   : > { %7153 = vst [vmem:[#allocation40_spill] sm:$0xff] %v5973_v12  ;;  %v5975_v8 = vpop.f32.mrb[45].mxu1 }
 0x479   : > { %7154 = vst [vmem:[#allocation41_spill] sm:$0xff] %v5975_v8  ;;  %v5977_v25 = vpop.f32.mrb[46].mxu1 }
 0x47a   : > { %7155 = vst [vmem:[#allocation42_spill] sm:$0xff] %v5977_v25  ;;  %v5979_v2 = vpop.f32.mrb[47].mxu1 }
 0x47b   : > { %7156 = vst [vmem:[#allocation43_spill] sm:$0xff] %v5979_v2 }
 0x47f   : > { %v5981_v20 = vpop.f32.mrb[48].mxu1 }
 0x480   : > { %7157 = vst [vmem:[#allocation44_spill] sm:$0xff] %v5981_v20  ;;  %v5983_v26 = vpop.f32.mrb[49].mxu1 }
 0x481   : > { %7158 = vst [vmem:[#allocation45_spill] sm:$0xff] %v5983_v26  ;;  %v5985_v27 = vpop.f32.mrb[50].mxu1 }
 0x482   : > { %7159 = vst [vmem:[#allocation46_spill] sm:$0xff] %v5985_v27  ;;  %v5987_v32 = vpop.f32.mrb[51].mxu1 }
 0x483   : > { %7160 = vst [vmem:[#allocation47_spill] sm:$0xff] %v5987_v32 }
 0x4a6   : > { %v5989_v11 = vpop.f32.mrb[28].mxu0 }
 0x4a7   : > { %v5991_v49 = vpop.f32.mrb[29].mxu0  ;;  %v1673_v50 = vsel %vm1050_vm1, %v5989_v11, -inf }
 0x4a8   : > { %1674 = vmax.xlane.f32.xlu0 %v1673_v50  ;;  %v5995_v10 = vpop.f32.mrb[30].mxu0  ;;  %v1667_v52 = vsel %vm1050_vm1, %v5991_v49, -inf }
 0x4a9   : > { %1668 = vmax.xlane.f32.xlu1 %v1667_v52  ;;  %v5999_v20 = vpop.f32.mrb[31].mxu0  ;;  %v1676_v26 = vsel %vm1050_vm1, %v5995_v10, -inf }
 0x4aa   : > { %v1670_v27 = vsel %vm1050_vm1, %v5999_v20, -inf }
 0x4ac   : > { %v6003_v32 = vpop.f32.mrb[52].mxu1  ;;  %1671 = vmax.xlane.f32.xlu0 %v1670_v27 }
 0x4ad   : > { %7161 = vst [vmem:[#allocation48_spill] sm:$0xff] %v6003_v32  ;;  %v6007_v25 = vpop.f32.mrb[53].mxu1  ;;  %1677 = vmax.xlane.f32.xlu1 %v1676_v26 }
 0x4ae   : > { %7162 = vst [vmem:[#allocation49_spill] sm:$0xff] %v6007_v25  ;;  %v6009_v50 = vpop.f32.mrb[54].mxu1 }
 0x4af   : > { %7163 = vst [vmem:[#allocation50_spill] sm:$0xff] %v6009_v50  ;;  %v6011_v12 = vpop.f32.mrb[55].mxu1 }
 0x4b0   : > { %7164 = vst [vmem:[#allocation51_spill] sm:$0xff] %v6011_v12 }
 0x4b4   : > { %v6013_v2 = vpop.f32.mrb[56].mxu1 }
 0x4b5   : > { %v6015_v52 = vpop.f32.mrb[57].mxu1  ;;  %v1685_v8 = vsel %vm1050_vm1, %v6013_v2, -inf }
 0x4b6   : > { %v6019_v55 = vpop.f32.mrb[58].mxu1  ;;  %1686 = vmax.xlane.f32.xlu0 %v1685_v8  ;;  %v1679_v27 = vsel %vm1050_vm1, %v6015_v52, -inf }
 0x4b7   : > { %v6023_v32 = vpop.f32.mrb[59].mxu1  ;;  %1680 = vmax.xlane.f32.xlu1 %v1679_v27  ;;  %v1688_v50 = vsel %vm1050_vm1, %v6019_v55, -inf }
 0x4b8   : > { %v1682_v26 = vsel %vm1050_vm1, %v6023_v32, -inf }
 0x4ba   : > { %1683 = vmax.xlane.f32.xlu0 %v1682_v26 }
 0x4bb   : > { %1689 = vmax.xlane.f32.xlu1 %v1688_v50 }
 0x4bc   : > { %v6029_v12 = vpop.f32.mrb[60].mxu1 }
 0x4bd   : > { %v6031_v25 = vpop.f32.mrb[61].mxu1  ;;  %v1697_v50 = vsel %vm1050_vm1, %v6029_v12, -inf }
 0x4be   : > { %v6033_v0 = vpop.f32.mrb[62].mxu1  ;;  %v1691_v26 = vsel %vm1050_vm1, %v6031_v25, -inf }
 0x4bf   : > { %v6035_v8 = vpop.f32.mrb[63].mxu1  ;;  %v1700_v38 = vsel %vm1050_vm1, %v6033_v0, -inf }
 0x4c0   : > { %v1694_v27 = vsel %vm1050_vm1, %v6035_v8, -inf }
 0x4cc   : > { %2136 = vrot.lane.b32.xlu1 %v5596_v14, %s5223_s28 }
 0x4d0   : > { %2134 = vrot.lane.b32.xlu0 %v5568_v56, %s5223_s28 }
 0x4ef   : > { %1695 = vmax.xlane.f32.xlu0 %v1694_v27 }
 0x4f0   : > { %1698 = vmax.xlane.f32.xlu1 %v1697_v50 }
 0x4f4   : > { %1692 = vmax.xlane.f32.xlu1 %v1691_v26 }
 0x4f8   : > { %1701 = vmax.xlane.f32.xlu1 %v1700_v38 }
 0x4fc   : > { %v1663_v62 = vpop.xlane.xlu0 %1662 }
 0x4fd   : > { %v1705_v27 = vsub.f32 %v5957_v36, %v1663_v62  ;;  %v2170_v62 = vsel %vm871_vm0, %v5943_v21, 0 }
 0x4ff   : > { %v1660_v13 = vpop.xlane.xlu1 %1659  ;;  %v1723_v26 = vmul.f32 1.442695, %v1705_v27 }
 0x500   : > { %v1704_v44 = vsub.f32 %v5965_v9, %v1660_v13  ;;  %v1657_v37 = vpop.xlane.xlu0 %1656  ;;  %v2167_v13 = vsel %vm871_vm0, %v5938_v30, 0  ;;  %v2173_v30 = vsel %vm871_vm0, %v2151_v7, 0 }
 0x501   : > { %v1703_v50 = vsub.f32 %v5959_v45, %v1657_v37 }
 0x502   : > { %v1721_v53 = vmul.f32 1.442695, %v1704_v44 }
 0x503   : > { %v1719_v51 = vmul.f32 1.442695, %v1703_v50 }
 0x504   : > { %4737 = vpow2.f32 %v1721_v53  ;;  %v1666_v34 = vpop.xlane.xlu0 %1665 }
 0x505   : > { %4739 = vpow2.f32 %v1719_v51  ;;  %v1706_v22 = vsub.f32 %v5963_v23, %v1666_v34  ;;  %2263 = vrot.lane.b32.xlu0 %v5626_v43, %s5223_s28 }
 0x506   : > { %4741 = vpow2.f32 %v1723_v26 }
 0x507   : > { %v1725_v38 = vmul.f32 1.442695, %v1706_v22 }
 0x509   : > { %4743 = vpow2.f32 %v1725_v38  ;;  %2265 = vrot.lane.b32.xlu1 %v5651_v6, %s5223_s28  ;;  %2247 = vrot.lane.b32.xlu0 %v5570_v57, %s5223_s28 }
 0x50d   : > { %2249 = vrot.lane.b32.xlu1 %v5598_v15, %s5223_s28  ;;  %2138 = vrot.lane.b32.xlu0 %v5620_v39, %s5223_s28 }
 0x50e   : > { %v6065_v37 = vpop.eup %4737 }
 0x50f   : > { %v6067_v44 = vpop.eup %4739 }
 0x510   : > { %v1799_v51 = vpack.c.bf16 %v6065_v37, %v6067_v44  ;;  %v6075_v53 = vpop.eup %4741 }
 0x511   : > { %2140 = vrot.lane.b32.xlu1 %v5645_v3, %s5223_s28  ;;  %2251 = vrot.lane.b32.xlu0 %v5622_v40, %s5223_s28 }
 0x512   : > { %4291 = vmatprep.mubr.msk.bf16.mxu0 %vm1050_vm1, %v1799_v51 }
 0x513   : > { %v6078_v22 = vpop.eup %4743 }
 0x514   : > { %v1800_v34 = vpack.c.bf16 %v6078_v22, %v6075_v53 }
 0x515   : > { %2253 = vrot.lane.b32.xlu1 %v5647_v4, %s5223_s28  ;;  %2512 = vrot.lane.b32.xlu0 %v5664_v19, %s5223_s28 }
 0x516   : > { %4292 = vmatmul.mubr.msk.bf16.vlgmr.msra.gmra.mrb[32].mxu0 %vm1050_vm1, %v1800_v34 }
 0x517   : > { %4316 = vmatpush3.bf16.xpose.msra.mxu0 %v2167_v13 }
 0x518   : > { %4508 = vmatprep.subr.msk.bf16.mxu0 %vm871_vm0, %v5943_v21 }
 0x519   : > { %2514 = vrot.lane.b32.xlu1 %v5662_v18, %s5223_s28  ;;  %2516 = vrot.lane.b32.xlu0 %v5679_v29, %s5223_s28 }
 0x51d   : > { %2518 = vrot.lane.b32.xlu1 %v5677_v28, %s5223_s28  ;;  %2605 = vrot.lane.b32.xlu0 %v5692_v47, %s5223_s28 }
 0x51f   : > { %4318 = vmatpush3.bf16.xpose.msra.mxu0 %v2170_v62 }
 0x520   : > { %4509 = vmatprep.subr.msk.bf16.mxu0 %vm871_vm0, %v2151_v7 }
 0x521   : > { %2607 = vrot.lane.b32.xlu1 %v5689_v46, %s5223_s28  ;;  %2611 = vrot.lane.b32.xlu0 %v5695_v60, %s5223_s28 }
 0x525   : > { %2847 = vrot.lane.b32.xlu1 %v5572_v58, %s5224_s30  ;;  %2849 = vrot.lane.b32.xlu0 %v5600_v16, %s5224_s30  ;;  %v2176_v58 = vsel %vm871_vm0, %v2153_v63, 0 }
 0x527   : > { %4320 = vmatpush3.bf16.xpose.msra.mxu0 %v2173_v30 }
 0x528   : > { %4510 = vmatprep.subr.msk.bf16.mxu0 %vm871_vm0, %v2153_v63 }
 0x529   : > { %2609 = vrot.lane.b32.xlu1 %v5697_v61, %s5223_s28  ;;  %2960 = vrot.lane.b32.xlu0 %v5574_v59, %s5224_s30  ;;  %s5109_s28 = scalar_lea.vmem %s5108_s3, 4096 }
 0x52a   : > { %p5111_p13 = scmp.lt.s32.totalorder %s5109_s28, %s5103_s12 }
 0x52c   : > { %p5112_p3 = por %p5111_p13, %p5110_p8 }
 0x52d   : > { %2851 = vrot.lane.b32.xlu1 %v5624_v42, %s5224_s30  ;;  %2853 = vrot.lane.b32.xlu0 %v5649_v5, %s5224_s30 }
 0x52e   : > { %p5113_p7 = pnand %p5112_p3, %p5106_p4 }
 0x52f   : > { %4322 = vmatpush3.bf16.xpose.msra.mxu0 %v2176_v58 }
 0x531   : > { %2962 = vrot.lane.b32.xlu1 %v5602_v17, %s5224_s30 }
 0x535   : > { %v1675_v16 = vpop.xlane.xlu0 %1674 }
 0x536   : > { %v1709_v21 = vsub.f32 %v5989_v11, %v1675_v16  ;;  %v1669_v7 = vpop.xlane.xlu1 %1668 }
 0x537   : > { %v1707_v36 = vsub.f32 %v5991_v49, %v1669_v7 }
 0x538   : > { %v1731_v45 = vmul.f32 1.442695, %v1709_v21 }
 0x539   : > { %v1727_v59 = vmul.f32 1.442695, %v1707_v36  ;;  %v1672_v23 = vpop.xlane.xlu0 %1671 }
 0x53a   : > { %v1708_v42 = vsub.f32 %v5999_v20, %v1672_v23  ;;  %v1678_v9 = vpop.xlane.xlu1 %1677  ;;  %4745 = vpow2.f32 %v1731_v45 }
 0x53b   : > { %v1710_v5 = vsub.f32 %v5995_v10, %v1678_v9  ;;  %4747 = vpow2.f32 %v1727_v59  ;;  %v2280_v9 = vsel %vm871_vm0, %v5945_v1, 0 }
 0x53c   : > { %v1729_v63 = vmul.f32 1.442695, %v1708_v42 }
 0x53d   : > { %v1733_v27 = vmul.f32 1.442695, %v1710_v5  ;;  %v2283_v5 = vsel %vm871_vm0, %v6049_v24, 0 }
 0x53e   : > { %4749 = vpow2.f32 %v1729_v63 }
 0x53f   : > { %4751 = vpow2.f32 %v1733_v27 }
 0x543   : > { %v1687_v17 = vpop.xlane.xlu0 %1686 }
 0x544   : > { %v1713_v11 = vsub.f32 %v6013_v2, %v1687_v17  ;;  %v1681_v50 = vpop.xlane.xlu1 %1680  ;;  %v6129_v26 = vpop.eup %4745 }
 0x545   : > { %v1711_v49 = vsub.f32 %v6015_v52, %v1681_v50  ;;  %v6131_v51 = vpop.eup %4747 }
 0x546   : > { %v1739_v38 = vmul.f32 1.442695, %v1713_v11 }
 0x547   : > { %v1735_v20 = vmul.f32 1.442695, %v1711_v49  ;;  %v1684_v34 = vpop.xlane.xlu0 %1683 }
 0x548   : > { %v6133_v10 = vpop.eup %4749  ;;  %v1712_v13 = vsub.f32 %v6023_v32, %v1684_v34  ;;  %v1690_v62 = vpop.xlane.xlu1 %1689  ;;  %4753 = vpow2.f32 %v1739_v38 }
 0x549   : > { %v6136_v30 = vpop.eup %4751  ;;  %v1714_v58 = vsub.f32 %v6019_v55, %v1690_v62  ;;  %v1801_v2 = vpack.c.bf16 %v6133_v10, %v6131_v51  ;;  %4755 = vpow2.f32 %v1735_v20 }
 0x54a   : > { %v1737_v52 = vmul.f32 1.442695, %v1712_v13  ;;  %v1802_v16 = vpack.c.bf16 %v6136_v30, %v6129_v26 }
 0x54b   : > { %v1741_v21 = vmul.f32 1.442695, %v1714_v58  ;;  %v2135_v7 = vpop.permute.xlu0 %2134  ;;  %4295 = vmatprep.mubr.msk.bf16.mxu0 %vm1050_vm1, %v1801_v2 }
 0x54c   : > { %4757 = vpow2.f32 %v1737_v52  ;;  %4296 = vmatmul.mubr.msk.bf16.gmra.mrb[36].mxu0 %vm1050_vm1, %v1802_v16  ;;  %v2137_v55 = vpop.permute.xlu1 %2136 }
 0x54d   : > { %4759 = vpow2.f32 %v1741_v21  ;;  %4323 = vmatprep.mubr.msk.bf16.mxu0 %vm871_vm0, %v2135_v7 }
 0x552   : > { %v6146_v32 = vpop.eup %4753 }
 0x553   : > { %v6149_v36 = vpop.eup %4755 }
 0x554   : > { %4324 = vmatmul.mubr.msk.bf16.vlgmr.msra.gmra.mrb[40].mxu0 %vm871_vm0, %v2137_v55 }
 0x556   : > { %v6151_v45 = vpop.eup %4757 }
 0x557   : > { %v6153_v59 = vpop.eup %4759  ;;  %v1803_v23 = vpack.c.bf16 %v6151_v45, %v6149_v36 }
 0x558   : > { %v1804_v42 = vpack.c.bf16 %v6153_v59, %v6146_v32 }
 0x559   : > { %4307 = vmatprep.mubr.msk.bf16.mxu1 %vm1050_vm1, %v1803_v23 }
 0x55a   : > { %4308 = vmatmul.mubr.msk.bf16.vlgmr.msra.gmra.mrb[64].mxu1 %vm1050_vm1, %v1804_v42 }
 0x55b   : > { %4332 = vmatpush3.bf16.xpose.msra.mxu1 %v2280_v9 }
 0x55c   : > { %4512 = vmatprep.subr.msk.bf16.mxu1 %vm871_vm0, %v6049_v24 }
 0x563   : > { %4334 = vmatpush3.bf16.xpose.msra.mxu1 %v2283_v5 }
 0x57c   : > { %v1696_v63 = vpop.xlane.xlu0 %1695 }
 0x57d   : > { %v1716_v27 = vsub.f32 %v6035_v8, %v1696_v63  ;;  %v1699_v17 = vpop.xlane.xlu1 %1698 }
 0x57e   : > { %v1717_v49 = vsub.f32 %v6029_v12, %v1699_v17 }
 0x57f   : > { %v1745_v50 = vmul.f32 1.442695, %v1716_v27 }
 0x580   : > { %v2264_v11 = vpop.permute.xlu0 %2263  ;;  %v1747_v24 = vmul.f32 1.442695, %v1717_v49 }
 0x581   : > { %4513 = vmatprep.subr.msk.bf16.mxu1 %vm871_vm0, %v2264_v11  ;;  %v1693_v38 = vpop.xlane.xlu1 %1692  ;;  %v2286_v1 = vsel %vm871_vm0, %v2264_v11, 0  ;;  %4761 = vpow2.f32 %v1745_v50 }
 0x582   : > { %v1715_v20 = vsub.f32 %v6031_v25, %v1693_v38  ;;  %4336 = vmatpush3.bf16.xpose.msra.mxu1 %v2286_v1 }
 0x584   : > { %v1743_v34 = vmul.f32 1.442695, %v1715_v20  ;;  %v2248_v13 = vpop.permute.xlu0 %2247 }
 0x585   : > { %v1702_v62 = vpop.xlane.xlu1 %1701 }
 0x586   : > { %4763 = vpow2.f32 %v1743_v34  ;;  %v1718_v8 = vsub.f32 %v6033_v0, %v1702_v62 }
 0x587   : > { %4765 = vpow2.f32 %v1747_v24 }
 0x588   : > { %v1749_v58 = vmul.f32 1.442695, %v1718_v8  ;;  %v2139_v2 = vpop.permute.xlu0 %2138 }
 0x589   : > { %4327 = vmatprep.mubr.msk.bf16.mxu0 %vm871_vm0, %v2139_v2  ;;  %v2266_v12 = vpop.permute.xlu1 %2265 }
 0x58a   : > { %4767 = vpow2.f32 %v1749_v58  ;;  %4514 = vmatprep.subr.msk.bf16.mxu1 %vm871_vm0, %v2266_v12  ;;  %v2289_v25 = vsel %vm871_vm0, %v2266_v12, 0 }
 0x58b   : > { %4338 = vmatpush3.bf16.xpose.msra.mxu1 %v2289_v25  ;;  %v6176_v21 = vpop.eup %4761 }
 0x58c   : > { %v2252_v52 = vpop.permute.xlu0 %2251  ;;  %7165 = vst [vmem:[#allocation52_spill] sm:$0xff] %v6176_v21 }
 0x58d   : > { %v2250_v16 = vpop.permute.xlu1 %2249 }
 0x590   : > { %v6178_v7 = vpop.eup %4763  ;;  %v2513_v55 = vpop.permute.xlu0 %2512 }
 0x591   : > { %4347 = vmatprep.subr.bf16.mxu0 %v2513_v55  ;;  %v2141_v0 = vpop.permute.xlu1 %2140  ;;  %v1805_v23 = vpack.c.bf16 %v6176_v21, %v6178_v7  ;;  %v6183_v42 = vpop.eup %4765 }
 0x592   : > { %4328 = vmatmul.mubr.msk.bf16.gmra.mrb[44].mxu0 %vm871_vm0, %v2141_v0  ;;  %7166 = vst [vmem:[#allocation53_spill] sm:$0xff] %v6183_v42 }
 0x593   : > { %4348 = vmatpush3.bf16.msra.mxu0 %v2513_v55  ;;  %4311 = vmatprep.mubr.msk.bf16.mxu1 %vm1050_vm1, %v1805_v23 }
 0x594   : > { %v6186_v9 = vpop.eup %4767  ;;  %v2517_v5 = vpop.permute.xlu0 %2516 }
 0x595   : > { %7167 = vst [vmem:[#allocation54_spill] sm:$0xff] %v6186_v9  ;;  %v2254_v63 = vpop.permute.xlu1 %2253  ;;  %v1806_v27 = vpack.c.bf16 %v6186_v9, %v6183_v42 }
 0x597   : > { %4312 = vmatmul.mubr.msk.bf16.gmra.mrb[68].mxu1 %vm1050_vm1, %v1806_v27 }
 0x598   : > { %v2606_v17 = vpop.permute.xlu0 %2605  ;;  %4339 = vmatprep.mubr.msk.bf16.mxu1 %vm871_vm0, %v2248_v13 }
 0x599   : > { %4363 = vmatprep.subr.bf16.mxu1 %v2606_v17  ;;  %v2515_v11 = vpop.permute.xlu1 %2514 }
 0x59a   : > { %4349 = vmatprep.subr.bf16.mxu0 %v2515_v11 }
 0x59b   : > { %4350 = vmatpush3.bf16.msra.mxu0 %v2515_v11 }
 0x59c   : > { %4351 = vmatprep.subr.bf16.mxu0 %v2517_v5  ;;  %v2612_v38 = vpop.permute.xlu0 %2611 }
 0x59d   : > { %v2519_v50 = vpop.permute.xlu1 %2518 }
 0x59f   : > { %4340 = vmatmul.mubr.msk.bf16.vlgmr.msra.gmra.mrb[72].mxu1 %vm871_vm0, %v2250_v16  ;;  %4352 = vmatpush3.bf16.msra.mxu0 %v2517_v5 }
 0x5a0   : > { %4364 = vmatpush3.bf16.msra.mxu1 %v2606_v17  ;;  %4343 = vmatprep.mubr.msk.bf16.mxu1 %vm871_vm0, %v2252_v52  ;;  %v6199_v20 = vpop.permute.xlu0 %2849 }
 0x5a1   : > { %4353 = vmatprep.subr.bf16.mxu0 %v2519_v50  ;;  %v2608_v49 = vpop.permute.xlu1 %2607 }
 0x5a2   : > { %4365 = vmatprep.subr.bf16.mxu1 %v2608_v49 }
 0x5a3   : > { %4354 = vmatpush3.bf16.msra.mxu0 %v2519_v50 }
 0x5a4   : > { %4366 = vmatpush3.bf16.msra.mxu1 %v2608_v49  ;;  %v6201_v13 = vpop.permute.xlu0 %2960 }
 0x5a5   : > { %v6194_v1 = vpop.permute.xlu1 %2847 }
 0x5a6   : > { %4515 = vmatprep.subr.msk.bf16.mxu0 %vm871_vm0, %v6194_v1 }
 0x5a7   : > { %4344 = vmatmul.mubr.msk.bf16.gmra.mrb[76].mxu1 %vm871_vm0, %v2254_v63 }
 0x5a9   : > { %v2610_v34 = vpop.permute.xlu1 %2609 }
 0x5aa   : > { %4367 = vmatprep.subr.bf16.mxu1 %v2610_v34 }
 0x5ab   : > { %4368 = vmatpush3.bf16.msra.mxu1 %v2610_v34 }
 0x5ac   : > { %4369 = vmatprep.subr.bf16.mxu1 %v2612_v38 }
 0x5af   : > { %4370 = vmatpush3.bf16.msra.mxu1 %v2612_v38 }
 0x5b0   : > { %4519 = vmatprep.subr.msk.bf16.mxu1 %vm871_vm0, %v6201_v13 }
 0x5e9   : > { %v6205_v24 = vpop.f32.mrb[32].mxu0 }
 0x5ea   : > { %7168 = vst [vmem:[#allocation55_spill] sm:$0xff] %v6205_v24  ;;  %v6207_v62 = vpop.f32.mrb[33].mxu0 }
 0x5eb   : > { %7169 = vst [vmem:[#allocation56_spill] sm:$0xff] %v6207_v62  ;;  %v6209_v8 = vpop.f32.mrb[34].mxu0 }
 0x5ec   : > { %7170 = vst [vmem:[#allocation57_spill] sm:$0xff] %v6209_v8  ;;  %v6211_v58 = vpop.f32.mrb[35].mxu0 }
 0x5ed   : > { %7171 = vst [vmem:[#allocation58_spill] sm:$0xff] %v6211_v58  ;;  %v2854_v58 = vpop.permute.xlu0 %2853 }
 0x61f   : > { %v6213_v2 = vpop.f32.mrb[36].mxu0 }
 0x620   : > { %7172 = vst [vmem:[#allocation59_spill] sm:$0xff] %v6213_v2  ;;  %v6215_v12 = vpop.f32.mrb[37].mxu0 }
 0x621   : > { %7173 = vst [vmem:[#allocation60_spill] sm:$0xff] %v6215_v12  ;;  %v6217_v25 = vpop.f32.mrb[38].mxu0 }
 0x622   : > { %7174 = vst [vmem:[#allocation61_spill] sm:$0xff] %v6217_v25  ;;  %v6219_v52 = vpop.f32.mrb[39].mxu0 }
 0x623   : > { %7175 = vst [vmem:[#allocation62_spill] sm:$0xff] %v6219_v52 }
 0x627   : > { %v6221_v16 = vpop.f32.mrb[40].mxu0 }
 0x628   : > { %v6223_v55 = vpop.f32.mrb[41].mxu0  ;;  %v2362_v0 = vsel %vm1050_vm1, %v6221_v16, -inf }
 0x629   : > { %2363 = vmax.xlane.f32.xlu0 %v2362_v0  ;;  %v6227_v23 = vpop.f32.mrb[42].mxu0  ;;  %v2356_v27 = vsel %vm1050_vm1, %v6223_v55, -inf }
 0x62a   : > { %v2215_v5 = vpop.f32.mrb[43].mxu0  ;;  %v2365_v38 = vsel %vm1050_vm1, %v6227_v23, -inf }
 0x62b   : > { %v2359_v63 = vsel %vm1050_vm1, %v2215_v5, -inf }
 0x62c   : > { %2360 = vmax.xlane.f32.xlu1 %v2359_v63 }
 0x62d   : > { %v6232_v17 = vpop.f32.mrb[64].mxu1  ;;  %2357 = vmax.xlane.f32.xlu0 %v2356_v27 }
 0x62e   : > { %7176 = vst [vmem:[#allocation63_spill] sm:$0xff] %v6232_v17  ;;  %v6234_v11 = vpop.f32.mrb[65].mxu1 }
 0x62f   : > { %7177 = vst [vmem:[#allocation64_spill] sm:$0xff] %v6234_v11  ;;  %v6236_v50 = vpop.f32.mrb[66].mxu1 }
 0x630   : > { %7178 = vst [vmem:[#allocation65_spill] sm:$0xff] %v6236_v50  ;;  %v6238_v49 = vpop.f32.mrb[67].mxu1 }
 0x631   : > { %7179 = vst [vmem:[#allocation66_spill] sm:$0xff] %v6238_v49  ;;  %2366 = vmax.xlane.f32.xlu0 %v2365_v38 }
 0x665   : > { %v6242_v34 = vpop.f32.mrb[44].mxu0 }
 0x666   : > { %v6244_v0 = vpop.f32.mrb[45].mxu0  ;;  %v2374_v63 = vsel %vm1050_vm1, %v6242_v34, -inf }
 0x667   : > { %2375 = vmax.xlane.f32.xlu0 %v2374_v63  ;;  %v6248_v17 = vpop.f32.mrb[46].mxu0  ;;  %v2368_v27 = vsel %vm1050_vm1, %v6244_v0, -inf }
 0x668   : > { %2369 = vmax.xlane.f32.xlu1 %v2368_v27  ;;  %v6252_v50 = vpop.f32.mrb[47].mxu0  ;;  %v2377_v25 = vsel %vm1050_vm1, %v6248_v17, -inf }
 0x669   : > { %v2371_v49 = vsel %vm1050_vm1, %v6252_v50, -inf }
 0x66a   : > { %v6256_v38 = vpop.f32.mrb[68].mxu1 }
 0x66b   : > { %7180 = vst [vmem:[#allocation67_spill] sm:$0xff] %v6256_v38  ;;  %v6258_v11 = vpop.f32.mrb[69].mxu1  ;;  %2372 = vmax.xlane.f32.xlu0 %v2371_v49 }
 0x66c   : > { %7181 = vst [vmem:[#allocation68_spill] sm:$0xff] %v6258_v11  ;;  %v6262_v63 = vpop.f32.mrb[70].mxu1  ;;  %2378 = vmax.xlane.f32.xlu1 %v2377_v25 }
 0x66d   : > { %7182 = vst [vmem:[#allocation69_spill] sm:$0xff] %v6262_v63  ;;  %v6264_v2 = vpop.f32.mrb[71].mxu1 }
 0x66e   : > { %7183 = vst [vmem:[#allocation70_spill] sm:$0xff] %v6264_v2 }
 0x672   : > { %v6266_v52 = vpop.f32.mrb[72].mxu1 }
 0x673   : > { %v6268_v27 = vpop.f32.mrb[73].mxu1  ;;  %v2386_v12 = vsel %vm1050_vm1, %v6266_v52, -inf }
 0x674   : > { %v6272_v8 = vpop.f32.mrb[74].mxu1  ;;  %2387 = vmax.xlane.f32.xlu0 %v2386_v12  ;;  %v2380_v49 = vsel %vm1050_vm1, %v6268_v27, -inf }
 0x675   : > { %v6276_v38 = vpop.f32.mrb[75].mxu1  ;;  %2381 = vmax.xlane.f32.xlu1 %v2380_v49  ;;  %v2389_v63 = vsel %vm1050_vm1, %v6272_v8, -inf }
 0x676   : > { %v2383_v25 = vsel %vm1050_vm1, %v6276_v38, -inf }
 0x678   : > { %2384 = vmax.xlane.f32.xlu0 %v2383_v25  ;;  %v2852_v25 = vpop.permute.xlu1 %2851 }
 0x679   : > { %2390 = vmax.xlane.f32.xlu1 %v2389_v63 }
 0x67a   : > { %v6282_v2 = vpop.f32.mrb[76].mxu1 }
 0x67b   : > { %v6284_v11 = vpop.f32.mrb[77].mxu1  ;;  %v2398_v63 = vsel %vm1050_vm1, %v6282_v2, -inf }
 0x67c   : > { %v6286_v24 = vpop.f32.mrb[78].mxu1  ;;  %v2392_v62 = vsel %vm1050_vm1, %v6284_v11, -inf  ;;  %v6300_v31 = vpop.permute.xlu1 %2962 }
 0x67d   : > { %v6288_v12 = vpop.f32.mrb[79].mxu1 }
 0x67e   : > { %v2395_v49 = vsel %vm1050_vm1, %v6288_v12, -inf }
 0x68a   : > { %2837 = vrot.lane.b32.xlu1 %v5596_v14, %s5224_s30  ;;  %v2401_v14 = vsel %vm1050_vm1, %v6286_v24, -inf }
 0x68e   : > { %2835 = vrot.lane.b32.xlu0 %v5568_v56, %s5224_s30 }
 0x6ad   : > { %2396 = vmax.xlane.f32.xlu0 %v2395_v49 }
 0x6ae   : > { %2399 = vmax.xlane.f32.xlu1 %v2398_v63 }
 0x6b2   : > { %2393 = vmax.xlane.f32.xlu1 %v2392_v62 }
 0x6b6   : > { %v2364_v56 = vpop.xlane.xlu0 %2363  ;;  %2402 = vmax.xlane.f32.xlu1 %v2401_v14 }
 0x6b7   : > { %v2406_v49 = vsub.f32 %v6221_v16, %v2364_v56 }
 0x6b9   : > { %v2361_v41 = vpop.xlane.xlu1 %2360  ;;  %v2424_v9 = vmul.f32 1.442695, %v2406_v49 }
 0x6ba   : > { %v2405_v35 = vsub.f32 %v2215_v5, %v2361_v41  ;;  %v2358_v33 = vpop.xlane.xlu0 %2357 }
 0x6bb   : > { %v2404_v63 = vsub.f32 %v6223_v55, %v2358_v33 }
 0x6bc   : > { %v2422_v54 = vmul.f32 1.442695, %v2405_v35 }
 0x6bd   : > { %v2420_v48 = vmul.f32 1.442695, %v2404_v63 }
 0x6be   : > { %4769 = vpow2.f32 %v2422_v54  ;;  %v2367_v42 = vpop.xlane.xlu0 %2366 }
 0x6bf   : > { %4771 = vpow2.f32 %v2420_v48  ;;  %v2407_v62 = vsub.f32 %v6227_v23, %v2367_v42 }
 0x6c0   : > { %4773 = vpow2.f32 %v2424_v9 }
 0x6c1   : > { %v2426_v21 = vmul.f32 1.442695, %v2407_v62 }
 0x6c3   : > { %4775 = vpow2.f32 %v2426_v21  ;;  %2964 = vrot.lane.b32.xlu0 %v5626_v43, %s5224_s30 }
 0x6c7   : > { %2839 = vrot.lane.b32.xlu1 %v5620_v39, %s5224_s30  ;;  %2841 = vrot.lane.b32.xlu0 %v5645_v3, %s5224_s30 }
 0x6c8   : > { %v6313_v33 = vpop.eup %4769 }
 0x6c9   : > { %v6315_v35 = vpop.eup %4771 }
 0x6ca   : > { %v2500_v48 = vpack.c.bf16 %v6313_v33, %v6315_v35  ;;  %v6323_v43 = vpop.eup %4773 }
 0x6cb   : > { %2966 = vrot.lane.b32.xlu1 %v5651_v6, %s5224_s30  ;;  %2948 = vrot.lane.b32.xlu0 %v5570_v57, %s5224_s30  ;;  %v2868_v57 = vsel %vm871_vm0, %v6194_v1, 0 }
 0x6cc   : > { %4355 = vmatprep.mubr.msk.bf16.mxu0 %vm1050_vm1, %v2500_v48 }
 0x6cd   : > { %v6326_v39 = vpop.eup %4775 }
 0x6ce   : > { %v2501_v3 = vpack.c.bf16 %v6326_v39, %v6323_v43 }
 0x6cf   : > { %2950 = vrot.lane.b32.xlu1 %v5598_v15, %s5224_s30  ;;  %2952 = vrot.lane.b32.xlu0 %v5622_v40, %s5224_s30  ;;  %v2871_v15 = vsel %vm871_vm0, %v6199_v20, 0  ;;  %v2874_v40 = vsel %vm871_vm0, %v2852_v25, 0 }
 0x6d0   : > { %4356 = vmatmul.mubr.msk.bf16.vlgmr.msra.gmra.mrb[48].mxu0 %vm1050_vm1, %v2501_v3 }
 0x6d1   : > { %4380 = vmatpush3.bf16.xpose.msra.mxu0 %v2868_v57 }
 0x6d2   : > { %4516 = vmatprep.subr.msk.bf16.mxu0 %vm871_vm0, %v6199_v20 }
 0x6d3   : > { %2954 = vrot.lane.b32.xlu1 %v5647_v4, %s5224_s30  ;;  %3213 = vrot.lane.b32.xlu0 %v5664_v19, %s5224_s30  ;;  %v2877_v4 = vsel %vm871_vm0, %v2854_v58, 0 }
 0x6d7   : > { %3215 = vrot.lane.b32.xlu1 %v5662_v18, %s5224_s30  ;;  %3217 = vrot.lane.b32.xlu0 %v5679_v29, %s5224_s30 }
 0x6d9   : > { %4382 = vmatpush3.bf16.xpose.msra.mxu0 %v2871_v15 }
 0x6da   : > { %4517 = vmatprep.subr.msk.bf16.mxu0 %vm871_vm0, %v2852_v25 }
 0x6db   : > { %3219 = vrot.lane.b32.xlu1 %v5677_v28, %s5224_s30  ;;  %3306 = vrot.lane.b32.xlu0 %v5692_v47, %s5224_s30 }
 0x6df   : > { %3308 = vrot.lane.b32.xlu0 %v5689_v46, %s5224_s30 }
 0x6e1   : > { %4384 = vmatpush3.bf16.xpose.msra.mxu0 %v2874_v40 }
 0x6e2   : > { %4518 = vmatprep.subr.msk.bf16.mxu0 %vm871_vm0, %v2854_v58 }
 0x6e9   : > { %4386 = vmatpush3.bf16.xpose.msra.mxu0 %v2877_v4  ;;  %v2981_v4 = vsel %vm871_vm0, %v6201_v13, 0 }
 0x6f4   : > { %v2376_v6 = vpop.xlane.xlu0 %2375 }
 0x6f5   : > { %v2410_v18 = vsub.f32 %v6242_v34, %v2376_v6  ;;  %v2370_v19 = vpop.xlane.xlu1 %2369  ;;  %v2984_v6 = vsel %vm871_vm0, %v6300_v31, 0 }
 0x6f6   : > { %v2408_v28 = vsub.f32 %v6244_v0, %v2370_v19 }
 0x6f7   : > { %v2432_v29 = vmul.f32 1.442695, %v2410_v18 }
 0x6f8   : > { %v2428_v54 = vmul.f32 1.442695, %v2408_v28  ;;  %v2373_v47 = vpop.xlane.xlu0 %2372 }
 0x6f9   : > { %v2409_v41 = vsub.f32 %v6252_v50, %v2373_v47  ;;  %v2379_v46 = vpop.xlane.xlu1 %2378  ;;  %4777 = vpow2.f32 %v2432_v29 }
 0x6fa   : > { %v2411_v21 = vsub.f32 %v6248_v17, %v2379_v46  ;;  %4779 = vpow2.f32 %v2428_v54 }
 0x6fb   : > { %v2430_v42 = vmul.f32 1.442695, %v2409_v41 }
 0x6fc   : > { %v2434_v9 = vmul.f32 1.442695, %v2411_v21 }
 0x6fd   : > { %4781 = vpow2.f32 %v2430_v42 }
 0x6fe   : > { %4783 = vpow2.f32 %v2434_v9 }
 0x701   : > { %v2388_v1 = vpop.xlane.xlu0 %2387 }
 0x702   : > { %v2414_v20 = vsub.f32 %v6266_v52, %v2388_v1  ;;  %v2382_v58 = vpop.xlane.xlu1 %2381 }
 0x703   : > { %v2412_v16 = vsub.f32 %v6268_v27, %v2382_v58  ;;  %v6365_v23 = vpop.eup %4777 }
 0x704   : > { %v2440_v55 = vmul.f32 1.442695, %v2414_v20  ;;  %v6367_v34 = vpop.eup %4779 }
 0x705   : > { %v2436_v5 = vmul.f32 1.442695, %v2412_v16  ;;  %v2385_v50 = vpop.xlane.xlu0 %2384 }
 0x706   : > { %v2413_v17 = vsub.f32 %v6276_v38, %v2385_v50  ;;  %v2391_v0 = vpop.xlane.xlu1 %2390  ;;  %4785 = vpow2.f32 %v2440_v55 }
 0x707   : > { %v6370_v25 = vpop.eup %4781  ;;  %v2415_v14 = vsub.f32 %v6272_v8, %v2391_v0  ;;  %4787 = vpow2.f32 %v2436_v5 }
 0x708   : > { %v6373_v56 = vpop.eup %4783  ;;  %v2438_v52 = vmul.f32 1.442695, %v2413_v17  ;;  %v2502_v27 = vpack.c.bf16 %v6370_v25, %v6367_v34 }
 0x709   : > { %v2442_v49 = vmul.f32 1.442695, %v2415_v14  ;;  %v2503_v63 = vpack.c.bf16 %v6373_v56, %v6365_v23  ;;  %v2836_v38 = vpop.permute.xlu0 %2835 }
 0x70a   : > { %4789 = vpow2.f32 %v2438_v52  ;;  %4359 = vmatprep.mubr.msk.bf16.mxu0 %vm1050_vm1, %v2502_v27  ;;  %v2838_v62 = vpop.permute.xlu1 %2837 }
 0x70b   : > { %4791 = vpow2.f32 %v2442_v49  ;;  %4360 = vmatmul.mubr.msk.bf16.gmra.mrb[52].mxu0 %vm1050_vm1, %v2503_v63 }
 0x70c   : > { %4387 = vmatprep.mubr.msk.bf16.mxu0 %vm871_vm0, %v2836_v38 }
 0x710   : > { %v6382_v8 = vpop.eup %4785 }
 0x711   : > { %v6384_v48 = vpop.eup %4787 }
 0x713   : > { %4388 = vmatmul.mubr.msk.bf16.vlgmr.msra.gmra.mrb[56].mxu0 %vm871_vm0, %v2838_v62 }
 0x714   : > { %v6387_v3 = vpop.eup %4789 }
 0x715   : > { %v6389_v57 = vpop.eup %4791  ;;  %v2504_v15 = vpack.c.bf16 %v6387_v3, %v6384_v48 }
 0x716   : > { %v2505_v40 = vpack.c.bf16 %v6389_v57, %v6382_v8 }
 0x717   : > { %4371 = vmatprep.mubr.msk.bf16.mxu1 %vm1050_vm1, %v2504_v15 }
 0x718   : > { %4372 = vmatmul.mubr.msk.bf16.vlgmr.msra.gmra.mrb[80].mxu1 %vm1050_vm1, %v2505_v40 }
 0x719   : > { %4396 = vmatpush3.bf16.xpose.msra.mxu1 %v2981_v4 }
 0x71a   : > { %4520 = vmatprep.subr.msk.bf16.mxu1 %vm871_vm0, %v6300_v31 }
 0x721   : > { %4398 = vmatpush3.bf16.xpose.msra.mxu1 %v2984_v6 }
 0x73a   : > { %v2397_v18 = vpop.xlane.xlu0 %2396 }
 0x73b   : > { %v2417_v19 = vsub.f32 %v6288_v12, %v2397_v18  ;;  %v2400_v28 = vpop.xlane.xlu1 %2399 }
 0x73c   : > { %v2418_v47 = vsub.f32 %v6282_v2, %v2400_v28 }
 0x73d   : > { %v2446_v54 = vmul.f32 1.442695, %v2417_v19 }
 0x73e   : > { %v2965_v29 = vpop.permute.xlu0 %2964  ;;  %v2448_v31 = vmul.f32 1.442695, %v2418_v47 }
 0x73f   : > { %4521 = vmatprep.subr.msk.bf16.mxu1 %vm871_vm0, %v2965_v29  ;;  %v2394_v41 = vpop.xlane.xlu1 %2393  ;;  %v2987_v13 = vsel %vm871_vm0, %v2965_v29, 0  ;;  %4793 = vpow2.f32 %v2446_v54 }
 0x740   : > { %v2416_v46 = vsub.f32 %v6284_v11, %v2394_v41  ;;  %4400 = vmatpush3.bf16.xpose.msra.mxu1 %v2987_v13 }
 0x742   : > { %v2444_v21 = vmul.f32 1.442695, %v2416_v46  ;;  %v2842_v42 = vpop.permute.xlu0 %2841 }
 0x743   : > { %v2403_v9 = vpop.xlane.xlu1 %2402 }
 0x744   : > { %4795 = vpow2.f32 %v2444_v21  ;;  %v2419_v12 = vsub.f32 %v6286_v24, %v2403_v9 }
 0x745   : > { %4797 = vpow2.f32 %v2448_v31 }
 0x746   : > { %v2450_v1 = vmul.f32 1.442695, %v2419_v12  ;;  %v2949_v20 = vpop.permute.xlu0 %2948 }
 0x747   : > { %v2840_v2 = vpop.permute.xlu1 %2839 }
 0x748   : > { %4799 = vpow2.f32 %v2450_v1  ;;  %4391 = vmatprep.mubr.msk.bf16.mxu0 %vm871_vm0, %v2840_v2 }
 0x749   : > { %4392 = vmatmul.mubr.msk.bf16.gmra.mrb[60].mxu0 %vm871_vm0, %v2842_v42  ;;  %v6413_v55 = vpop.eup %4793 }
 0x74a   : > { %v2953_v58 = vpop.permute.xlu0 %2952 }
 0x74b   : > { %v2967_v11 = vpop.permute.xlu1 %2966 }
 0x74c   : > { %4522 = vmatprep.subr.msk.bf16.mxu1 %vm871_vm0, %v2967_v11  ;;  %v2990_v16 = vsel %vm871_vm0, %v2967_v11, 0 }
 0x74d   : > { %4402 = vmatpush3.bf16.xpose.msra.mxu1 %v2990_v16 }
 0x74e   : > { %v6415_v5 = vpop.eup %4795  ;;  %v3214_v24 = vpop.permute.xlu0 %3213 }
 0x74f   : > { %4411 = vmatprep.subr.bf16.mxu0 %v3214_v24  ;;  %v2951_v50 = vpop.permute.xlu1 %2950  ;;  %v2506_v17 = vpack.c.bf16 %v6413_v55, %v6415_v5  ;;  %v6419_v0 = vpop.eup %4797 }
 0x750   : > { %4412 = vmatpush3.bf16.msra.mxu0 %v3214_v24 }
 0x751   : > { %4375 = vmatprep.mubr.msk.bf16.mxu1 %vm1050_vm1, %v2506_v17 }
 0x752   : > { %v6422_v14 = vpop.eup %4799  ;;  %v3218_v52 = vpop.permute.xlu0 %3217 }
 0x753   : > { %v2955_v27 = vpop.permute.xlu1 %2954  ;;  %v2507_v49 = vpack.c.bf16 %v6422_v14, %v6419_v0 }
 0x755   : > { %4376 = vmatmul.mubr.msk.bf16.gmra.mrb[84].mxu1 %vm1050_vm1, %v2507_v49 }
 0x756   : > { %v3307_v63 = vpop.permute.xlu0 %3306  ;;  %4403 = vmatprep.mubr.msk.bf16.mxu1 %vm871_vm0, %v2949_v20 }
 0x757   : > { %4427 = vmatprep.subr.bf16.mxu1 %v3307_v63  ;;  %v3216_v38 = vpop.permute.xlu1 %3215 }
 0x758   : > { %4413 = vmatprep.subr.bf16.mxu0 %v3216_v38 }
 0x759   : > { %4414 = vmatpush3.bf16.msra.mxu0 %v3216_v38 }
 0x75a   : > { %4415 = vmatprep.subr.bf16.mxu0 %v3218_v52  ;;  %v3309_v62 = vpop.permute.xlu0 %3308 }
 0x75b   : > { %v3220_v15 = vpop.permute.xlu1 %3219 }
 0x75d   : > { %4404 = vmatmul.mubr.msk.bf16.vlgmr.msra.gmra.mrb[88].mxu1 %vm871_vm0, %v2951_v50  ;;  %4416 = vmatpush3.bf16.msra.mxu0 %v3218_v52 }
 0x75e   : > { %4428 = vmatpush3.bf16.msra.mxu1 %v3307_v63  ;;  %4407 = vmatprep.mubr.msk.bf16.mxu1 %vm871_vm0, %v2953_v58 }
 0x75f   : > { %4417 = vmatprep.subr.bf16.mxu0 %v3220_v15  ;;  %4429 = vmatprep.subr.bf16.mxu1 %v3309_v62 }
 0x761   : > { %4418 = vmatpush3.bf16.msra.mxu0 %v3220_v15 }
 0x762   : > { %4430 = vmatpush3.bf16.msra.mxu1 %v3309_v62 }
 0x765   : > { %4408 = vmatmul.mubr.msk.bf16.gmra.mrb[92].mxu1 %vm871_vm0, %v2955_v27 }
 0x7a3   : > { %v6431_v40 = vpop.f32.mrb[48].mxu0 }
 0x7a4   : > { %v6433_v4 = vpop.f32.mrb[49].mxu0 }
 0x7a5   : > { %v6435_v6 = vpop.f32.mrb[50].mxu0 }
 0x7a6   : > { %v6437_v18 = vpop.f32.mrb[51].mxu0 }
 0x7de   : > { %v6439_v19 = vpop.f32.mrb[52].mxu0 }
 0x7df   : > { %v6441_v28 = vpop.f32.mrb[53].mxu0 }
 0x7e0   : > { %v6443_v29 = vpop.f32.mrb[54].mxu0 }
 0x7e1   : > { %7184 = vst [vmem:[#allocation71_spill] sm:$0xff] %v6443_v29  ;;  %v6445_v54 = vpop.f32.mrb[55].mxu0 }
 0x7e6   : > { %v6447_v47 = vpop.f32.mrb[56].mxu0 }
 0x7e7   : > { %v6449_v41 = vpop.f32.mrb[57].mxu0  ;;  %v3063_v13 = vsel %vm1050_vm1, %v6447_v47, -inf }
 0x7e8   : > { %3064 = vmax.xlane.f32.xlu0 %v3063_v13  ;;  %v6453_v46 = vpop.f32.mrb[58].mxu0  ;;  %v3057_v9 = vsel %vm1050_vm1, %v6449_v41, -inf }
 0x7e9   : > { %v6455_v21 = vpop.f32.mrb[59].mxu0  ;;  %v3066_v2 = vsel %vm1050_vm1, %v6453_v46, -inf }
 0x7ea   : > { %v3060_v42 = vsel %vm1050_vm1, %v6455_v21, -inf }
 0x7eb   : > { %v6459_v31 = vpop.f32.mrb[80].mxu1  ;;  %3061 = vmax.xlane.f32.xlu1 %v3060_v42 }
 0x7ec   : > { %v6463_v12 = vpop.f32.mrb[81].mxu1  ;;  %3058 = vmax.xlane.f32.xlu0 %v3057_v9 }
 0x7ed   : > { %v6465_v1 = vpop.f32.mrb[82].mxu1 }
 0x7ee   : > { %v6467_v20 = vpop.f32.mrb[83].mxu1 }
 0x7f0   : > { %3067 = vmax.xlane.f32.xlu0 %v3066_v2 }
 0x81c   : > { %v6471_v58 = vpop.f32.mrb[60].mxu0 }
 0x81d   : > { %v6473_v11 = vpop.f32.mrb[61].mxu0  ;;  %v3075_v16 = vsel %vm1050_vm1, %v6471_v58, -inf }
 0x81e   : > { %3076 = vmax.xlane.f32.xlu0 %v3075_v16  ;;  %v6477_v24 = vpop.f32.mrb[62].mxu0  ;;  %v3069_v52 = vsel %vm1050_vm1, %v6473_v11, -inf }
 0x81f   : > { %v6479_v50 = vpop.f32.mrb[63].mxu0  ;;  %v3078_v17 = vsel %vm1050_vm1, %v6477_v24, -inf }
 0x820   : > { %3079 = vmax.xlane.f32.xlu1 %v3078_v17  ;;  %v3072_v27 = vsel %vm1050_vm1, %v6479_v50, -inf }
 0x822   : > { %3070 = vmax.xlane.f32.xlu0 %v3069_v52 }
 0x824   : > { %3073 = vmax.xlane.f32.xlu1 %v3072_v27 }
 0x828   : > { %v6487_v49 = vpop.f32.mrb[84].mxu1 }
 0x829   : > { %7185 = vst [vmem:[#allocation72_spill] sm:$0xff] %v6487_v49  ;;  %v6489_v63 = vpop.f32.mrb[85].mxu1 }
 0x82a   : > { %7186 = vst [vmem:[#allocation73_spill] sm:$0xff] %v6489_v63  ;;  %v6491_v38 = vpop.f32.mrb[86].mxu1 }
 0x82b   : > { %7187 = vst [vmem:[#allocation74_spill] sm:$0xff] %v6491_v38  ;;  %v6493_v62 = vpop.f32.mrb[87].mxu1 }
 0x82c   : > { %7188 = vst [vmem:[#allocation75_spill] sm:$0xff] %v6493_v62 }
 0x830   : > { %v6495_v15 = vpop.f32.mrb[88].mxu1 }
 0x831   : > { %v6497_v13 = vpop.f32.mrb[89].mxu1  ;;  %v3087_v42 = vsel %vm1050_vm1, %v6495_v15, -inf }
 0x832   : > { %3088 = vmax.xlane.f32.xlu1 %v3087_v42  ;;  %v6501_v9 = vpop.f32.mrb[90].mxu1  ;;  %v3081_v2 = vsel %vm1050_vm1, %v6497_v13, -inf }
 0x833   : > { %3082 = vmax.xlane.f32.xlu0 %v3081_v2  ;;  %v6505_v16 = vpop.f32.mrb[91].mxu1  ;;  %v3090_v17 = vsel %vm1050_vm1, %v6501_v9, -inf }
 0x834   : > { %v3084_v29 = vsel %vm1050_vm1, %v6505_v16, -inf }
 0x836   : > { %3091 = vmax.xlane.f32.xlu1 %v3090_v17  ;;  %v1754_v17 = vsel %vm1050_vm1, %v6065_v37, 0.0 }
 0x838   : > { %v6509_v52 = vpop.f32.mrb[92].mxu1 }
 0x839   : > { %v6511_v27 = vpop.f32.mrb[93].mxu1  ;;  %v3099_v49 = vsel %vm1050_vm1, %v6509_v52, -inf }
 0x83a   : > { %3085 = vmax.xlane.f32.xlu1 %v3084_v29  ;;  %v6515_v42 = vpop.f32.mrb[94].mxu1  ;;  %v3093_v38 = vsel %vm1050_vm1, %v6511_v27, -inf  ;;  %v1751_v29 = vsel %vm1050_vm1, %v6067_v44, 0.0 }
 0x83b   : > { %3094 = vmax.xlane.f32.xlu0 %v3093_v38  ;;  %v6519_v2 = vpop.f32.mrb[95].mxu1  ;;  %v1757_v38 = vsel %vm1050_vm1, %v6075_v53, 0.0  ;;  %v2461_v53 = vsel %vm1050_vm1, %v6326_v39, 0.0 }
 0x83e   : > { %3100 = vmax.xlane.f32.xlu1 %v3099_v49  ;;  %v2455_v49 = vsel %vm1050_vm1, %v6313_v33, 0.0  ;;  %v2452_v33 = vsel %vm1050_vm1, %v6315_v35, 0.0 }
 0x84f   : > { %3312 = vrot.lane.b32.xlu1 %v5695_v60, %s5224_s30  ;;  %v1760_v60 = vsel %vm1050_vm1, %v6078_v22, 0.0 }
 0x851   : > { %3310 = vrot.lane.b32.xlu0 %v5697_v61, %s5224_s30 }
 0x870   : > { %1752 = vadd.xlane.f32.xlu0 %v1751_v29 }
 0x873   : > { %1755 = vadd.xlane.f32.xlu1 %v1754_v17 }
 0x874   : > { %1758 = vadd.xlane.f32.xlu0 %v1757_v38 }
 0x875   : > { %v3065_v62 = vpop.xlane.xlu0 %3064 }
 0x876   : > { %v3107_v61 = vsub.f32 %v6447_v47, %v3065_v62 }
 0x877   : > { %2456 = vadd.xlane.f32.xlu1 %v2455_v49 }
 0x878   : > { %1761 = vadd.xlane.f32.xlu0 %v1760_v60  ;;  %v3062_v44 = vpop.xlane.xlu1 %3061  ;;  %v3125_v49 = vmul.f32 1.442695, %v3107_v61 }
 0x879   : > { %v3106_v29 = vsub.f32 %v6455_v21, %v3062_v44  ;;  %v3059_v37 = vpop.xlane.xlu0 %3058  ;;  %v2458_v21 = vsel %vm1050_vm1, %v6323_v43, 0.0 }
 0x87a   : > { %v3105_v17 = vsub.f32 %v6449_v41, %v3059_v37  ;;  %v1763_v37 = vsel %vm1050_vm1, %v6131_v51, 0.0  ;;  %v2470_v51 = vsel %vm1050_vm1, %v6365_v23, 0.0 }
 0x87b   : > { %v3123_v38 = vmul.f32 1.442695, %v3106_v29  ;;  %2462 = vadd.xlane.f32.xlu1 %v2461_v53  ;;  %v1769_v53 = vsel %vm1050_vm1, %v6129_v26, 0.0  ;;  %v3102_v26 = vsel %vm1050_vm1, %v6515_v42, -inf }
 0x87c   : > { %v3121_v63 = vmul.f32 1.442695, %v3105_v17  ;;  %2453 = vadd.xlane.f32.xlu0 %v2452_v33  ;;  %v1766_v17 = vsel %vm1050_vm1, %v6133_v10, 0.0  ;;  %v2464_v33 = vsel %vm1050_vm1, %v6367_v34, 0.0  ;;  %v2473_v10 = vsel %vm1050_vm1, %v6373_v56, 0.0 }
 0x87d   : > { %4801 = vpow2.f32 %v3123_v38  ;;  %v3068_v22 = vpop.xlane.xlu0 %3067  ;;  %v1772_v38 = vsel %vm1050_vm1, %v6136_v30, 0.0  ;;  %v3096_v30 = vsel %vm1050_vm1, %v6519_v2, -inf }
 0x87e   : > { %4803 = vpow2.f32 %v3121_v63  ;;  %v3108_v47 = vsub.f32 %v6453_v46, %v3068_v22 }
 0x87f   : > { %4805 = vpow2.f32 %v3125_v49  ;;  %v2467_v49 = vsel %vm1050_vm1, %v6370_v25, 0.0 }
 0x880   : > { %v3127_v41 = vmul.f32 1.442695, %v3108_v47  ;;  %2459 = vadd.xlane.f32.xlu0 %v2458_v21 }
 0x882   : > { %4807 = vpow2.f32 %v3127_v41 }
 0x887   : > { %v4802_v39 = vpop.eup %4801 }
 0x888   : > { %v4804_v62 = vpop.eup %4803  ;;  %v3156_v60 = vsel %vm1050_vm1, %v4802_v39, 0.0 }
 0x889   : > { %3157 = vadd.xlane.f32.xlu1 %v3156_v60  ;;  %v3153_v35 = vsel %vm1050_vm1, %v4804_v62, 0.0  ;;  %v3201_v61 = vpack.c.bf16 %v4802_v39, %v4804_v62  ;;  %v4806_v44 = vpop.eup %4805 }
 0x88a   : > { %3154 = vadd.xlane.f32.xlu0 %v3153_v35  ;;  %v3159_v43 = vsel %vm1050_vm1, %v4806_v44, 0.0 }
 0x88b   : > { %4419 = vmatprep.mubr.msk.bf16.mxu0 %vm1050_vm1, %v3201_v61 }
 0x88c   : > { %v4808_v46 = vpop.eup %4807 }
 0x88d   : > { %v3202_v63 = vpack.c.bf16 %v4808_v46, %v4806_v44  ;;  %v3162_v29 = vsel %vm1050_vm1, %v4808_v46, 0.0 }
 0x88e   : > { %3160 = vadd.xlane.f32.xlu0 %v3159_v43  ;;  %3163 = vadd.xlane.f32.xlu1 %v3162_v29 }
 0x88f   : > { %4420 = vmatmul.mubr.msk.bf16.vlgmr.msra.gmra.mrb[64].mxu0 %vm1050_vm1, %v3202_v63 }
 0x892   : > { %1764 = vadd.xlane.f32.xlu0 %v1763_v37  ;;  %1767 = vadd.xlane.f32.xlu1 %v1766_v17 }
 0x896   : > { %1770 = vadd.xlane.f32.xlu0 %v1769_v53  ;;  %1773 = vadd.xlane.f32.xlu1 %v1772_v38 }
 0x89a   : > { %2465 = vadd.xlane.f32.xlu0 %v2464_v33  ;;  %2468 = vadd.xlane.f32.xlu1 %v2467_v49 }
 0x89e   : > { %2471 = vadd.xlane.f32.xlu0 %v2470_v51  ;;  %2474 = vadd.xlane.f32.xlu1 %v2473_v10 }
 0x8a2   : > { %3103 = vmax.xlane.f32.xlu1 %v3102_v26 }
 0x8a6   : > { %3097 = vmax.xlane.f32.xlu1 %v3096_v30 }
 0x8ab   : > { %v3077_v34 = vpop.xlane.xlu0 %3076 }
 0x8ac   : > { %v3111_v25 = vsub.f32 %v6471_v58, %v3077_v34 }
 0x8ad   : > { %v3080_v22 = vpop.xlane.xlu1 %3079 }
 0x8ae   : > { %v3133_v47 = vmul.f32 1.442695, %v3111_v25  ;;  %v3112_v23 = vsub.f32 %v6477_v24, %v3080_v22 }
 0x8af   : > { %v3071_v21 = vpop.xlane.xlu0 %3070 }
 0x8b0   : > { %v3135_v41 = vmul.f32 1.442695, %v3112_v23  ;;  %v3109_v56 = vsub.f32 %v6473_v11, %v3071_v21  ;;  %4809 = vpow2.f32 %v3133_v47  ;;  %v1781_v47 = vsel %vm1050_vm1, %v6146_v32, 0.0 }
 0x8b1   : > { %v3074_v39 = vpop.xlane.xlu1 %3073  ;;  %v2479_v32 = vsel %vm1050_vm1, %v6387_v3, 0.0  ;;  %v1787_v3 = vsel %vm1050_vm1, %v6178_v7, 0.0  ;;  %v2488_v7 = vsel %vm1050_vm1, %v6415_v5, 0.0 }
 0x8b2   : > { %4811 = vpow2.f32 %v3135_v41  ;;  %v3129_v62 = vmul.f32 1.442695, %v3109_v56  ;;  %v3110_v60 = vsub.f32 %v6479_v50, %v3074_v39  ;;  %v2482_v56 = vsel %vm1050_vm1, %v6382_v8, 0.0 }
 0x8b4   : > { %4813 = vpow2.f32 %v3129_v62  ;;  %v3131_v35 = vmul.f32 1.442695, %v3110_v60 }
 0x8b6   : > { %4815 = vpow2.f32 %v3131_v35  ;;  %v7189_v35 = vld [vmem:[#allocation52_spill] sm:$0xff] }
 0x8b7   : > { %v1790_v8 = vsel %vm1050_vm1, %v7189_v35, 0.0 }
 0x8ba   : > { %v4810_v61 = vpop.eup %4809 }
 0x8bb   : > { %v3171_v33 = vsel %vm1050_vm1, %v4810_v61, 0.0 }
 0x8bc   : > { %v4812_v44 = vpop.eup %4811 }
 0x8bd   : > { %v3204_v58 = vpack.c.bf16 %v4812_v44, %v4810_v61  ;;  %v7190_v61 = vld [vmem:[#allocation53_spill] sm:$0xff] }
 0x8be   : > { %v4814_v46 = vpop.eup %4813 }
 0x8bf   : > { %v3089_v63 = vpop.xlane.xlu1 %3088  ;;  %v3165_v24 = vsel %vm1050_vm1, %v4814_v46, 0.0 }
 0x8c0   : > { %v4816_v43 = vpop.eup %4815  ;;  %v3115_v29 = vsub.f32 %v6495_v15, %v3089_v63  ;;  %v3083_v11 = vpop.xlane.xlu0 %3082  ;;  %3166 = vadd.xlane.f32.xlu0 %v3165_v24  ;;  %v3174_v15 = vsel %vm1050_vm1, %v4812_v44, 0.0  ;;  %v7191_v44 = vld [vmem:[#allocation54_spill] sm:$0xff]  ;;  %v2494_v63 = vsel %vm1050_vm1, %v6419_v0, 0.0  ;;  %v2497_v24 = vsel %vm1050_vm1, %v6422_v14, 0.0 }
 0x8c1   : > { %v3168_v37 = vsel %vm1050_vm1, %v4816_v43, 0.0  ;;  %v3203_v17 = vpack.c.bf16 %v4816_v43, %v4814_v46  ;;  %v3113_v53 = vsub.f32 %v6497_v13, %v3083_v11  ;;  %v1775_v13 = vsel %vm1050_vm1, %v6149_v36, 0.0  ;;  %v7192_v43 = vld [vmem:[#allocation24_spill] sm:$0xff]  ;;  %v7193_v11 = vld [vmem:[#allocation27_spill] sm:$0xff] }
 0x8c2   : > { %3169 = vadd.xlane.f32.xlu1 %v3168_v37  ;;  %v3141_v50 = vmul.f32 1.442695, %v3115_v29  ;;  %v2491_v46 = vsel %vm1050_vm1, %v6413_v55, 0.0  ;;  %v1147_v29 = vsel %vm1050_vm1, %v7192_v43, 0.0  ;;  %v1150_v5 = vsel %vm1050_vm1, %v7193_v11, 0.0  ;;  %v7194_v37 = vld [vmem:[#allocation20_spill] sm:$0xff] }
 0x8c3   : > { %4423 = vmatprep.mubr.msk.bf16.mxu0 %vm1050_vm1, %v3203_v17  ;;  %v3092_v38 = vpop.xlane.xlu1 %3091  ;;  %v3137_v10 = vmul.f32 1.442695, %v3113_v53  ;;  %v1153_v55 = vsel %vm1050_vm1, %v7194_v37, 0.0  ;;  %v7195_v17 = vld [vmem:[#allocation21_spill] sm:$0xff]  ;;  %v7208_v43 = vld [vmem:[#allocation58_spill] sm:$0xff] }
 0x8c4   : > { %v3116_v49 = vsub.f32 %v6501_v9, %v3092_v38  ;;  %3172 = vadd.xlane.f32.xlu0 %v3171_v33  ;;  %4424 = vmatmul.mubr.msk.bf16.gmra.mrb[68].mxu0 %vm1050_vm1, %v3204_v58  ;;  %4817 = vpow2.f32 %v3141_v50  ;;  %v1778_v9 = vsel %vm1050_vm1, %v6151_v45, 0.0  ;;  %v2476_v45 = vsel %vm1050_vm1, %v6384_v48, 0.0  ;;  %v7196_v50 = vld [vmem:[#allocation32_spill] sm:$0xff]  ;;  %v7197_v53 = vld [vmem:[#allocation33_spill] sm:$0xff] }
 0x8c5   : > { %v2485_v48 = vsel %vm1050_vm1, %v6389_v57, 0.0  ;;  %v1793_v57 = vsel %vm1050_vm1, %v7190_v61, 0.0  ;;  %v1796_v58 = vsel %vm1050_vm1, %v7191_v44, 0.0  ;;  %v1156_v0 = vsel %vm1050_vm1, %v7195_v17, 0.0  ;;  %v7198_v33 = vld [vmem:[#allocation28_spill] sm:$0xff]  ;;  %v7207_v61 = vld [vmem:[#allocation31_spill] sm:$0xff] }
 0x8c6   : > { %v3143_v51 = vmul.f32 1.442695, %v3116_v49  ;;  %3175 = vadd.xlane.f32.xlu1 %v3174_v15  ;;  %v1159_v14 = vsel %vm1050_vm1, %v7196_v50, 0.0  ;;  %v1162_v38 = vsel %vm1050_vm1, %v7197_v53, 0.0  ;;  %v1165_v49 = vsel %vm1050_vm1, %v7198_v33, 0.0  ;;  %v7199_v15 = vld [vmem:[#allocation29_spill] sm:$0xff] }
 0x8c7   : > { %v3086_v26 = vpop.xlane.xlu1 %3085  ;;  %v7210_v50 = vld [vmem:[#allocation55_spill] sm:$0xff] }
 0x8c8   : > { %4819 = vpow2.f32 %v3143_v51  ;;  %v3114_v30 = vsub.f32 %v6505_v16, %v3086_v26  ;;  %1776 = vadd.xlane.f32.xlu0 %v1775_v13  ;;  %v6589_v34 = vpop.xlane.xlu0 %3094  ;;  %v1784_v16 = vsel %vm1050_vm1, %v6153_v59, 0.0  ;;  %v1168_v51 = vsel %vm1050_vm1, %v7199_v15, 0.0  ;;  %v7201_v13 = vld [vmem:[#allocation26_spill] sm:$0xff] }
 0x8c9   : > { %4821 = vpow2.f32 %v3137_v10  ;;  %v7200_v10 = vld [vmem:[#allocation25_spill] sm:$0xff] }
 0x8ca   : > { %v3139_v25 = vmul.f32 1.442695, %v3114_v30  ;;  %1779 = vadd.xlane.f32.xlu1 %v1778_v9  ;;  %v1171_v26 = vsel %vm1050_vm1, %v7200_v10, 0.0  ;;  %v1174_v30 = vsel %vm1050_vm1, %v7201_v13, 0.0  ;;  %v7202_v9 = vld [vmem:[#allocation22_spill] sm:$0xff] }
 0x8cb   : > { %v6593_v22 = vpop.xlane.xlu1 %3100 }
 0x8cc   : > { %4823 = vpow2.f32 %v3139_v25  ;;  %1782 = vadd.xlane.f32.xlu0 %v1781_v47  ;;  %v3311_v36 = vpop.permute.xlu0 %3310  ;;  %v1177_v25 = vsel %vm1050_vm1, %v7202_v9, 0.0 }
 0x8cd   : > { %4431 = vmatprep.subr.bf16.mxu1 %v3311_v36 }
 0x8ce   : > { %4432 = vmatpush3.bf16.msra.mxu1 %v3311_v36  ;;  %1785 = vadd.xlane.f32.xlu1 %v1784_v16  ;;  %v6601_v21 = vpop.eup %4817  ;;  %v7203_v36 = vld [vmem:[#allocation23_spill] sm:$0xff] }
 0x8cf   : > { %v3313_v23 = vpop.permute.xlu1 %3312  ;;  %v1180_v16 = vsel %vm1050_vm1, %v7203_v36, 0.0 }
 0x8d0   : > { %2477 = vadd.xlane.f32.xlu0 %v2476_v45  ;;  %4433 = vmatprep.subr.bf16.mxu1 %v3313_v23 }
 0x8d2   : > { %v6605_v41 = vpop.eup %4819  ;;  %2480 = vadd.xlane.f32.xlu1 %v2479_v32  ;;  %4434 = vmatpush3.bf16.msra.mxu1 %v3313_v23  ;;  %v7204_v23 = vld [vmem:[#allocation34_spill] sm:$0xff] }
 0x8d3   : > { %v3206_v59 = vpack.c.bf16 %v6605_v41, %v6601_v21  ;;  %v6611_v39 = vpop.eup %4821  ;;  %v1183_v45 = vsel %vm1050_vm1, %v7204_v23, 0.0 }
 0x8d4   : > { %2483 = vadd.xlane.f32.xlu0 %v2482_v56 }
 0x8d6   : > { %v6615_v62 = vpop.eup %4823  ;;  %2486 = vadd.xlane.f32.xlu1 %v2485_v48  ;;  %v7206_v48 = vld [vmem:[#allocation30_spill] sm:$0xff] }
 0x8d7   : > { %v3205_v60 = vpack.c.bf16 %v6615_v62, %v6611_v39 }
 0x8d8   : > { %1788 = vadd.xlane.f32.xlu0 %v1787_v3  ;;  %v1189_v3 = vsel %vm1050_vm1, %v7206_v48, 0.0 }
 0x8d9   : > { %4435 = vmatprep.mubr.msk.bf16.mxu1 %vm1050_vm1, %v3205_v60  ;;  %v5225_v60 = vmov 0.0  }
 0x8da   : > { %1791 = vadd.xlane.f32.xlu1 %v1790_v8  ;;  %4436 = vmatmul.mubr.msk.bf16.vlgmr.msra.gmra.mrb[96].mxu1 %vm1050_vm1, %v3206_v59  ;;  %v7205_v59 = vld [vmem:[#allocation35_spill] sm:$0xff]  ;;  %831 = vst.msk [vmem:[#allocation3] sm:$0xff] %vm830_vm2, %v5225_v60  ;;  %832 = vst.msk [vmem:[#allocation3 + $0x8] sm:$0xff] %vm830_vm2, %v5225_v60 }
 0x8db   : > { %v1186_v56 = vsel %vm1050_vm1, %v7205_v59, 0.0  ;;  %833 = vst.msk [vmem:[#allocation3 + $0x10] sm:$0xff] %vm830_vm2, %v5225_v60  ;;  %834 = vst.msk [vmem:[#allocation3 + $0x18] sm:$0xff] %vm830_vm2, %v5225_v60 }
 0x8dc   : > { %1794 = vadd.xlane.f32.xlu0 %v1793_v57  ;;  %835 = vst.msk [vmem:[#allocation3 + $0x20] sm:$0xff] %vm830_vm2, %v5225_v60  ;;  %836 = vst.msk [vmem:[#allocation3 + $0x28] sm:$0xff] %vm830_vm2, %v5225_v60  ;;  %v1192_v57 = vsel %vm1050_vm1, %v7207_v61, 0.0 }
 0x8dd   : > { %837 = vst.msk [vmem:[#allocation3 + $0x30] sm:$0xff] %vm830_vm2, %v5225_v60  ;;  %838 = vst.msk [vmem:[#allocation3 + $0x38] sm:$0xff] %vm830_vm2, %v5225_v60 }
 0x8de   : > { %1797 = vadd.xlane.f32.xlu1 %v1796_v58  ;;  %839 = vst.msk [vmem:[#allocation3 + $0x40] sm:$0xff] %vm830_vm2, %v5225_v60  ;;  %840 = vst.msk [vmem:[#allocation3 + $0x48] sm:$0xff] %vm830_vm2, %v5225_v60 }
 0x8df   : > { %841 = vst.msk [vmem:[#allocation3 + $0x50] sm:$0xff] %vm830_vm2, %v5225_v60  ;;  %842 = vst.msk [vmem:[#allocation3 + $0x58] sm:$0xff] %vm830_vm2, %v5225_v60 }
 0x8e0   : > { %2489 = vadd.xlane.f32.xlu0 %v2488_v7  ;;  %843 = vst.msk [vmem:[#allocation3 + $0x60] sm:$0xff] %vm830_vm2, %v5225_v60  ;;  %844 = vst.msk [vmem:[#allocation3 + $0x68] sm:$0xff] %vm830_vm2, %v5225_v60 }
 0x8e1   : > { %845 = vst.msk [vmem:[#allocation3 + $0x70] sm:$0xff] %vm830_vm2, %v5225_v60  ;;  %846 = vst.msk [vmem:[#allocation3 + $0x78] sm:$0xff] %vm830_vm2, %v5225_v60 }
 0x8e2   : > { %2492 = vadd.xlane.f32.xlu1 %v2491_v46 }
 0x8e4   : > { %2495 = vadd.xlane.f32.xlu0 %v2494_v63 }
 0x8e6   : > { %2498 = vadd.xlane.f32.xlu1 %v2497_v24 }
 0x8e8   : > { %1148 = vadd.xlane.f32.xlu0 %v1147_v29 }
 0x8ea   : > { %1151 = vadd.xlane.f32.xlu1 %v1150_v5 }
 0x8ec   : > { %1154 = vadd.xlane.f32.xlu0 %v1153_v55  ;;  %v7209_v55 = vld [vmem:[#allocation56_spill] sm:$0xff] }
 0x8ee   : > { %1157 = vadd.xlane.f32.xlu1 %v1156_v0 }
 0x8f0   : > { %1160 = vadd.xlane.f32.xlu0 %v1159_v14 }
 0x8f2   : > { %1163 = vadd.xlane.f32.xlu1 %v1162_v38 }
 0x8f4   : > { %1166 = vadd.xlane.f32.xlu0 %v1165_v49 }
 0x8f6   : > { %1169 = vadd.xlane.f32.xlu1 %v1168_v51  ;;  %v7211_v51 = vld [vmem:[#allocation57_spill] sm:$0xff] }
 0x8f8   : > { %1172 = vadd.xlane.f32.xlu0 %v1171_v26 }
 0x8fa   : > { %1175 = vadd.xlane.f32.xlu1 %v1174_v30 }
 0x8fc   : > { %1178 = vadd.xlane.f32.xlu0 %v1177_v25 }
 0x8fd   : > { %v1753_v47 = vpop.xlane.xlu0 %1752 }
 0x8fe   : > { %1181 = vadd.xlane.f32.xlu1 %v1180_v16 }
 0x900   : > { %1184 = vadd.xlane.f32.xlu0 %v1183_v45  ;;  %v1756_v35 = vpop.xlane.xlu1 %1755 }
 0x901   : > { %v1759_v32 = vpop.xlane.xlu0 %1758  ;;  %4825 = vrcp.f32 %v1756_v35 }
 0x902   : > { %1187 = vadd.xlane.f32.xlu1 %v1186_v56  ;;  %4827 = vrcp.f32 %v1753_v47  ;;  %v7212_v56 = vld [vmem:[#allocation60_spill] sm:$0xff] }
 0x903   : > { %4829 = vrcp.f32 %v1759_v32 }
 0x904   : > { %1190 = vadd.xlane.f32.xlu0 %v1189_v3  ;;  %v2457_v58 = vpop.xlane.xlu1 %2456  ;;  %v7213_v3 = vld [vmem:[#allocation62_spill] sm:$0xff] }
 0x905   : > { %v1762_v8 = vpop.xlane.xlu0 %1761 }
 0x906   : > { %1193 = vadd.xlane.f32.xlu1 %v1192_v57  ;;  %v7214_v57 = vld [vmem:[#allocation59_spill] sm:$0xff] }
 0x908   : > { %v2463_v63 = vpop.xlane.xlu1 %2462 }
 0x909   : > { %v2454_v44 = vpop.xlane.xlu0 %2453 }
 0x90a   : > { %4831 = vrcp.f32 %v2454_v44 }
 0x90b   : > { %4833 = vrcp.f32 %v1762_v8  ;;  %v4826_v46 = vpop.eup %4825 }
 0x90c   : > { %v4828_v24 = vpop.eup %4827  ;;  %v2010_v29 = vmul.f32 %v4826_v46, %v7208_v43 }
 0x90d   : > { %v2460_v7 = vpop.xlane.xlu0 %2459  ;;  %v4830_v11 = vpop.eup %4829  ;;  %v2009_v17 = vmul.f32 %v4828_v24, %v7209_v55 }
 0x90e   : > { %4835 = vrcp.f32 %v2460_v7  ;;  %v2011_v14 = vmul.f32 %v4830_v11, %v7210_v50  ;;  %v7215_v7 = vld [vmem:[#allocation61_spill] sm:$0xff] }
 0x90f   : > { %4837 = vrcp.f32 %v2457_v58 }
 0x910   : > { %4839 = vrcp.f32 %v2463_v63  ;;  %v3119_v63 = vsub.f32 %v6509_v52, %v6593_v22 }
 0x914   : > { %v4832_v0 = vpop.eup %4831 }
 0x915   : > { %v4834_v53 = vpop.eup %4833  ;;  %v2710_v49 = vmul.f32 %v4832_v0, %v6433_v4 }
 0x916   : > { %v6686_v5 = vpop.xlane.xlu1 %3157  ;;  %v2012_v10 = vmul.f32 %v4834_v53, %v7211_v51  ;;  %v4699_v51 = vld [vmem:[#allocation10 + $0x10] sm:$0xff]  }
 0x917   : > { %v6688_v37 = vpop.xlane.xlu0 %3154  ;;  %2043 = vrot.lane.b32.xlu1 %v2010_v29, %s5226_s7 }
 0x918   : > { %v4836_v15 = vpop.eup %4835 }
 0x919   : > { %v4838_v26 = vpop.eup %4837  ;;  %v2712_v9 = vmul.f32 %v4836_v15, %v6431_v40 }
 0x91a   : > { %2041 = vrot.lane.b32.xlu0 %v2009_v17, %s5226_s7  ;;  %v2711_v25 = vmul.f32 %v4838_v26, %v6437_v18  ;;  %v4840_v47 = vpop.eup %4839  ;;  %v3149_v17 = vmul.f32 1.442695, %v3119_v63  ;;  %v4700_v26 = vld [vmem:[#allocation10 + $0x18] sm:$0xff]  }
 0x91b   : > { %v6694_v38 = vpop.xlane.xlu0 %3160  ;;  %2045 = vrot.lane.b32.xlu1 %v2011_v14, %s5226_s7  ;;  %v6697_v33 = vpop.xlane.xlu1 %3163  ;;  %v2713_v16 = vmul.f32 %v4840_v47, %v6435_v6  ;;  %v3117_v6 = vsub.f32 %v6511_v27, %v6589_v34  ;;  %v4701_v47 = vld [vmem:[#allocation10 + $0x20] sm:$0xff]  }
 0x91d   : > { %v3145_v43 = vmul.f32 1.442695, %v3117_v6 }
 0x91e   : > { %2742 = vrot.lane.b32.xlu0 %v2710_v49, %s5227_s29  ;;  %v4698_v49 = vld [vmem:[#allocation10 + $0x8] sm:$0xff]  }
 0x91f   : > { %v1765_v13 = vpop.xlane.xlu0 %1764  ;;  %2047 = vrot.lane.b32.xlu1 %v2012_v10, %s5226_s7  ;;  %v1768_v30 = vpop.xlane.xlu1 %1767 }
 0x920   : > { %4841 = vrcp.f32 %v1765_v13 }
 0x921   : > { %4843 = vrcp.f32 %v1768_v30 }
 0x922   : > { %2746 = vrot.lane.b32.xlu0 %v2712_v9, %s5227_s29 }
 0x923   : > { %v1771_v4 = vpop.xlane.xlu0 %1770  ;;  %2744 = vrot.lane.b32.xlu1 %v2711_v25, %s5227_s29  ;;  %v1774_v36 = vpop.xlane.xlu1 %1773 }
 0x924   : > { %4845 = vrcp.f32 %v1771_v4 }
 0x925   : > { %4847 = vrcp.f32 %v1774_v36 }
 0x927   : > { %v2466_v23 = vpop.xlane.xlu0 %2465  ;;  %2748 = vrot.lane.b32.xlu1 %v2713_v16, %s5227_s29  ;;  %v2469_v45 = vpop.xlane.xlu1 %2468  ;;  %v4702_v16 = vld [vmem:[#allocation10 + $0x28] sm:$0xff]  }
 0x928   : > { %4849 = vrcp.f32 %v2466_v23 }
 0x929   : > { %4851 = vrcp.f32 %v2469_v45 }
 0x92a   : > { %v4842_v40 = vpop.eup %4841 }
 0x92b   : > { %v4844_v32 = vpop.eup %4843  ;;  %v2472_v18 = vpop.xlane.xlu0 %2471  ;;  %v2013_v48 = vmul.f32 %v4842_v40, %v7212_v56 }
 0x92c   : > { %v6709_v59 = vpop.xlane.xlu1 %2474  ;;  %4853 = vrcp.f32 %v2472_v18  ;;  %v2014_v60 = vmul.f32 %v4844_v32, %v7213_v3  ;;  %v7216_v18 = vld [vmem:[#allocation64_spill] sm:$0xff] }
 0x92d   : > { %2049 = vrot.lane.b32.xlu0 %v2013_v48, %s5226_s7  ;;  %4855 = vpow2.f32 %v3145_v43 }
 0x92e   : > { %v4846_v35 = vpop.eup %4845  ;;  %2051 = vrot.lane.b32.xlu1 %v2014_v60, %s5226_s7 }
 0x92f   : > { %v4848_v8 = vpop.eup %4847  ;;  %v2015_v44 = vmul.f32 %v4846_v35, %v7214_v57 }
 0x930   : > { %v3104_v61 = vpop.xlane.xlu1 %3103  ;;  %v2016_v46 = vmul.f32 %v4848_v8, %v7215_v7  ;;  %v7217_v8 = vld [vmem:[#allocation66_spill] sm:$0xff] }
 0x931   : > { %v3120_v58 = vsub.f32 %v6515_v42, %v3104_v61  ;;  %2053 = vrot.lane.b32.xlu0 %v2015_v44, %s5226_s7 }
 0x932   : > { %v4850_v24 = vpop.eup %4849  ;;  %2055 = vrot.lane.b32.xlu1 %v2016_v46, %s5226_s7 }
 0x933   : > { %v4852_v27 = vpop.eup %4851  ;;  %v3151_v34 = vmul.f32 1.442695, %v3120_v58  ;;  %v2714_v11 = vmul.f32 %v4850_v24, %v6441_v28  ;;  %v7218_v24 = vld [vmem:[#allocation63_spill] sm:$0xff] }
 0x934   : > { %v3098_v29 = vpop.xlane.xlu1 %3097  ;;  %v2715_v42 = vmul.f32 %v4852_v27, %v6445_v54 }
 0x935   : > { %v3118_v55 = vsub.f32 %v6519_v2, %v3098_v29  ;;  %2750 = vrot.lane.b32.xlu0 %v2714_v11, %s5227_s29  ;;  %4857 = vpow2.f32 %v3151_v34 }
 0x936   : > { %v4854_v0 = vpop.eup %4853  ;;  %2752 = vrot.lane.b32.xlu1 %v2715_v42, %s5227_s29 }
 0x937   : > { %v3147_v52 = vmul.f32 1.442695, %v3118_v55  ;;  %v6730_v22 = vmul.f32 %v4854_v0, %v6439_v19  ;;  %v6732_v50 = vpop.eup %4855  ;;  %v4697_v19 = vld [vmem:[#allocation10] sm:$0xff]   ;;  %v7219_v55 = vld [vmem:[#allocation65_spill] sm:$0xff] }
 0x938   : > { %4443 = vmatprep.subr.bf16.mxu0 %v4697_v19 }
 0x939   : > { %4859 = vpow2.f32 %v3147_v52  ;;  %4444 = vmatpush3.bf16.msra.mxu0 %v4697_v19 }
 0x93a   : > { %4861 = vpow2.f32 %v3149_v17  ;;  %4445 = vmatprep.subr.bf16.mxu0 %v4698_v49 }
 0x93d   : > { %4446 = vmatpush3.bf16.msra.mxu0 %v4698_v49 }
 0x93e   : > { %4447 = vmatprep.subr.bf16.mxu0 %v4699_v51 }
 0x93f   : > { %v6734_v28 = vpop.eup %4857 }
 0x941   : > { %4448 = vmatpush3.bf16.msra.mxu0 %v4699_v51 }
 0x942   : > { %4449 = vmatprep.subr.bf16.mxu0 %v4700_v26 }
 0x943   : > { %v6736_v2 = vpop.eup %4859 }
 0x944   : > { %v6738_v54 = vpop.eup %4861  ;;  %v3207_v14 = vpack.c.bf16 %v6736_v2, %v6732_v50 }
 0x945   : > { %v3208_v53 = vpack.c.bf16 %v6734_v28, %v6738_v54  ;;  %4450 = vmatpush3.bf16.msra.mxu0 %v4700_v26 }
 0x946   : > { %4439 = vmatprep.mubr.msk.bf16.mxu1 %vm1050_vm1, %v3207_v14  ;;  %4451 = vmatprep.subr.bf16.mxu0 %v4701_v47 }
 0x947   : > { %4440 = vmatmul.mubr.msk.bf16.gmra.mrb[100].mxu1 %vm1050_vm1, %v3208_v53 }
 0x949   : > { %4452 = vmatpush3.bf16.msra.mxu0 %v4701_v47 }
 0x94a   : > { %4453 = vmatprep.subr.bf16.mxu0 %v4702_v16 }
 0x94d   : > { %v6746_v15 = vpop.xlane.xlu0 %3166  ;;  %4454 = vmatpush3.bf16.msra.mxu0 %v4702_v16  ;;  %v7220_v16 = vld [vmem:[#allocation68_spill] sm:$0xff] }
 0x94f   : > { %v6748_v10 = vpop.xlane.xlu1 %3169 }
 0x951   : > { %v6750_v13 = vpop.xlane.xlu0 %3172 }
 0x953   : > { %v6752_v30 = vpop.xlane.xlu1 %3175 }
 0x955   : > { %v1777_v9 = vpop.xlane.xlu0 %1776 }
 0x956   : > { %4863 = vrcp.f32 %v1777_v9 }
 0x957   : > { %4865 = vrcp.f32 %v6694_v38  ;;  %v1780_v25 = vpop.xlane.xlu1 %1779  ;;  %v4703_v38 = vld [vmem:[#allocation10 + $0x30] sm:$0xff]  }
 0x958   : > { %4867 = vrcp.f32 %v1780_v25  ;;  %4455 = vmatprep.subr.bf16.mxu0 %v4703_v38 }
 0x959   : > { %4869 = vrcp.f32 %v6697_v33  ;;  %v1783_v4 = vpop.xlane.xlu0 %1782  ;;  %4456 = vmatpush3.bf16.msra.mxu0 %v4703_v38 }
 0x95a   : > { %4871 = vrcp.f32 %v1783_v4 }
 0x95b   : > { %4873 = vrcp.f32 %v6688_v37  ;;  %v1786_v36 = vpop.xlane.xlu1 %1785  ;;  %v4704_v37 = vld [vmem:[#allocation10 + $0x38] sm:$0xff]  }
 0x95c   : > { %4875 = vrcp.f32 %v1786_v36  ;;  %4457 = vmatprep.subr.bf16.mxu0 %v4704_v37 }
 0x95d   : > { %4877 = vrcp.f32 %v6686_v5  ;;  %v2478_v23 = vpop.xlane.xlu0 %2477  ;;  %4458 = vmatpush3.bf16.msra.mxu0 %v4704_v37 }
 0x95e   : > { %4879 = vrcp.f32 %v2478_v23 }
 0x95f   : > { %v2481_v45 = vpop.xlane.xlu1 %2480 }
 0x960   : > { %v4864_v40 = vpop.eup %4863  ;;  %4881 = vrcp.f32 %v2481_v45  ;;  %v7221_v45 = vld [vmem:[#allocation70_spill] sm:$0xff] }
 0x961   : > { %v4866_v33 = vpop.eup %4865  ;;  %v2484_v32 = vpop.xlane.xlu0 %2483  ;;  %v6759_v56 = vmul.f32 %v4864_v40, %v7216_v18 }
 0x962   : > { %v4868_v48 = vpop.eup %4867  ;;  %4883 = vrcp.f32 %v2484_v32  ;;  %v4421_v3 = vpop.f32.mrb[64].mxu0  ;;  %v7222_v32 = vld [vmem:[#allocation67_spill] sm:$0xff] }
 0x963   : > { %v4870_v60 = vpop.eup %4869  ;;  %v3413_v5 = vmul.f32 %v4866_v33, %v4421_v3  ;;  %v3271_v35 = vpop.f32.mrb[65].mxu0  ;;  %v6762_v61 = vmul.f32 %v4868_v48, %v7217_v8  ;;  %v7223_v48 = vld [vmem:[#allocation69_spill] sm:$0xff] }
 0x964   : > { %v2487_v6 = vpop.xlane.xlu1 %2486  ;;  %v4872_v57 = vpop.eup %4871 }
 0x965   : > { %4885 = vrcp.f32 %v2487_v6  ;;  %v4422_v44 = vpop.f32.mrb[66].mxu0  ;;  %v4874_v58 = vpop.eup %4873  ;;  %3447 = vrot.lane.b32.xlu0 %v3413_v5, %s5228_s8  ;;  %v6766_v43 = vmul.f32 %v4872_v57, %v7218_v24 }
 0x966   : > { %v3414_v7 = vmul.f32 %v4870_v60, %v4422_v44  ;;  %v1789_v46 = vpop.xlane.xlu0 %1788  ;;  %v3274_v63 = vpop.f32.mrb[67].mxu0  ;;  %v3411_v29 = vmul.f32 %v4874_v58, %v3271_v35  ;;  %v7224_v35 = vld [vmem:[#allocation73_spill] sm:$0xff]  ;;  %v7225_v44 = vld [vmem:[#allocation75_spill] sm:$0xff] }
 0x967   : > { %v4876_v27 = vpop.eup %4875  ;;  %4887 = vrcp.f32 %v1789_v46 }
 0x968   : > { %v4878_v34 = vpop.eup %4877  ;;  %3449 = vrot.lane.b32.xlu1 %v3414_v7, %s5228_s8  ;;  %v1792_v11 = vpop.xlane.xlu1 %1791  ;;  %v6770_v42 = vmul.f32 %v4876_v27, %v7219_v55 }
 0x969   : > { %v4880_v17 = vpop.eup %4879  ;;  %4889 = vrcp.f32 %v1792_v11  ;;  %v3412_v0 = vmul.f32 %v4878_v34, %v3274_v63  ;;  %3443 = vrot.lane.b32.xlu0 %v3411_v29, %s5228_s8  ;;  %v7226_v63 = vld [vmem:[#allocation72_spill] sm:$0xff]  ;;  %v7227_v29 = vld [vmem:[#allocation74_spill] sm:$0xff] }
 0x96a   : > { %v1795_v52 = vpop.xlane.xlu0 %1794  ;;  %v6774_v14 = vmul.f32 %v4880_v17, %v6463_v12  ;;  %v4882_v53 = vpop.eup %4881  ;;  %v7228_v17 = vld [vmem:[#allocation37_spill] sm:$0xff] }
 0x96b   : > { %4891 = vrcp.f32 %v1795_v52  ;;  %v6778_v49 = vmul.f32 %v4882_v53, %v6467_v20 }
 0x96c   : > { %3445 = vrot.lane.b32.xlu1 %v3412_v0, %s5228_s8  ;;  %v1798_v19 = vpop.xlane.xlu1 %1797  ;;  %v4884_v51 = vpop.eup %4883 }
 0x96d   : > { %4893 = vrcp.f32 %v1798_v19  ;;  %v6781_v9 = vmul.f32 %v4884_v51, %v6459_v31  ;;  %v7229_v19 = vld [vmem:[#allocation39_spill] sm:$0xff] }
 0x96e   : > { %v2490_v26 = vpop.xlane.xlu0 %2489 }
 0x96f   : > { %v4886_v25 = vpop.eup %4885  ;;  %4895 = vrcp.f32 %v2490_v26 }
 0x970   : > { %v2493_v47 = vpop.xlane.xlu1 %2492  ;;  %v6784_v12 = vmul.f32 %v4886_v25, %v6465_v1 }
 0x971   : > { %v4888_v4 = vpop.eup %4887  ;;  %4897 = vrcp.f32 %v2493_v47  ;;  %v7230_v47 = vld [vmem:[#allocation36_spill] sm:$0xff] }
 0x972   : > { %v2496_v36 = vpop.xlane.xlu0 %2495  ;;  %v6787_v23 = vmul.f32 %v4888_v4, %v7220_v16 }
 0x973   : > { %v4890_v20 = vpop.eup %4889  ;;  %4899 = vrcp.f32 %v2496_v36 }
 0x974   : > { %v2499_v38 = vpop.xlane.xlu1 %2498  ;;  %v6790_v40 = vmul.f32 %v4890_v20, %v7221_v45  ;;  %v7231_v20 = vld [vmem:[#allocation38_spill] sm:$0xff] }
 0x975   : > { %v4892_v31 = vpop.eup %4891  ;;  %4901 = vrcp.f32 %v2499_v38 }
 0x976   : > { %v1149_v33 = vpop.xlane.xlu0 %1148  ;;  %v6793_v18 = vmul.f32 %v4892_v31, %v7222_v32  ;;  %v3183_v31 = vsel %vm1050_vm1, %v6601_v21, 0.0  ;;  %v7232_v32 = vld [vmem:[#allocation41_spill] sm:$0xff]  ;;  %v3177_v21 = vsel %vm1050_vm1, %v6611_v39, 0.0  ;;  %v7235_v39 = vld [vmem:[#allocation42_spill] sm:$0xff] }
 0x977   : > { %v4894_v1 = vpop.eup %4893  ;;  %4903 = vrcp.f32 %v1149_v33 }
 0x978   : > { %v1152_v37 = vpop.xlane.xlu1 %1151  ;;  %v6796_v3 = vmul.f32 %v4894_v1, %v7223_v48 }
 0x979   : > { %v4896_v60 = vpop.eup %4895  ;;  %4905 = vrcp.f32 %v1152_v37 }
 0x97a   : > { %v1155_v5 = vpop.xlane.xlu0 %1154  ;;  %v6799_v6 = vmul.f32 %v4896_v60, %v7224_v35  ;;  %v7233_v60 = vld [vmem:[#allocation43_spill] sm:$0xff] }
 0x97b   : > { %v4898_v8 = vpop.eup %4897  ;;  %4907 = vrcp.f32 %v1155_v5 }
 0x97c   : > { %v1158_v57 = vpop.xlane.xlu1 %1157  ;;  %v6802_v58 = vmul.f32 %v4898_v8, %v7225_v44 }
 0x97d   : > { %v4900_v7 = vpop.eup %4899  ;;  %4909 = vrcp.f32 %v1158_v57 }
 0x97e   : > { %v1161_v46 = vpop.xlane.xlu0 %1160  ;;  %v6805_v24 = vmul.f32 %v4900_v7, %v7226_v63 }
 0x97f   : > { %v4902_v27 = vpop.eup %4901  ;;  %4911 = vrcp.f32 %v1161_v46 }
 0x980   : > { %v1164_v34 = vpop.xlane.xlu1 %1163  ;;  %v6808_v11 = vmul.f32 %v4902_v27, %v7227_v29  ;;  %v3195_v27 = vsel %vm1050_vm1, %v6738_v54, 0.0 }
 0x981   : > { %v4904_v55 = vpop.eup %4903  ;;  %4913 = vrcp.f32 %v1164_v34  ;;  %v7236_v34 = vld [vmem:[#allocation45_spill] sm:$0xff] }
 0x982   : > { %v1373_v0 = vmul.f32 %v4904_v55, %v7228_v17  ;;  %v1167_v52 = vpop.xlane.xlu0 %1166 }
 0x983   : > { %v4906_v53 = vpop.eup %4905  ;;  %4915 = vrcp.f32 %v1167_v52 }
 0x984   : > { %v1374_v51 = vmul.f32 %v4906_v53, %v7229_v19  ;;  %v1170_v26 = vpop.xlane.xlu1 %1169  ;;  %1389 = vst.msk [vmem:[#allocation3] sm:$0xff] %vm871_vm0, %v1373_v0  ;;  %v7237_v0 = vld [vmem:[#allocation47_spill] sm:$0xff]  ;;  %v3189_v53 = vsel %vm1050_vm1, %v6732_v50, 0.0 }
 0x985   : > { %v4908_v25 = vpop.eup %4907  ;;  %4917 = vrcp.f32 %v1170_v26  ;;  %v7238_v26 = vld [vmem:[#allocation44_spill] sm:$0xff] }
 0x986   : > { %v1375_v4 = vmul.f32 %v4908_v25, %v7230_v47  ;;  %v1173_v36 = vpop.xlane.xlu0 %1172  ;;  %1390 = vst.msk [vmem:[#allocation3 + $0x8] sm:$0xff] %vm871_vm0, %v1374_v51 }
 0x987   : > { %v4910_v16 = vpop.eup %4909  ;;  %4919 = vrcp.f32 %v1173_v36  ;;  %v7239_v36 = vld [vmem:[#allocation46_spill] sm:$0xff] }
 0x988   : > { %v1376_v38 = vmul.f32 %v4910_v16, %v7231_v20  ;;  %v1176_v45 = vpop.xlane.xlu1 %1175  ;;  %1391 = vst.msk [vmem:[#allocation3 + $0x10] sm:$0xff] %vm871_vm0, %v1375_v4  ;;  %3184 = vadd.xlane.f32.xlu0 %v3183_v31 }
 0x989   : > { %v4912_v33 = vpop.eup %4911  ;;  %4921 = vrcp.f32 %v1176_v45 }
 0x98a   : > { %4923 = vrcp.f32 %v6746_v15  ;;  %v1377_v1 = vmul.f32 %v4912_v33, %v7232_v32  ;;  %v1179_v37 = vpop.xlane.xlu0 %1178  ;;  %1392 = vst.msk [vmem:[#allocation3 + $0x18] sm:$0xff] %vm871_vm0, %v1376_v38  ;;  %v7234_v15 = vld [vmem:[#allocation40_spill] sm:$0xff]  ;;  %v7240_v33 = vld [vmem:[#allocation49_spill] sm:$0xff] }
 0x98b   : > { %v4914_v48 = vpop.eup %4913  ;;  %4925 = vrcp.f32 %v1179_v37 }
 0x98c   : > { %4927 = vrcp.f32 %v6748_v10  ;;  %v1378_v5 = vmul.f32 %v4914_v48, %v7233_v60  ;;  %v1182_v35 = vpop.xlane.xlu1 %1181  ;;  %1393 = vst.msk [vmem:[#allocation3 + $0x20] sm:$0xff] %vm871_vm0, %v1377_v1  ;;  %3178 = vadd.xlane.f32.xlu0 %v3177_v21  ;;  %v3186_v10 = vsel %vm1050_vm1, %v6605_v41, 0.0  ;;  %v7241_v21 = vld [vmem:[#allocation51_spill] sm:$0xff] }
 0x98d   : > { %v4916_v8 = vpop.eup %4915  ;;  %4929 = vrcp.f32 %v1182_v35 }
 0x98e   : > { %4931 = vrcp.f32 %v6750_v13  ;;  %v1379_v57 = vmul.f32 %v4916_v8, %v7234_v15  ;;  %v1185_v44 = vpop.xlane.xlu0 %1184  ;;  %1394 = vst.msk [vmem:[#allocation3 + $0x28] sm:$0xff] %vm871_vm0, %v1378_v5 }
 0x98f   : > { %v4918_v7 = vpop.eup %4917  ;;  %4933 = vrcp.f32 %v1185_v44 }
 0x990   : > { %4935 = vrcp.f32 %v6752_v30  ;;  %v1380_v46 = vmul.f32 %v4918_v7, %v7235_v39  ;;  %3187 = vadd.xlane.f32.xlu1 %v3186_v10  ;;  %v1188_v63 = vpop.xlane.xlu1 %1187  ;;  %1395 = vst.msk [vmem:[#allocation3 + $0x30] sm:$0xff] %vm871_vm0, %v1379_v57  ;;  %3196 = vadd.xlane.f32.xlu0 %v3195_v27  ;;  %v3180_v30 = vsel %vm1050_vm1, %v6615_v62, 0.0  ;;  %v7242_v7 = vld [vmem:[#allocation48_spill] sm:$0xff]  ;;  %v7243_v27 = vld [vmem:[#allocation50_spill] sm:$0xff] }
 0x991   : > { %v4920_v13 = vpop.eup %4919  ;;  %4937 = vrcp.f32 %v1188_v63 }
 0x992   : > { %v1381_v29 = vmul.f32 %v4920_v13, %v7236_v34  ;;  %v1191_v55 = vpop.xlane.xlu0 %1190  ;;  %1396 = vst.msk [vmem:[#allocation3 + $0x38] sm:$0xff] %vm871_vm0, %v1380_v46 }
 0x993   : > { %v4922_v41 = vpop.eup %4921  ;;  %4939 = vrcp.f32 %v1191_v55  ;;  %v7244_v55 = vld [vmem:[#allocation71_spill] sm:$0xff] }
 0x994   : > { %v4924_v17 = vpop.eup %4923  ;;  %v1382_v52 = vmul.f32 %v4922_v41, %v7237_v0  ;;  %3181 = vadd.xlane.f32.xlu1 %v3180_v30  ;;  %v1194_v54 = vpop.xlane.xlu1 %1193  ;;  %1397 = vst.msk [vmem:[#allocation3 + $0x40] sm:$0xff] %vm871_vm0, %v1381_v29  ;;  %3190 = vadd.xlane.f32.xlu0 %v3189_v53 }
 0x995   : > { %v4926_v19 = vpop.eup %4925  ;;  %4941 = vrcp.f32 %v1194_v54 }
 0x996   : > { %v4928_v51 = vpop.eup %4927  ;;  %4943 = vrcp.f32 %v6709_v59  ;;  %v1383_v25 = vmul.f32 %v4926_v19, %v7238_v26  ;;  %v2042_v62 = vpop.permute.xlu0 %2041  ;;  %1398 = vst.msk [vmem:[#allocation3 + $0x48] sm:$0xff] %vm871_vm0, %v1382_v52 }
 0x997   : > { %v4930_v47 = vpop.eup %4929  ;;  %2090 = vst.msk [vmem:[#allocation3] sm:$0xff] %vm2089_vm3, %v2042_v62  ;;  %v4425_v16 = vpop.f32.mrb[68].mxu0 }
 0x998   : > { %v4932_v4 = vpop.eup %4931  ;;  %v1384_v50 = vmul.f32 %v4930_v47, %v7239_v36  ;;  %1399 = vst.msk [vmem:[#allocation3 + $0x50] sm:$0xff] %vm871_vm0, %v1383_v25  ;;  %v2044_v20 = vpop.permute.xlu1 %2043 }
 0x999   : > { %v4934_v38 = vpop.eup %4933  ;;  %v3417_v45 = vmul.f32 %v4932_v4, %v4425_v16  ;;  %2091 = vst.msk [vmem:[#allocation3 + $0x8] sm:$0xff] %vm2089_vm3, %v2044_v20  ;;  %v3287_v59 = vpop.f32.mrb[69].mxu0 }
 0x99a   : > { %v4936_v31 = vpop.eup %4935  ;;  %v1385_v32 = vmul.f32 %v4934_v38, %v7240_v33  ;;  %1400 = vst.msk [vmem:[#allocation3 + $0x58] sm:$0xff] %vm871_vm0, %v1384_v50  ;;  %v3415_v1 = vmul.f32 %v4924_v17, %v3287_v59  ;;  %v2743_v37 = vpop.permute.xlu0 %2742 }
 0x99b   : > { %v4426_v48 = vpop.f32.mrb[70].mxu0  ;;  %v4938_v60 = vpop.eup %4937  ;;  %2791 = vst.msk [vmem:[#allocation3] sm:$0xff] %vm2790_vm4, %v2743_v37 }
 0x99c   : > { %v6855_v5 = vmul.f32 %v4936_v31, %v4426_v48  ;;  %v3290_v35 = vpop.f32.mrb[71].mxu0  ;;  %v1386_v8 = vmul.f32 %v4938_v60, %v7241_v21  ;;  %1401 = vst.msk [vmem:[#allocation3 + $0x60] sm:$0xff] %vm871_vm0, %v1385_v32  ;;  %v2046_v57 = vpop.permute.xlu1 %2045 }
 0x99d   : > { %v3416_v15 = vmul.f32 %v4928_v51, %v3290_v35  ;;  %v4940_v44 = vpop.eup %4939  ;;  %2092 = vst.msk [vmem:[#allocation3 + $0x10] sm:$0xff] %vm2089_vm3, %v2046_v57 }
 0x99e   : > { %v1387_v10 = vmul.f32 %v4940_v44, %v7242_v7  ;;  %1402 = vst.msk [vmem:[#allocation3 + $0x68] sm:$0xff] %vm871_vm0, %v1386_v8  ;;  %v2747_v39 = vpop.permute.xlu0 %2746 }
 0x99f   : > { %v4942_v46 = vpop.eup %4941  ;;  %2793 = vst.msk [vmem:[#allocation3 + $0x10] sm:$0xff] %vm2790_vm4, %v2747_v39 }
 0x9a0   : > { %v4944_v63 = vpop.eup %4943  ;;  %v1388_v13 = vmul.f32 %v4942_v46, %v7243_v27  ;;  %1403 = vst.msk [vmem:[#allocation3 + $0x70] sm:$0xff] %vm871_vm0, %v1387_v10  ;;  %v2048_v34 = vpop.permute.xlu1 %2047 }
 0x9a1   : > { %2093 = vst.msk [vmem:[#allocation3 + $0x18] sm:$0xff] %vm2089_vm3, %v2048_v34  ;;  %v2717_v41 = vmul.f32 %v4944_v63, %v7244_v55 }
 0x9a2   : > { %1404 = vst.msk [vmem:[#allocation3 + $0x78] sm:$0xff] %vm871_vm0, %v1388_v13  ;;  %v2050_v29 = vpop.permute.xlu0 %2049 }
 0x9a3   : > { %2094 = vst.msk [vmem:[#allocation3 + $0x20] sm:$0xff] %vm2089_vm3, %v2050_v29 }
 0x9a4   : > { %v2745_v30 = vpop.permute.xlu1 %2744 }
 0x9a5   : > { %2792 = vst.msk [vmem:[#allocation3 + $0x8] sm:$0xff] %vm2790_vm4, %v2745_v30  ;;  %2756 = vrot.lane.b32.xlu1 %v2717_v41, %s5227_s29 }
 0x9a6   : > { %v2054_v17 = vpop.permute.xlu0 %2053 }
 0x9a7   : > { %2096 = vst.msk [vmem:[#allocation3 + $0x30] sm:$0xff] %vm2089_vm3, %v2054_v17 }
 0x9a8   : > { %v2749_v0 = vpop.permute.xlu1 %2748 }
 0x9a9   : > { %2794 = vst.msk [vmem:[#allocation3 + $0x18] sm:$0xff] %vm2790_vm4, %v2749_v0 }
 0x9aa   : > { %v2751_v52 = vpop.permute.xlu0 %2750  ;;  %2754 = vrot.lane.b32.xlu0 %v6730_v22, %s5227_s29  ;;  %v3198_v22 = vsel %vm1050_vm1, %v6734_v28, 0.0 }
 0x9ab   : > { %2795 = vst.msk [vmem:[#allocation3 + $0x20] sm:$0xff] %vm2790_vm4, %v2751_v52 }
 0x9ac   : > { %v2052_v54 = vpop.permute.xlu1 %2051 }
 0x9ad   : > { %2095 = vst.msk [vmem:[#allocation3 + $0x28] sm:$0xff] %vm2089_vm3, %v2052_v54  ;;  %v4437_v53 = vpop.f32.mrb[96].mxu1 }
 0x9ae   : > { %3451 = vrot.lane.b32.xlu0 %v3415_v1, %s5228_s8  ;;  %v6878_v19 = vpop.f32.mrb[97].mxu1 }
 0x9af   : > { %v6880_v51 = vpop.f32.mrb[98].mxu1 }
 0x9b0   : > { %v2056_v26 = vpop.permute.xlu1 %2055  ;;  %v6883_v25 = vpop.f32.mrb[99].mxu1 }
 0x9b1   : > { %2097 = vst.msk [vmem:[#allocation3 + $0x38] sm:$0xff] %vm2089_vm3, %v2056_v26 }
 0x9b2   : > { %3455 = vrot.lane.b32.xlu0 %v3417_v45, %s5228_s8 }
 0x9b4   : > { %v2753_v62 = vpop.permute.xlu1 %2752 }
 0x9b5   : > { %2796 = vst.msk [vmem:[#allocation3 + $0x28] sm:$0xff] %vm2790_vm4, %v2753_v62 }
 0x9b6   : > { %2057 = vrot.lane.b32.xlu0 %v6759_v56, %s5226_s7  ;;  %v3192_v56 = vsel %vm1050_vm1, %v6736_v2, 0.0 }
 0x9ba   : > { %2061 = vrot.lane.b32.xlu0 %v6766_v43, %s5226_s7 }
 0x9be   : > { %2758 = vrot.lane.b32.xlu0 %v6774_v14, %s5227_s29 }
 0x9c2   : > { %2762 = vrot.lane.b32.xlu0 %v6781_v9, %s5227_s29 }
 0x9c6   : > { %2065 = vrot.lane.b32.xlu0 %v6787_v23, %s5226_s7 }
 0x9c9   : > { %3199 = vadd.xlane.f32.xlu1 %v3198_v22 }
 0x9ca   : > { %2069 = vrot.lane.b32.xlu0 %v6793_v18, %s5226_s7 }
 0x9cd   : > { %3193 = vadd.xlane.f32.xlu1 %v3192_v56 }
 0x9ce   : > { %2766 = vrot.lane.b32.xlu0 %v6799_v6, %s5227_s29 }
 0x9d7   : > { %v3448_v43 = vpop.permute.xlu0 %3447 }
 0x9d8   : > { %3494 = vst.msk [vmem:[#allocation3 + $0x10] sm:$0xff] %vm3491_vm5, %v3448_v43 }
 0x9da   : > { %v3450_v14 = vpop.permute.xlu1 %3449 }
 0x9db   : > { %3495 = vst.msk [vmem:[#allocation3 + $0x18] sm:$0xff] %vm3491_vm5, %v3450_v14  ;;  %v3444_v9 = vpop.permute.xlu0 %3443 }
 0x9dc   : > { %3492 = vst.msk [vmem:[#allocation3] sm:$0xff] %vm3491_vm5, %v3444_v9 }
 0x9de   : > { %3453 = vrot.lane.b32.xlu1 %v3416_v15, %s5228_s8  ;;  %v3446_v28 = vpop.permute.xlu1 %3445 }
 0x9df   : > { %3493 = vst.msk [vmem:[#allocation3 + $0x8] sm:$0xff] %vm3491_vm5, %v3446_v28  ;;  %v3510_v47 = vld [vmem:[#allocation3 + $0x10] sm:$0xff] }
 0x9e2   : > { %3457 = vrot.lane.b32.xlu1 %v6855_v5, %s5228_s8  ;;  %v3511_v2 = vld [vmem:[#allocation3 + $0x18] sm:$0xff] }
 0x9e3   : > { %v3508_v23 = vld [vmem:[#allocation3] sm:$0xff]  ;;  %v3525_v4 = vpack.c.bf16 %v3511_v2, %v3510_v47 }
 0x9e6   : > { %2059 = vrot.lane.b32.xlu1 %v6762_v61, %s5226_s7  ;;  %v3509_v18 = vld [vmem:[#allocation3 + $0x8] sm:$0xff] }
 0x9e7   : > { %v3524_v6 = vpack.c.bf16 %v3509_v18, %v3508_v23 }
 0x9e9   : > { %4459 = vmatprep.mubr.bf16.mxu0 %v3524_v6 }
 0x9ea   : > { %2063 = vrot.lane.b32.xlu1 %v6770_v42, %s5226_s7  ;;  %4460 = vmatmul.mubr.bf16.vlgmr.msra.gmra.mrb[72].mxu0 %v3525_v4 }
 0x9ee   : > { %2760 = vrot.lane.b32.xlu1 %v6778_v49, %s5227_s29 }
 0x9f2   : > { %2764 = vrot.lane.b32.xlu1 %v6784_v12, %s5227_s29 }
 0x9f6   : > { %2067 = vrot.lane.b32.xlu1 %v6790_v40, %s5226_s7 }
 0x9fa   : > { %2071 = vrot.lane.b32.xlu1 %v6796_v3, %s5226_s7 }
 0x9fe   : > { %2768 = vrot.lane.b32.xlu1 %v6802_v58, %s5227_s29 }
 0xa15   : > { %v3185_v61 = vpop.xlane.xlu0 %3184 }
 0xa16   : > { %4945 = vrcp.f32 %v3185_v61 }
 0xa19   : > { %v3179_v36 = vpop.xlane.xlu0 %3178 }
 0xa1a   : > { %v4441_v42 = vpop.f32.mrb[100].mxu1  ;;  %4947 = vrcp.f32 %v3179_v36 }
 0xa1b   : > { %v3380_v50 = vpop.f32.mrb[101].mxu1 }
 0xa1c   : > { %v6926_v16 = vpop.f32.mrb[102].mxu1 }
 0xa1d   : > { %v3383_v49 = vpop.f32.mrb[103].mxu1  ;;  %v3188_v20 = vpop.xlane.xlu1 %3187 }
 0xa1e   : > { %4949 = vrcp.f32 %v3188_v20  ;;  %v3197_v12 = vpop.xlane.xlu0 %3196 }
 0xa20   : > { %v4946_v38 = vpop.eup %4945 }
 0xa21   : > { %v3182_v40 = vpop.xlane.xlu1 %3181  ;;  %v3421_v3 = vmul.f32 %v4946_v38, %v4437_v53 }
 0xa22   : > { %4951 = vrcp.f32 %v3182_v40  ;;  %v3191_v45 = vpop.xlane.xlu0 %3190 }
 0xa23   : > { %4953 = vrcp.f32 %v3191_v45  ;;  %3463 = vrot.lane.b32.xlu0 %v3421_v3, %s5228_s8 }
 0xa24   : > { %v4948_v58 = vpop.eup %4947  ;;  %4955 = vrcp.f32 %v3197_v12 }
 0xa25   : > { %v2757_v59 = vpop.permute.xlu1 %2756  ;;  %v3419_v33 = vmul.f32 %v4948_v58, %v6878_v19 }
 0xa26   : > { %2798 = vst.msk [vmem:[#allocation3 + $0x38] sm:$0xff] %vm2790_vm4, %v2757_v59  ;;  %v2755_v31 = vpop.permute.xlu0 %2754 }
 0xa27   : > { %2797 = vst.msk [vmem:[#allocation3 + $0x30] sm:$0xff] %vm2790_vm4, %v2755_v31  ;;  %3459 = vrot.lane.b32.xlu0 %v3419_v33, %s5228_s8 }
 0xa28   : > { %v4950_v32 = vpop.eup %4949 }
 0xa29   : > { %v3422_v1 = vmul.f32 %v4950_v32, %v6880_v51 }
 0xa2a   : > { %v3452_v37 = vpop.permute.xlu0 %3451 }
 0xa2b   : > { %3496 = vst.msk [vmem:[#allocation3 + $0x20] sm:$0xff] %vm3491_vm5, %v3452_v37  ;;  %3465 = vrot.lane.b32.xlu1 %v3422_v1, %s5228_s8  ;;  %2770 = vrot.lane.b32.xlu0 %v6805_v24, %s5227_s29 }
 0xa2c   : > { %v4952_v48 = vpop.eup %4951 }
 0xa2d   : > { %v4954_v60 = vpop.eup %4953  ;;  %v3420_v5 = vmul.f32 %v4952_v48, %v6883_v25 }
 0xa2e   : > { %v3456_v35 = vpop.permute.xlu0 %3455  ;;  %v3423_v21 = vmul.f32 %v4954_v60, %v3380_v50  ;;  %v4956_v8 = vpop.eup %4955 }
 0xa2f   : > { %3498 = vst.msk [vmem:[#allocation3 + $0x30] sm:$0xff] %vm3491_vm5, %v3456_v35  ;;  %3461 = vrot.lane.b32.xlu1 %v3420_v5, %s5228_s8  ;;  %v3425_v57 = vmul.f32 %v4956_v8, %v4441_v42 }
 0xa30   : > { %3467 = vrot.lane.b32.xlu0 %v3423_v21, %s5228_s8 }
 0xa32   : > { %v2058_v15 = vpop.permute.xlu0 %2057  ;;  %v3512_v41 = vld [vmem:[#allocation3 + $0x20] sm:$0xff] }
 0xa33   : > { %2098 = vst.msk [vmem:[#allocation3 + $0x40] sm:$0xff] %vm2089_vm3, %v2058_v15  ;;  %2772 = vrot.lane.b32.xlu1 %v6808_v11, %s5227_s29 }
 0xa34   : > { %3471 = vrot.lane.b32.xlu0 %v3425_v57, %s5228_s8 }
 0xa36   : > { %v2062_v24 = vpop.permute.xlu0 %2061  ;;  %v3514_v53 = vld [vmem:[#allocation3 + $0x30] sm:$0xff] }
 0xa37   : > { %2100 = vst.msk [vmem:[#allocation3 + $0x50] sm:$0xff] %vm2089_vm3, %v2062_v24 }
 0xa3a   : > { %v2759_v44 = vpop.permute.xlu0 %2758 }
 0xa3b   : > { %2799 = vst.msk [vmem:[#allocation3 + $0x40] sm:$0xff] %vm2790_vm4, %v2759_v44 }
 0xa3e   : > { %v2763_v7 = vpop.permute.xlu0 %2762 }
 0xa3f   : > { %2801 = vst.msk [vmem:[#allocation3 + $0x50] sm:$0xff] %vm2790_vm4, %v2763_v7 }
 0xa42   : > { %v2066_v10 = vpop.permute.xlu0 %2065 }
 0xa43   : > { %2102 = vst.msk [vmem:[#allocation3 + $0x60] sm:$0xff] %vm2089_vm3, %v2066_v10 }
 0xa46   : > { %v2070_v39 = vpop.permute.xlu0 %2069 }
 0xa47   : > { %2104 = vst.msk [vmem:[#allocation3 + $0x70] sm:$0xff] %vm2089_vm3, %v2070_v39 }
 0xa4a   : > { %v2767_v46 = vpop.permute.xlu0 %2766 }
 0xa4b   : > { %2803 = vst.msk [vmem:[#allocation3 + $0x60] sm:$0xff] %vm2790_vm4, %v2767_v46 }
 0xa56   : > { %v3200_v11 = vpop.xlane.xlu1 %3199 }
 0xa5a   : > { %v3194_v63 = vpop.xlane.xlu1 %3193 }
 0xa5b   : > { %4957 = vrcp.f32 %v3194_v63 }
 0xa5c   : > { %4959 = vrcp.f32 %v3200_v11 }
 0xa5e   : > { %v3454_v27 = vpop.permute.xlu1 %3453 }
 0xa5f   : > { %3497 = vst.msk [vmem:[#allocation3 + $0x28] sm:$0xff] %vm3491_vm5, %v3454_v27 }
 0xa62   : > { %v3458_v13 = vpop.permute.xlu1 %3457 }
 0xa63   : > { %3499 = vst.msk [vmem:[#allocation3 + $0x38] sm:$0xff] %vm3491_vm5, %v3458_v13 }
 0xa65   : > { %v4958_v34 = vpop.eup %4957 }
 0xa66   : > { %v2060_v29 = vpop.permute.xlu1 %2059  ;;  %v3424_v55 = vmul.f32 %v4958_v34, %v3383_v49  ;;  %v3513_v30 = vld [vmem:[#allocation3 + $0x28] sm:$0xff]  ;;  %v4960_v17 = vpop.eup %4959 }
 0xa67   : > { %2099 = vst.msk [vmem:[#allocation3 + $0x48] sm:$0xff] %vm2089_vm3, %v2060_v29  ;;  %v3526_v0 = vpack.c.bf16 %v3513_v30, %v3512_v41  ;;  %v3426_v54 = vmul.f32 %v4960_v17, %v6926_v16  ;;  %v6973_v16 = vld [vmem:[#allocation12] ss:$0 sm:$0xff] }
 0xa68   : > { %3469 = vrot.lane.b32.xlu1 %v3424_v55, %s5228_s8 }
 0xa69   : > { %4463 = vmatprep.mubr.bf16.mxu0 %v3526_v0 }
 0xa6a   : > { %v2064_v52 = vpop.permute.xlu1 %2063  ;;  %v3515_v19 = vld [vmem:[#allocation3 + $0x38] sm:$0xff] }
 0xa6b   : > { %2101 = vst.msk [vmem:[#allocation3 + $0x58] sm:$0xff] %vm2089_vm3, %v2064_v52  ;;  %v3527_v51 = vpack.c.bf16 %v3515_v19, %v3514_v53 }
 0xa6c   : > { %3473 = vrot.lane.b32.xlu1 %v3426_v54, %s5228_s8 }
 0xa6d   : > { %4464 = vmatmul.mubr.bf16.gmra.mrb[76].mxu0 %v3527_v51 }
 0xa6e   : > { %v2761_v26 = vpop.permute.xlu1 %2760 }
 0xa6f   : > { %2800 = vst.msk [vmem:[#allocation3 + $0x48] sm:$0xff] %vm2790_vm4, %v2761_v26 }
 0xa72   : > { %v2765_v25 = vpop.permute.xlu1 %2764 }
 0xa73   : > { %2802 = vst.msk [vmem:[#allocation3 + $0x58] sm:$0xff] %vm2790_vm4, %v2765_v25 }
 0xa76   : > { %v2068_v62 = vpop.permute.xlu1 %2067 }
 0xa77   : > { %2103 = vst.msk [vmem:[#allocation3 + $0x68] sm:$0xff] %vm2089_vm3, %v2068_v62 }
 0xa7a   : > { %v2072_v22 = vpop.permute.xlu1 %2071 }
 0xa7b   : > { %2105 = vst.msk [vmem:[#allocation3 + $0x78] sm:$0xff] %vm2089_vm3, %v2072_v22 }
 0xa7e   : > { %v2769_v56 = vpop.permute.xlu1 %2768 }
 0xa7f   : > { %2804 = vst.msk [vmem:[#allocation3 + $0x68] sm:$0xff] %vm2790_vm4, %v2769_v56 }
 0xa95   : > { %v3464_v43 = vpop.permute.xlu0 %3463 }
 0xa96   : > { %3502 = vst.msk [vmem:[#allocation3 + $0x50] sm:$0xff] %vm3491_vm5, %v3464_v43 }
 0xa99   : > { %v3460_v14 = vpop.permute.xlu0 %3459 }
 0xa9a   : > { %3500 = vst.msk [vmem:[#allocation3 + $0x40] sm:$0xff] %vm3491_vm5, %v3460_v14 }
 0xa9d   : > { %v3466_v9 = vpop.permute.xlu1 %3465  ;;  %v2771_v28 = vpop.permute.xlu0 %2770  ;;  %v3518_v42 = vld [vmem:[#allocation3 + $0x50] sm:$0xff] }
 0xa9e   : > { %3503 = vst.msk [vmem:[#allocation3 + $0x58] sm:$0xff] %vm3491_vm5, %v3466_v9 }
 0xa9f   : > { %2805 = vst.msk [vmem:[#allocation3 + $0x70] sm:$0xff] %vm2790_vm4, %v2771_v28 }
 0xaa1   : > { %v3462_v2 = vpop.permute.xlu1 %3461  ;;  %v3516_v4 = vld [vmem:[#allocation3 + $0x40] sm:$0xff] }
 0xaa2   : > { %3501 = vst.msk [vmem:[#allocation3 + $0x48] sm:$0xff] %vm3491_vm5, %v3462_v2  ;;  %v3468_v23 = vpop.permute.xlu0 %3467 }
 0xaa3   : > { %3504 = vst.msk [vmem:[#allocation3 + $0x60] sm:$0xff] %vm3491_vm5, %v3468_v23 }
 0xaa5   : > { %v2773_v18 = vpop.permute.xlu1 %2772  ;;  %v3519_v47 = vld [vmem:[#allocation3 + $0x58] sm:$0xff] }
 0xaa6   : > { %2806 = vst.msk [vmem:[#allocation3 + $0x78] sm:$0xff] %vm2790_vm4, %v2773_v18  ;;  %v3472_v6 = vpop.permute.xlu0 %3471  ;;  %v3529_v50 = vpack.c.bf16 %v3519_v47, %v3518_v42 }
 0xaa7   : > { %3506 = vst.msk [vmem:[#allocation3 + $0x70] sm:$0xff] %vm3491_vm5, %v3472_v6 }
 0xaa9   : > { %v3517_v61 = vld [vmem:[#allocation3 + $0x48] sm:$0xff] }
 0xaaa   : > { %v3528_v36 = vpack.c.bf16 %v3517_v61, %v3516_v4  ;;  %v3520_v33 = vld [vmem:[#allocation3 + $0x60] sm:$0xff] }
 0xaac   : > { %4467 = vmatprep.mubr.bf16.mxu0 %v3528_v36 }
 0xaad   : > { %4468 = vmatmul.mubr.bf16.gmra.mrb[80].mxu0 %v3529_v50 }
 0xaae   : > { %v3522_v37 = vld [vmem:[#allocation3 + $0x70] sm:$0xff] }
 0xabd   : > { %v4461_v49 = vpop.f32.mrb[72].mxu0 }
 0xabe   : > { %v3646_v20 = vadd.f32 %v4461_v49, %v6973_v16  ;;  %v3637_v12 = vpop.f32.mrb[73].mxu0 }
 0xabf   : > { %v3638_v38 = vadd.f32 %v6973_v16, %v3637_v12  ;;  %v4462_v40 = vpop.f32.mrb[74].mxu0 }
 0xac0   : > { %3702 = vst [vmem:[%s6977_s9 + $0x10] sm:$0xff] %v3646_v20  ;;  %v3649_v45 = vadd.f32 %v4462_v40, %v6973_v16  ;;  %v3640_v3 = vpop.f32.mrb[75].mxu0 }
 0xac1   : > { %3700 = vst [vmem:[%s6977_s9] sm:$0xff] %v3638_v38  ;;  %v3641_v58 = vadd.f32 %v6973_v16, %v3640_v3 }
 0xac2   : > { %3703 = vst [vmem:[%s6977_s9 + $0x18] sm:$0xff] %v3649_v45 }
 0xac3   : > { %3701 = vst [vmem:[%s6977_s9 + $0x8] sm:$0xff] %v3641_v58 }
 0xada   : > { %v3470_v59 = vpop.permute.xlu1 %3469 }
 0xadb   : > { %3505 = vst.msk [vmem:[#allocation3 + $0x68] sm:$0xff] %vm3491_vm5, %v3470_v59 }
 0xade   : > { %v3474_v31 = vpop.permute.xlu1 %3473 }
 0xadf   : > { %3507 = vst.msk [vmem:[#allocation3 + $0x78] sm:$0xff] %vm3491_vm5, %v3474_v31 }
 0xae2   : > { %v3521_v32 = vld [vmem:[#allocation3 + $0x68] sm:$0xff] }
 0xae3   : > { %v3530_v1 = vpack.c.bf16 %v3521_v32, %v3520_v33 }
 0xae5   : > { %4471 = vmatprep.mubr.bf16.mxu0 %v3530_v1 }
 0xae6   : > { %v3523_v48 = vld [vmem:[#allocation3 + $0x78] sm:$0xff] }
 0xae7   : > { %v3531_v60 = vpack.c.bf16 %v3523_v48, %v3522_v37 }
 0xae9   : > { %4472 = vmatmul.mubr.bf16.gmra.mrb[84].mxu0 %v3531_v60 }
 0xb40   : > { %v4465_v5 = vpop.f32.mrb[76].mxu0 }
 0xb41   : > { %v3662_v35 = vadd.f32 %v4465_v5, %v6973_v16  ;;  %v3653_v21 = vpop.f32.mrb[77].mxu0 }
 0xb42   : > { %v3654_v8 = vadd.f32 %v6973_v16, %v3653_v21  ;;  %v4466_v15 = vpop.f32.mrb[78].mxu0 }
 0xb43   : > { %3706 = vst [vmem:[%s6977_s9 + $0x30] sm:$0xff] %v3662_v35  ;;  %v3665_v57 = vadd.f32 %v4466_v15, %v6973_v16  ;;  %v3656_v24 = vpop.f32.mrb[79].mxu0 }
 0xb44   : > { %3704 = vst [vmem:[%s6977_s9 + $0x20] sm:$0xff] %v3654_v8  ;;  %v3657_v44 = vadd.f32 %v6973_v16, %v3656_v24 }
 0xb45   : > { %3707 = vst [vmem:[%s6977_s9 + $0x38] sm:$0xff] %v3665_v57 }
 0xb46   : > { %3705 = vst [vmem:[%s6977_s9 + $0x28] sm:$0xff] %v3657_v44 }
 0xb80   : > { %v4469_v7 = vpop.f32.mrb[80].mxu0 }
 0xb81   : > { %v3678_v10 = vadd.f32 %v4469_v7, %v6973_v16  ;;  %v3669_v39 = vpop.f32.mrb[81].mxu0 }
 0xb82   : > { %v3670_v46 = vadd.f32 %v6973_v16, %v3669_v39  ;;  %v4470_v11 = vpop.f32.mrb[82].mxu0 }
 0xb83   : > { %3710 = vst [vmem:[%s6977_s9 + $0x50] sm:$0xff] %v3678_v10  ;;  %v3681_v63 = vadd.f32 %v4470_v11, %v6973_v16  ;;  %v3672_v27 = vpop.f32.mrb[83].mxu0 }
 0xb84   : > { %3708 = vst [vmem:[%s6977_s9 + $0x40] sm:$0xff] %v3670_v46  ;;  %v3673_v13 = vadd.f32 %v6973_v16, %v3672_v27 }
 0xb85   : > { %3711 = vst [vmem:[%s6977_s9 + $0x58] sm:$0xff] %v3681_v63 }
 0xb86   : > { %3709 = vst [vmem:[%s6977_s9 + $0x48] sm:$0xff] %v3673_v13 }
 0xbbc   : > { %v4473_v34 = vpop.f32.mrb[84].mxu0 }
 0xbbd   : > { %v3694_v29 = vadd.f32 %v4473_v34, %v6973_v16  ;;  %v3685_v55 = vpop.f32.mrb[85].mxu0 }
 0xbbe   : > { %v3686_v41 = vadd.f32 %v6973_v16, %v3685_v55  ;;  %v4474_v30 = vpop.f32.mrb[86].mxu0 }
 0xbbf   : > { %3714 = vst [vmem:[%s6977_s9 + $0x70] sm:$0xff] %v3694_v29  ;;  %v3697_v17 = vadd.f32 %v4474_v30, %v6973_v16  ;;  %v3688_v0 = vpop.f32.mrb[87].mxu0 }
 0xbc0   : > { %3712 = vst [vmem:[%s6977_s9 + $0x60] sm:$0xff] %v3686_v41  ;;  %v3689_v52 = vadd.f32 %v6973_v16, %v3688_v0 }
 0xbc1   : > { %3715 = vst [vmem:[%s6977_s9 + $0x78] sm:$0xff] %v3697_v17 }
 0xbc2   : > { %3713 = vst [vmem:[%s6977_s9 + $0x68] sm:$0xff] %v3689_v52 }
 0xbc3   : > { %5116 = shalt.err (!%p5113_p7)
}
 0xbc4   : > { %s5117_s30 = scalar_lea.hbm %s7013_s21, 2048  ;;  %s5121_s10 = scalar_lea.hbm %s7245_s2, 8192 }
 0xbc5   : > { %p5118_p12 = scmp.ne.s32.totalorder %s7013_s21, %s5117_s30  ;;  %p5122_p5 = scmp.lt.u32.totalorder %s7013_s21, %s7245_s2 }
 0xbc6   : > { %p5123_p9 = scmp.lt.u32.totalorder %s5121_s10, %s5117_s30  ;;  %p5125_p2 = scmp.lt.u32.totalorder %s5117_s30, %s7013_s21 }
 0xbc7   : > { %p5119_p11 = pnand %p5118_p12, %p5451_p6 }
 0xbc8   : > { %p5124_p0 = por %p5123_p9, %p5122_p5 }
 0xbc9   : > { %p5120_p1 = pneg %p5119_p11 }
 0xbca   : > { %p5126_p10 = por %p5125_p2, %p5124_p0 }
 0xbcc   : > { %p5127_p4 = pnand %p5126_p10, %p5120_p1 }
 0xbce   : > { %5130 = shalt.err (!%p5127_p4)
}
 0xbcf   : > { %s5230_s14 = smov 128   ;;  %s5231_s1 = smov 256  }
 0xbd0   : > { %4541 = dma.vmem_to_hbm [thread:$0]  (%p5451_p6), %s7015_s15, 2048, %s7013_s21, %s3717_s11, %s5230_s14, %s5231_s1, %s5226_s7  }
 0xbd1 PF: > { %s7246_s6 = sld [smem:[#allocation18_spill]]  ;;  %s7247_s22 = sld [smem:[#allocation19_spill]] }
 0xbd2   : > { %p4573_p8 = scmp.ge.s32.totalorder %s5209_s25, 2 }
 0xbd7   : > { %s3749_s12 = sand.u32 1, %s7246_s6   ;;  %p7248_p13 = scmp.ne.s32.totalorder %s7247_s22, 0 }
 0xbd8   : > { %s3750_s13 = scalar_lea.sflag [#allocation6], %s3749_s12 }
 0xbd9   : > { %p4561_p3 = pnand %p4573_p8, %p7248_p13 }
 0xbdb   : > { %5176 = dma.done.wait (!%p4561_p3), %s3750_s13, 2048  }
 0xbdc   : > { %5178 = vsyncadd (!%p4561_p3), %s3750_s13, 4294965248  ;;  %s23_s25 = sadd.s32 1, %s5209_s25   ;;  %s7249_s17 = smov %s5464_s18 }
 0xbdd   : > { %p20_p7 = scmp.ge.s32.totalorder %s23_s25, 6   ;;  %s7250_s18 = smov %s5185_s19 }
 0xbde   : > { %s7251_s19 = smov %s5189_s20  ;;  %s7252_s20 = smov %s7249_s17 }
 0xbdf   : > { %s7253_s21 = smov %s5201_s23  ;;  %s7254_s22 = smov %s5205_s24 }
 0xbe0   : > { %s7255_s23 = smov %s7258_s26  ;;  %s7256_s24 = smov %s7262_s27 }
 0xbe1   :  { %22 = sbr.rel (!%p20_p7) target bundleno = 14 (0xe), region = 101 }
 0xbe8   :  { %3755 = vsyncpa [#allocation5], 1 }
 0xbe9   :  { %3757 = vsyncpa [#allocation5 + $0x1], 1 }
 0xbea   :  { %3758 = vsyncpa [#allocation8], 1 }
 0xbeb   :  { %3759 = vsyncpa [#allocation11], 1 }
 0xbec   :  { %3760 = vsyncpa [#allocation6], 1 }
 0xbed   :  { %3762 = vsyncpa [#allocation6 + $0x1], 1 }

</bundles_post_ra>
